<compile_context>
chip_gen: v7x
topology: tpu7x:2x2x1
jax: 0.10.0
libtpu: 0.0.40
codegen_flags: <defaults>
</compile_context>

<pallas_src>
from functools import partial

import jax
import jax.numpy as jnp
from jax.experimental import pallas as pl
from jax.experimental.pallas import tpu as pltpu


# --------------------------------------------------------------------------
# helpers
# --------------------------------------------------------------------------
def _row_tile(n):
    """Largest row tile (<=2048) dividing n, preferring >=2 grid steps (v7x megacore)."""
    for t in (2048, 1024, 512, 256, 128, 64, 32, 16, 8):
        if n % t == 0 and n // t >= 2:
            return t
    for t in (2048, 1024, 512, 256, 128, 64, 32, 16, 8):
        if n % t == 0:
            return t
    return n


# --------------------------------------------------------------------------
# Pallas kernels
# --------------------------------------------------------------------------
def _linear_kernel(x_ref, w_ref, b_ref, o_ref, *, activation):
    # x_ref: (tm, Cin), w_ref: (Cin, Cout), b_ref: (1, Cout), o_ref: (tm, Cout)
    y = jnp.dot(x_ref[...], w_ref[...], preferred_element_type=jnp.float32) + b_ref[...]
    if activation == "relu":
        y = jnp.maximum(y, 0.0)
    o_ref[...] = y.astype(o_ref.dtype)


def pallas_linear(x2d, w, b, activation=None):
    """y = x2d @ w + b (optionally ReLU).  x2d: (N, Cin), w: (Cin, Cout), b: (Cout,)."""
    N, Cin = x2d.shape
    Cout = w.shape[1]
    tm = _row_tile(N)
    assert N % tm == 0
    return pl.pallas_call(
        partial(_linear_kernel, activation=activation),
        out_shape=jax.ShapeDtypeStruct((N, Cout), jnp.float32),
        grid=(N // tm,),
        in_specs=[
            pl.BlockSpec((tm, Cin), lambda i: (i, 0)),
            pl.BlockSpec((Cin, Cout), lambda i: (0, 0)),
            pl.BlockSpec((1, Cout), lambda i: (0, 0)),
        ],
        out_specs=pl.BlockSpec((tm, Cout), lambda i: (i, 0)),
        compiler_params=pltpu.CompilerParams(dimension_semantics=("parallel",)),
    )(x2d, w, b.reshape(1, Cout))


def _ff_final_kernel(x_ref, wf_ref, bf_ref, wo_ref, bo_ref, o_ref):
    # Fused feedforward (Linear+ReLU) + final projection; 128-wide intermediate
    # stays in registers/VMEM, only the narrow final output hits HBM.
    h = jnp.dot(x_ref[...], wf_ref[...], preferred_element_type=jnp.float32) + bf_ref[...]
    h = jnp.maximum(h, 0.0)
    y = jnp.dot(h, wo_ref[...], preferred_element_type=jnp.float32) + bo_ref[...]
    o_ref[...] = y.astype(o_ref.dtype)


def pallas_ff_final(x2d, wf, bf, wo, bo):
    """relu(x2d @ wf + bf) @ wo + bo in a single Pallas launch."""
    N, Cin = x2d.shape
    H = wf.shape[1]
    Cout = wo.shape[1]
    tm = _row_tile(N)
    assert N % tm == 0
    return pl.pallas_call(
        _ff_final_kernel,
        out_shape=jax.ShapeDtypeStruct((N, Cout), jnp.float32),
        grid=(N // tm,),
        in_specs=[
            pl.BlockSpec((tm, Cin), lambda i: (i, 0)),
            pl.BlockSpec((Cin, H), lambda i: (0, 0)),
            pl.BlockSpec((1, H), lambda i: (0, 0)),
            pl.BlockSpec((H, Cout), lambda i: (0, 0)),
            pl.BlockSpec((1, Cout), lambda i: (0, 0)),
        ],
        out_specs=pl.BlockSpec((tm, Cout), lambda i: (i, 0)),
        compiler_params=pltpu.CompilerParams(dimension_semantics=("parallel",)),
    )(x2d, wf, bf.reshape(1, H), wo, bo.reshape(1, Cout))


def _spectral_kernel(x_ref, w_ref, o_ref, *, modes):
    # x_ref: (modes, R, 2*Cin)   packed [xr | xi] per mode
    # w_ref: (modes, 2*Cin, 2*Cout) packed [[wr, wi], [-wi, wr]] per mode
    # o_ref: (R, modes*2*Cout)   lane-dense; per mode columns = [yr | yi]
    ys = [
        jnp.dot(x_ref[m], w_ref[m], preferred_element_type=jnp.float32)
        for m in range(modes)
    ]
    o_ref[...] = jnp.concatenate(ys, axis=-1).astype(o_ref.dtype)


def pallas_spectral_mul(x_pack, w_pack, modes):
    """Packed complex per-mode matmuls for BOTH spectral directions in one call.

    x_pack: (n_dirs*modes, R, 2*Cin), w_pack: (n_dirs*modes, 2*Cin, 2*Cout)
    returns (R, n_dirs*modes*2*Cout) with column order [dir, mode, (yr|yi)].
    """
    n_mb, R, K2 = x_pack.shape
    O2 = w_pack.shape[2]
    n_dirs = n_mb // modes
    assert n_dirs * modes == n_mb
    return pl.pallas_call(
        partial(_spectral_kernel, modes=modes),
        out_shape=jax.ShapeDtypeStruct((R, n_mb * O2), jnp.float32),
        grid=(n_dirs,),
        in_specs=[
            pl.BlockSpec((modes, R, K2), lambda j: (j, 0, 0)),
            pl.BlockSpec((modes, K2, O2), lambda j: (j, 0, 0)),
        ],
        out_specs=pl.BlockSpec((R, modes * O2), lambda j: (0, j)),
        compiler_params=pltpu.CompilerParams(dimension_semantics=("parallel",)),
    )(x_pack, w_pack)


# --------------------------------------------------------------------------
# Model (glue in JAX, compute in the Pallas kernels above)
# --------------------------------------------------------------------------
def spectral_conv2d(x, lp, modes, conv_residual=True):
    """Factorized spectral layer: K(x) (1D FFT along each spatial dim, low-mode
    complex mixing) + W(x) (pointwise linear), ReLU.  x: (B, X, Y, C)."""
    B, M, Ny, I = x.shape
    O = lp["w_lin"].shape[1]

    # W part (residual pointwise linear)
    res = pallas_linear(x.reshape(-1, I), lp["w_lin"], lp["b_lin"]).reshape(B, M, Ny, O)

    # TODO(synk): rfft/irfft have no clean Pallas TPU equivalent; kept in jnp.fft.
    # Truncated forward FFTs along each spatial dim.
    xky = jnp.fft.rfft(x, axis=2, norm="ortho")[:, :, :modes, :]   # (B, M, modes, I) c64
    xky = jnp.moveaxis(xky, 2, 0).reshape(modes, B * M, I)         # rows = (b, x)
    xkx = jnp.fft.rfft(x, axis=1, norm="ortho")[:, :modes, :, :]   # (B, modes, Ny, I)
    xkx = jnp.moveaxis(xkx, 1, 0).reshape(modes, B * Ny, I)        # rows = (b, y)

    Ry, Rx = B * M, B * Ny
    R = -(-max(Ry, Rx) // 8) * 8    # pad rows to a common, sublane-aligned count

    def pack_x(xk):                 # (modes, r, I) complex -> (modes, R, 2I) real
        xp = jnp.concatenate([jnp.real(xk), jnp.imag(xk)], axis=-1)
        r = xp.shape[1]
        return jnp.pad(xp, ((0, 0), (0, R - r), (0, 0))) if r < R else xp

    def pack_w(wr, wi):             # (modes, I, O) x2 -> (modes, 2I, 2O)
        return jnp.concatenate(
            [jnp.concatenate([wr, wi], axis=-1),
             jnp.concatenate([-wi, wr], axis=-1)], axis=1)

    x_pack = jnp.concatenate([pack_x(xky), pack_x(xkx)], axis=0)          # (2m, R, 2I)
    w_pack = jnp.concatenate([pack_w(lp["wy_re"], lp["wy_im"]),
                              pack_w(lp["wx_re"], lp["wx_im"])], axis=0)  # (2m, 2I, 2O)

    y = pallas_spectral_mul(x_pack, w_pack, modes)                        # (R, 2m*2O)
    y = y.reshape(R, 2, modes, 2, O)                                      # (R, dir, m, re/im, O)
    yk = (y[..., 0, :] + 1j * y[..., 1, :]).astype(jnp.complex64)         # (R, 2, modes, O)

    # --- dimension Y inverse transform ---
    yk_y = yk[:Ry, 0].reshape(B, M, modes, O)
    out_ft = jnp.zeros((B, M, Ny // 2 + 1, O), jnp.complex64).at[:, :, :modes, :].set(yk_y)
    xy = jnp.fft.irfft(out_ft, n=Ny, axis=2, norm="ortho")

    # --- dimension X inverse transform ---
    yk_x = jnp.transpose(yk[:Rx, 1].reshape(B, Ny, modes, O), (0, 2, 1, 3))
    out_ft = jnp.zeros((B, M // 2 + 1, Ny, O), jnp.complex64).at[:, :modes, :, :].set(yk_x)
    xx = jnp.fft.irfft(out_ft, n=M, axis=1, norm="ortho")

    k = xx + xy
    return jax.nn.relu(k + res) if conv_residual else jax.nn.relu(k)


def ffno_forward(x, params, *, modes, residual=False, conv_residual=True):
    """x: (B, X, Y, input_dim) -> (B, X, Y, output_dim)."""
    B, X, Y, C = x.shape

    # get_grid + concat (matches torch.cat((x, grid), dim=-1))
    gridx = jnp.broadcast_to(
        jnp.linspace(0.0, 1.0, X, dtype=jnp.float32).reshape(1, X, 1, 1), (B, X, Y, 1))
    gridy = jnp.broadcast_to(
        jnp.linspace(0.0, 1.0, Y, dtype=jnp.float32).reshape(1, 1, Y, 1), (B, X, Y, 1))
    x = jnp.concatenate([x, gridx, gridy], axis=-1)               # (B, X, Y, C+2)

    # in_proj
    h = pallas_linear(x.reshape(-1, C + 2), params["in_w"], params["in_b"])
    h = h.reshape(B, X, Y, -1)

    # spectral layers
    for lp in params["layers"]:
        layer_out = spectral_conv2d(h, lp, modes, conv_residual=conv_residual)
        h = layer_out + h if residual else layer_out

    # fused feedforward (Linear + ReLU) + final projection (single Pallas launch)
    out = pallas_ff_final(h.reshape(-1, h.shape[-1]),
                          params["ff_w"], params["ff_b"],
                          params["fin_w"], params["fin_b"])
    return out.reshape(B, X, Y, -1)


# --------------------------------------------------------------------------
# Deterministic parameter init (synthetic; mirrors the module's shapes)
# --------------------------------------------------------------------------
def init_params(key, *, input_dim, width, modes, n_layers, output_dim):
    def linear_init(k, fan_in, fan_out):
        kw, kb = jax.random.split(k)
        bound = 1.0 / jnp.sqrt(fan_in)
        w = jax.random.uniform(kw, (fan_in, fan_out), jnp.float32, -bound, bound)
        b = jax.random.uniform(kb, (fan_out,), jnp.float32, -bound, bound)
        return w, b

    keys = jax.random.split(key, 3 + n_layers)
    params = {}
    params["in_w"], params["in_b"] = linear_init(keys[0], input_dim + 2, width)
    params["ff_w"], params["ff_b"] = linear_init(keys[1], width, 128)
    params["fin_w"], params["fin_b"] = linear_init(keys[2], 128, output_dim)

    layers = []
    std = jnp.sqrt(2.0 / (width + width))  # xavier-normal-like scale
    for li in range(n_layers):
        ks = jax.random.split(keys[3 + li], 6)
        w_lin, b_lin = linear_init(ks[0], width, width)
        layers.append({
            "w_lin": w_lin, "b_lin": b_lin,
            # fourier_weight[0] (dim Y) and [1] (dim X): (in, out, modes, 2) in torch;
            # stored here as (modes, in, out) real/imag for per-mode matmuls.
            "wy_re": std * jax.random.normal(ks[1], (modes, width, width), jnp.float32),
            "wy_im": std * jax.random.normal(ks[2], (modes, width, width), jnp.float32),
            "wx_re": std * jax.random.normal(ks[3], (modes, width, width), jnp.float32),
            "wx_im": std * jax.random.normal(ks[4], (modes, width, width), jnp.float32),
        })
    params["layers"] = layers
    return params


# --------------------------------------------------------------------------
if __name__ == "__main__":
    MODES = 8
    WIDTH = 32
    INPUT_DIM = 12
    N_LAYERS = 4
    OUTPUT_DIM = 1
    B, X, Y = 2, 16, 16

    key = jax.random.PRNGKey(0)
    k_x, k_p = jax.random.split(key)
    x = jax.random.normal(k_x, (B, X, Y, INPUT_DIM), jnp.float32)
    params = init_params(k_p, input_dim=INPUT_DIM, width=WIDTH, modes=MODES,
                         n_layers=N_LAYERS, output_dim=OUTPUT_DIM)

    fwd = jax.jit(partial(ffno_forward, modes=MODES, residual=False, conv_residual=True))
    out = fwd(x, params)
    jax.block_until_ready(out)

    assert out.shape == (B, X, Y, OUTPUT_DIM), out.shape
    assert out.dtype == jnp.float32
    print("KERNEL_OK")
</pallas_src>

<mosaic_0001>
module attributes {stable_mosaic.version = 11 : i64} {
  func.func @_linear_kernel(%arg0: i32, %arg1: memref<256x14xf32, #tpu.memory_space<vmem>>, %arg2: memref<14x32xf32, #tpu.memory_space<vmem>>, %arg3: memref<1x32xf32, #tpu.memory_space<vmem>>, %arg4: memref<256x32xf32, #tpu.memory_space<vmem>>) attributes {dimension_semantics = [#tpu.dimension_semantics<parallel>], iteration_bounds = array<i64: 2>, scalar_prefetch = 0 : i64, scratch_operands = 0 : i64, tpu.core_type = #tpu.core_type<tc>, window_params = [{transform_indices = @transform_0, window_bounds = array<i64: 256, 14>}, {pipeline_mode = #tpu.pipeline_mode<synchronous>, transform_indices = @transform_1, window_bounds = array<i64: 14, 32>}, {pipeline_mode = #tpu.pipeline_mode<synchronous>, transform_indices = @transform_2, window_bounds = array<i64: 1, 32>}, {transform_indices = @transform_3, window_bounds = array<i64: 256, 32>}]} {
    %c0 = arith.constant 0 : index
    %c0_0 = arith.constant 0 : index
    %0 = vector.load %arg1[%c0, %c0_0] : memref<256x14xf32, #tpu.memory_space<vmem>>, vector<256x14xf32>
    %c0_1 = arith.constant 0 : index
    %c0_2 = arith.constant 0 : index
    %1 = vector.load %arg2[%c0_1, %c0_2] : memref<14x32xf32, #tpu.memory_space<vmem>>, vector<14x32xf32>
    %cst = arith.constant dense<0.000000e+00> : vector<256x32xf32>
    %2 = tpu.matmul %0, %1, %cst {dimension_numbers = #tpu.dot_dimension_numbers<[1], [0], [0], [1], [0, 0, 1, 1], [], []>} : vector<256x14xf32>, vector<14x32xf32>, vector<256x32xf32> -> vector<256x32xf32>
    %c0_3 = arith.constant 0 : index
    %c0_4 = arith.constant 0 : index
    %3 = vector.load %arg3[%c0_3, %c0_4] : memref<1x32xf32, #tpu.memory_space<vmem>>, vector<1x32xf32>
    %4 = vector.broadcast %3 : vector<1x32xf32> to vector<256x32xf32>
    %5 = arith.addf %2, %4 : vector<256x32xf32>
    %c0_5 = arith.constant 0 : index
    %c0_6 = arith.constant 0 : index
    %6 = vector.load %arg4[%c0_5, %c0_6] : memref<256x32xf32, #tpu.memory_space<vmem>>, vector<256x32xf32>
    tpu.vector_store %arg4[%c0_5, %c0_6], %5 {strides = array<i32>} : memref<256x32xf32, #tpu.memory_space<vmem>>, vector<256x32xf32>,
    return
  }
  func.func @transform_0(%arg0: i32) -> (i32, i32) {
    %c0_i32 = arith.constant 0 : i32
    %c0_i32_0 = arith.constant 0 : i32
    return %arg0, %c0_i32 : i32, i32
  }
  func.func @transform_1(%arg0: i32) -> (i32, i32) {
    %c0_i32 = arith.constant 0 : i32
    %c0_i32_0 = arith.constant 0 : i32
    %c0_i32_1 = arith.constant 0 : i32
    return %c0_i32, %c0_i32_0 : i32, i32
  }
  func.func @transform_2(%arg0: i32) -> (i32, i32) {
    %c0_i32 = arith.constant 0 : i32
    %c0_i32_0 = arith.constant 0 : i32
    %c0_i32_1 = arith.constant 0 : i32
    return %c0_i32, %c0_i32_0 : i32, i32
  }
  func.func @transform_3(%arg0: i32) -> (i32, i32) {
    %c0_i32 = arith.constant 0 : i32
    %c0_i32_0 = arith.constant 0 : i32
    return %arg0, %c0_i32 : i32, i32
  }
}

module attributes {stable_mosaic.version = 11 : i64} {
  func.func @_spectral_kernel(%arg0: i32, %arg1: memref<8x32x64xf32, #tpu.memory_space<vmem>>, %arg2: memref<8x64x64xf32, #tpu.memory_space<vmem>>, %arg3: memref<32x512xf32, #tpu.memory_space<vmem>>) attributes {dimension_semantics = [#tpu.dimension_semantics<parallel>], iteration_bounds = array<i64: 2>, scalar_prefetch = 0 : i64, scratch_operands = 0 : i64, tpu.core_type = #tpu.core_type<tc>, window_params = [{transform_indices = @transform_0, window_bounds = array<i64: 8, 32, 64>}, {transform_indices = @transform_1, window_bounds = array<i64: 8, 64, 64>}, {transform_indices = @transform_2, window_bounds = array<i64: 32, 512>}]} {
    %c0 = arith.constant 0 : index
    %c0_0 = arith.constant 0 : index
    %c0_1 = arith.constant 0 : index
    %0 = vector.load %arg1[%c0, %c0_0, %c0_1] : memref<8x32x64xf32, #tpu.memory_space<vmem>>, vector<1x32x64xf32>
    %1 = vector.shape_cast %0 : vector<1x32x64xf32> to vector<32x64xf32>
    %c0_2 = arith.constant 0 : index
    %c0_3 = arith.constant 0 : index
    %c0_4 = arith.constant 0 : index
    %2 = vector.load %arg2[%c0_2, %c0_3, %c0_4] : memref<8x64x64xf32, #tpu.memory_space<vmem>>, vector<1x64x64xf32>
    %3 = vector.shape_cast %2 : vector<1x64x64xf32> to vector<64x64xf32>
    %cst = arith.constant dense<0.000000e+00> : vector<32x64xf32>
    %4 = tpu.matmul %1, %3, %cst {dimension_numbers = #tpu.dot_dimension_numbers<[1], [0], [0], [1], [0, 0, 1, 1], [], []>} : vector<32x64xf32>, vector<64x64xf32>, vector<32x64xf32> -> vector<32x64xf32>
    %c1 = arith.constant 1 : index
    %c0_5 = arith.constant 0 : index
    %c0_6 = arith.constant 0 : index
    %5 = vector.load %arg1[%c1, %c0_5, %c0_6] : memref<8x32x64xf32, #tpu.memory_space<vmem>>, vector<1x32x64xf32>
    %6 = vector.shape_cast %5 : vector<1x32x64xf32> to vector<32x64xf32>
    %c1_7 = arith.constant 1 : index
    %c0_8 = arith.constant 0 : index
    %c0_9 = arith.constant 0 : index
    %7 = vector.load %arg2[%c1_7, %c0_8, %c0_9] : memref<8x64x64xf32, #tpu.memory_space<vmem>>, vector<1x64x64xf32>
    %8 = vector.shape_cast %7 : vector<1x64x64xf32> to vector<64x64xf32>
    %cst_10 = arith.constant dense<0.000000e+00> : vector<32x64xf32>
    %9 = tpu.matmul %6, %8, %cst_10 {dimension_numbers = #tpu.dot_dimension_numbers<[1], [0], [0], [1], [0, 0, 1, 1], [], []>} : vector<32x64xf32>, vector<64x64xf32>, vector<32x64xf32> -> vector<32x64xf32>
    %c2 = arith.constant 2 : index
    %c0_11 = arith.constant 0 : index
    %c0_12 = arith.constant 0 : index
    %10 = vector.load %arg1[%c2, %c0_11, %c0_12] : memref<8x32x64xf32, #tpu.memory_space<vmem>>, vector<1x32x64xf32>
    %11 = vector.shape_cast %10 : vector<1x32x64xf32> to vector<32x64xf32>
    %c2_13 = arith.constant 2 : index
    %c0_14 = arith.constant 0 : index
    %c0_15 = arith.constant 0 : index
    %12 = vector.load %arg2[%c2_13, %c0_14, %c0_15] : memref<8x64x64xf32, #tpu.memory_space<vmem>>, vector<1x64x64xf32>
    %13 = vector.shape_cast %12 : vector<1x64x64xf32> to vector<64x64xf32>
    %cst_16 = arith.constant dense<0.000000e+00> : vector<32x64xf32>
    %14 = tpu.matmul %11, %13, %cst_16 {dimension_numbers = #tpu.dot_dimension_numbers<[1], [0], [0], [1], [0, 0, 1, 1], [], []>} : vector<32x64xf32>, vector<64x64xf32>, vector<32x64xf32> -> vector<32x64xf32>
    %c3 = arith.constant 3 : index
    %c0_17 = arith.constant 0 : index
    %c0_18 = arith.constant 0 : index
    %15 = vector.load %arg1[%c3, %c0_17, %c0_18] : memref<8x32x64xf32, #tpu.memory_space<vmem>>, vector<1x32x64xf32>
    %16 = vector.shape_cast %15 : vector<1x32x64xf32> to vector<32x64xf32>
    %c3_19 = arith.constant 3 : index
    %c0_20 = arith.constant 0 : index
    %c0_21 = arith.constant 0 : index
    %17 = vector.load %arg2[%c3_19, %c0_20, %c0_21] : memref<8x64x64xf32, #tpu.memory_space<vmem>>, vector<1x64x64xf32>
    %18 = vector.shape_cast %17 : vector<1x64x64xf32> to vector<64x64xf32>
    %cst_22 = arith.constant dense<0.000000e+00> : vector<32x64xf32>
    %19 = tpu.matmul %16, %18, %cst_22 {dimension_numbers = #tpu.dot_dimension_numbers<[1], [0], [0], [1], [0, 0, 1, 1], [], []>} : vector<32x64xf32>, vector<64x64xf32>, vector<32x64xf32> -> vector<32x64xf32>
    %c4 = arith.constant 4 : index
    %c0_23 = arith.constant 0 : index
    %c0_24 = arith.constant 0 : index
    %20 = vector.load %arg1[%c4, %c0_23, %c0_24] : memref<8x32x64xf32, #tpu.memory_space<vmem>>, vector<1x32x64xf32>
    %21 = vector.shape_cast %20 : vector<1x32x64xf32> to vector<32x64xf32>
    %c4_25 = arith.constant 4 : index
    %c0_26 = arith.constant 0 : index
    %c0_27 = arith.constant 0 : index
    %22 = vector.load %arg2[%c4_25, %c0_26, %c0_27] : memref<8x64x64xf32, #tpu.memory_space<vmem>>, vector<1x64x64xf32>
    %23 = vector.shape_cast %22 : vector<1x64x64xf32> to vector<64x64xf32>
    %cst_28 = arith.constant dense<0.000000e+00> : vector<32x64xf32>
    %24 = tpu.matmul %21, %23, %cst_28 {dimension_numbers = #tpu.dot_dimension_numbers<[1], [0], [0], [1], [0, 0, 1, 1], [], []>} : vector<32x64xf32>, vector<64x64xf32>, vector<32x64xf32> -> vector<32x64xf32>
    %c5 = arith.constant 5 : index
    %c0_29 = arith.constant 0 : index
    %c0_30 = arith.constant 0 : index
    %25 = vector.load %arg1[%c5, %c0_29, %c0_30] : memref<8x32x64xf32, #tpu.memory_space<vmem>>, vector<1x32x64xf32>
    %26 = vector.shape_cast %25 : vector<1x32x64xf32> to vector<32x64xf32>
    %c5_31 = arith.constant 5 : index
    %c0_32 = arith.constant 0 : index
    %c0_33 = arith.constant 0 : index
    %27 = vector.load %arg2[%c5_31, %c0_32, %c0_33] : memref<8x64x64xf32, #tpu.memory_space<vmem>>, vector<1x64x64xf32>
    %28 = vector.shape_cast %27 : vector<1x64x64xf32> to vector<64x64xf32>
    %cst_34 = arith.constant dense<0.000000e+00> : vector<32x64xf32>
    %29 = tpu.matmul %26, %28, %cst_34 {dimension_numbers = #tpu.dot_dimension_numbers<[1], [0], [0], [1], [0, 0, 1, 1], [], []>} : vector<32x64xf32>, vector<64x64xf32>, vector<32x64xf32> -> vector<32x64xf32>
    %c6 = arith.constant 6 : index
    %c0_35 = arith.constant 0 : index
    %c0_36 = arith.constant 0 : index
    %30 = vector.load %arg1[%c6, %c0_35, %c0_36] : memref<8x32x64xf32, #tpu.memory_space<vmem>>, vector<1x32x64xf32>
    %31 = vector.shape_cast %30 : vector<1x32x64xf32> to vector<32x64xf32>
    %c6_37 = arith.constant 6 : index
    %c0_38 = arith.constant 0 : index
    %c0_39 = arith.constant 0 : index
    %32 = vector.load %arg2[%c6_37, %c0_38, %c0_39] : memref<8x64x64xf32, #tpu.memory_space<vmem>>, vector<1x64x64xf32>
    %33 = vector.shape_cast %32 : vector<1x64x64xf32> to vector<64x64xf32>
    %cst_40 = arith.constant dense<0.000000e+00> : vector<32x64xf32>
    %34 = tpu.matmul %31, %33, %cst_40 {dimension_numbers = #tpu.dot_dimension_numbers<[1], [0], [0], [1], [0, 0, 1, 1], [], []>} : vector<32x64xf32>, vector<64x64xf32>, vector<32x64xf32> -> vector<32x64xf32>
    %c7 = arith.constant 7 : index
    %c0_41 = arith.constant 0 : index
    %c0_42 = arith.constant 0 : index
    %35 = vector.load %arg1[%c7, %c0_41, %c0_42] : memref<8x32x64xf32, #tpu.memory_space<vmem>>, vector<1x32x64xf32>
    %36 = vector.shape_cast %35 : vector<1x32x64xf32> to vector<32x64xf32>
    %c7_43 = arith.constant 7 : index
    %c0_44 = arith.constant 0 : index
    %c0_45 = arith.constant 0 : index
    %37 = vector.load %arg2[%c7_43, %c0_44, %c0_45] : memref<8x64x64xf32, #tpu.memory_space<vmem>>, vector<1x64x64xf32>
    %38 = vector.shape_cast %37 : vector<1x64x64xf32> to vector<64x64xf32>
    %cst_46 = arith.constant dense<0.000000e+00> : vector<32x64xf32>
    %39 = tpu.matmul %36, %38, %cst_46 {dimension_numbers = #tpu.dot_dimension_numbers<[1], [0], [0], [1], [0, 0, 1, 1], [], []>} : vector<32x64xf32>, vector<64x64xf32>, vector<32x64xf32> -> vector<32x64xf32>
    %40 = tpu.concatenate %4, %9, %14, %19, %24, %29, %34, %39 in 1 : vector<32x64xf32>, vector<32x64xf32>, vector<32x64xf32>, vector<32x64xf32>, vector<32x64xf32>, vector<32x64xf32>, vector<32x64xf32>, vector<32x64xf32> -> vector<32x512xf32>
    %c0_47 = arith.constant 0 : index
    %c0_48 = arith.constant 0 : index
    %41 = vector.load %arg3[%c0_47, %c0_48] : memref<32x512xf32, #tpu.memory_space<vmem>>, vector<32x512xf32>
    tpu.vector_store %arg3[%c0_47, %c0_48], %40 {strides = array<i32>} : memref<32x512xf32, #tpu.memory_space<vmem>>, vector<32x512xf32>,
    return
  }
  func.func @transform_0(%arg0: i32) -> (i32, i32, i32) {
    %c0_i32 = arith.constant 0 : i32
    %c0_i32_0 = arith.constant 0 : i32
    %c0_i32_1 = arith.constant 0 : i32
    return %arg0, %c0_i32, %c0_i32_0 : i32, i32, i32
  }
  func.func @transform_1(%arg0: i32) -> (i32, i32, i32) {
    %c0_i32 = arith.constant 0 : i32
    %c0_i32_0 = arith.constant 0 : i32
    %c0_i32_1 = arith.constant 0 : i32
    return %arg0, %c0_i32, %c0_i32_0 : i32, i32, i32
  }
  func.func @transform_2(%arg0: i32) -> (i32, i32) {
    %c0_i32 = arith.constant 0 : i32
    %c0_i32_0 = arith.constant 0 : i32
    return %c0_i32, %arg0 : i32, i32
  }
}

module attributes {stable_mosaic.version = 11 : i64} {
  func.func @_linear_kernel(%arg0: i32, %arg1: memref<256x32xf32, #tpu.memory_space<vmem>>, %arg2: memref<32x32xf32, #tpu.memory_space<vmem>>, %arg3: memref<1x32xf32, #tpu.memory_space<vmem>>, %arg4: memref<256x32xf32, #tpu.memory_space<vmem>>) attributes {dimension_semantics = [#tpu.dimension_semantics<parallel>], iteration_bounds = array<i64: 2>, scalar_prefetch = 0 : i64, scratch_operands = 0 : i64, tpu.core_type = #tpu.core_type<tc>, window_params = [{transform_indices = @transform_0, window_bounds = array<i64: 256, 32>}, {pipeline_mode = #tpu.pipeline_mode<synchronous>, transform_indices = @transform_1, window_bounds = array<i64: 32, 32>}, {pipeline_mode = #tpu.pipeline_mode<synchronous>, transform_indices = @transform_2, window_bounds = array<i64: 1, 32>}, {transform_indices = @transform_3, window_bounds = array<i64: 256, 32>}]} {
    %c0 = arith.constant 0 : index
    %c0_0 = arith.constant 0 : index
    %0 = vector.load %arg1[%c0, %c0_0] : memref<256x32xf32, #tpu.memory_space<vmem>>, vector<256x32xf32>
    %c0_1 = arith.constant 0 : index
    %c0_2 = arith.constant 0 : index
    %1 = vector.load %arg2[%c0_1, %c0_2] : memref<32x32xf32, #tpu.memory_space<vmem>>, vector<32x32xf32>
    %cst = arith.constant dense<0.000000e+00> : vector<256x32xf32>
    %2 = tpu.matmul %0, %1, %cst {dimension_numbers = #tpu.dot_dimension_numbers<[1], [0], [0], [1], [0, 0, 1, 1], [], []>} : vector<256x32xf32>, vector<32x32xf32>, vector<256x32xf32> -> vector<256x32xf32>
    %c0_3 = arith.constant 0 : index
    %c0_4 = arith.constant 0 : index
    %3 = vector.load %arg3[%c0_3, %c0_4] : memref<1x32xf32, #tpu.memory_space<vmem>>, vector<1x32xf32>
    %4 = vector.broadcast %3 : vector<1x32xf32> to vector<256x32xf32>
    %5 = arith.addf %2, %4 : vector<256x32xf32>
    %c0_5 = arith.constant 0 : index
    %c0_6 = arith.constant 0 : index
    %6 = vector.load %arg4[%c0_5, %c0_6] : memref<256x32xf32, #tpu.memory_space<vmem>>, vector<256x32xf32>
    tpu.vector_store %arg4[%c0_5, %c0_6], %5 {strides = array<i32>} : memref<256x32xf32, #tpu.memory_space<vmem>>, vector<256x32xf32>,
    return
  }
  func.func @transform_0(%arg0: i32) -> (i32, i32) {
    %c0_i32 = arith.constant 0 : i32
    %c0_i32_0 = arith.constant 0 : i32
    return %arg0, %c0_i32 : i32, i32
  }
  func.func @transform_1(%arg0: i32) -> (i32, i32) {
    %c0_i32 = arith.constant 0 : i32
    %c0_i32_0 = arith.constant 0 : i32
    %c0_i32_1 = arith.constant 0 : i32
    return %c0_i32, %c0_i32_0 : i32, i32
  }
  func.func @transform_2(%arg0: i32) -> (i32, i32) {
    %c0_i32 = arith.constant 0 : i32
    %c0_i32_0 = arith.constant 0 : i32
    %c0_i32_1 = arith.constant 0 : i32
    return %c0_i32, %c0_i32_0 : i32, i32
  }
  func.func @transform_3(%arg0: i32) -> (i32, i32) {
    %c0_i32 = arith.constant 0 : i32
    %c0_i32_0 = arith.constant 0 : i32
    return %arg0, %c0_i32 : i32, i32
  }
}

module attributes {stable_mosaic.version = 11 : i64} {
  func.func @_ff_final_kernel(%arg0: i32, %arg1: memref<256x32xf32, #tpu.memory_space<vmem>>, %arg2: memref<32x128xf32, #tpu.memory_space<vmem>>, %arg3: memref<1x128xf32, #tpu.memory_space<vmem>>, %arg4: memref<128x1xf32, #tpu.memory_space<vmem>>, %arg5: memref<1x1xf32, #tpu.memory_space<vmem>>, %arg6: memref<256x1xf32, #tpu.memory_space<vmem>>) attributes {dimension_semantics = [#tpu.dimension_semantics<parallel>], iteration_bounds = array<i64: 2>, scalar_prefetch = 0 : i64, scratch_operands = 0 : i64, tpu.core_type = #tpu.core_type<tc>, window_params = [{transform_indices = @transform_0, window_bounds = array<i64: 256, 32>}, {pipeline_mode = #tpu.pipeline_mode<synchronous>, transform_indices = @transform_1, window_bounds = array<i64: 32, 128>}, {pipeline_mode = #tpu.pipeline_mode<synchronous>, transform_indices = @transform_2, window_bounds = array<i64: 1, 128>}, {pipeline_mode = #tpu.pipeline_mode<synchronous>, transform_indices = @transform_3, window_bounds = array<i64: 128, 1>}, {pipeline_mode = #tpu.pipeline_mode<synchronous>, transform_indices = @transform_4, window_bounds = array<i64: 1, 1>}, {transform_indices = @transform_5, window_bounds = array<i64: 256, 1>}]} {
    %c0 = arith.constant 0 : index
    %c0_0 = arith.constant 0 : index
    %0 = vector.load %arg1[%c0, %c0_0] : memref<256x32xf32, #tpu.memory_space<vmem>>, vector<256x32xf32>
    %c0_1 = arith.constant 0 : index
    %c0_2 = arith.constant 0 : index
    %1 = vector.load %arg2[%c0_1, %c0_2] : memref<32x128xf32, #tpu.memory_space<vmem>>, vector<32x128xf32>
    %cst = arith.constant dense<0.000000e+00> : vector<256x128xf32>
    %2 = tpu.matmul %0, %1, %cst {dimension_numbers = #tpu.dot_dimension_numbers<[1], [0], [0], [1], [0, 0, 1, 1], [], []>} : vector<256x32xf32>, vector<32x128xf32>, vector<256x128xf32> -> vector<256x128xf32>
    %c0_3 = arith.constant 0 : index
    %c0_4 = arith.constant 0 : index
    %3 = vector.load %arg3[%c0_3, %c0_4] : memref<1x128xf32, #tpu.memory_space<vmem>>, vector<1x128xf32>
    %4 = vector.broadcast %3 : vector<1x128xf32> to vector<256x128xf32>
    %5 = arith.addf %2, %4 : vector<256x128xf32>
    %cst_5 = arith.constant 0.000000e+00 : f32
    %6 = vector.broadcast %cst_5 : f32 to vector<256x128xf32>
    %7 = arith.maximumf %5, %6 : vector<256x128xf32>
    %c0_6 = arith.constant 0 : index
    %c0_7 = arith.constant 0 : index
    %8 = vector.load %arg4[%c0_6, %c0_7] : memref<128x1xf32, #tpu.memory_space<vmem>>, vector<128x1xf32>
    %cst_8 = arith.constant dense<0.000000e+00> : vector<256x1xf32>
    %9 = tpu.matmul %7, %8, %cst_8 {dimension_numbers = #tpu.dot_dimension_numbers<[1], [0], [0], [1], [0, 0, 1, 1], [], []>} : vector<256x128xf32>, vector<128x1xf32>, vector<256x1xf32> -> vector<256x1xf32>
    %c0_9 = arith.constant 0 : index
    %c0_10 = arith.constant 0 : index
    %10 = vector.load %arg5[%c0_9, %c0_10] : memref<1x1xf32, #tpu.memory_space<vmem>>, vector<1x1xf32>
    %11 = vector.broadcast %10 : vector<1x1xf32> to vector<256x1xf32>
    %12 = arith.addf %9, %11 : vector<256x1xf32>
    %c0_11 = arith.constant 0 : index
    %c0_12 = arith.constant 0 : index
    %13 = vector.load %arg6[%c0_11, %c0_12] : memref<256x1xf32, #tpu.memory_space<vmem>>, vector<256x1xf32>
    tpu.vector_store %arg6[%c0_11, %c0_12], %12 {strides = array<i32>} : memref<256x1xf32, #tpu.memory_space<vmem>>, vector<256x1xf32>,
    return
  }
  func.func @transform_0(%arg0: i32) -> (i32, i32) {
    %c0_i32 = arith.constant 0 : i32
    %c0_i32_0 = arith.constant 0 : i32
    return %arg0, %c0_i32 : i32, i32
  }
  func.func @transform_1(%arg0: i32) -> (i32, i32) {
    %c0_i32 = arith.constant 0 : i32
    %c0_i32_0 = arith.constant 0 : i32
    %c0_i32_1 = arith.constant 0 : i32
    return %c0_i32, %c0_i32_0 : i32, i32
  }
  func.func @transform_2(%arg0: i32) -> (i32, i32) {
    %c0_i32 = arith.constant 0 : i32
    %c0_i32_0 = arith.constant 0 : i32
    %c0_i32_1 = arith.constant 0 : i32
    return %c0_i32, %c0_i32_0 : i32, i32
  }
  func.func @transform_3(%arg0: i32) -> (i32, i32) {
    %c0_i32 = arith.constant 0 : i32
    %c0_i32_0 = arith.constant 0 : i32
    %c0_i32_1 = arith.constant 0 : i32
    return %c0_i32, %c0_i32_0 : i32, i32
  }
  func.func @transform_4(%arg0: i32) -> (i32, i32) {
    %c0_i32 = arith.constant 0 : i32
    %c0_i32_0 = arith.constant 0 : i32
    %c0_i32_1 = arith.constant 0 : i32
    return %c0_i32, %c0_i32_0 : i32, i32
  }
  func.func @transform_5(%arg0: i32) -> (i32, i32) {
    %c0_i32 = arith.constant 0 : i32
    %c0_i32_0 = arith.constant 0 : i32
    return %arg0, %c0_i32 : i32, i32
  }
}

</mosaic_0001>

<bundles_post_ra>
// kernel: ffno_forward.10
= control target key start
LH: loop header
LB: loop body
LE: loop exit
PB: predicated region body
PF: predicated region fallthrough
CT: control target
= control target key end

     0   :  { %s807_s12 = smov 0   ;;  %s1006_s0 = inlined_call_operand.vmem [shape: f32[512,14], index: 0, kind: input, shape index: {}]   ;;  %s1007_s1 = inlined_call_operand.vmem [shape: f32[14,32], index: 1, kind: input, shape index: {}]   ;;  %s1008_s2 = inlined_call_operand.vmem [shape: f32[1,32], index: 2, kind: input, shape index: {}]   ;;  %s1009_s3 = inlined_call_operand.vmem [shape: f32[512,32], index: 3, kind: output, shape index: {}]  }
   0x1 LB: > { %s630_s13 = sadd.s32 4294967295, %s784_s12   ;;  %p634_p0 = scmp.ge.s32.totalorder %s784_s12, 1  ;;  %s784_s12 = sphi %s807_s12, %s13_s12  }
   0x2   : > { %p138_p1 = scmp.lt.s32.totalorder %s784_s12, 3 }
   0x4   : > { %p139_p2 = pnand %p634_p0, %p138_p1 }
   0x5   : > { %v206_v0 = vld [vmem:[%s1007_s1] sm:$0xff] (!%p139_p2)  ;;  %v207_v1 = vld [vmem:[%s1007_s1 + $0x8] sm:$0x3f] (!%p139_p2)  ;;  %vm312_vm0 = vcmask (!%p139_p2), 1045504   ;;  %s635_s18 = sshll.u32 (!%p139_p2), %s630_s13, 5  ;;  %vm786_vm1 = vmmov (!%p139_p2), 1  }
   0x6   : > { %142 = sbr.rel (%p139_p2) target bundleno = 263 (0x107), region = 32  ;;  %v761_v2 = vpack.c.bf16 (!%p139_p2), %v207_v1, %v206_v0  ;;  %vm762_vm2 = vmpackc.low (!%p139_p2), %vm312_vm0, %vm786_vm1  ;;  %p163_p3 = scmp.lt.s32.totalorder (!%p139_p2), %s635_s18, 63  ;;  %vm215_vm3 = vcmask (!%p139_p2), 113664   ;;  %v898_v35 = vld [vmem:[%s1008_s2] ss:$0 sm:$0xff] (!%p139_p2)  ;;  %vm541_vm4 = vcmask (!%p139_p2), 261120  }
   0x8   : > { %763 = vmatprep.subr.msk.bf16.mxu0 (!%p139_p2), %vm762_vm2, %v761_v2  ;;  %767 = vmatprep.subr.msk.bf16.mxu1 (!%p139_p2), %vm762_vm2, %v761_v2 }
   0x9   : > { %766 = vmatpush3.bf16.msk.msra.mxu0 (!%p139_p2), %vm762_vm2, %v761_v2  ;;  %768 = vmatpush3.bf16.msk.msra.mxu1 (!%p139_p2), %vm762_vm2, %v761_v2 }
   0xd   : > { %s1011_s18 = smov (!%p163_p3, %s635_s18), 63 }
   0xe   : > { %s636_s19 = sshll.u32 %s1011_s18, 3 }
   0xf   : > { %s829_s22 = scalar_lea.vmem %s1006_s0, %s636_s19  ;;  %s905_s27 = scalar_lea.vmem %s1009_s3, %s636_s19 }
  0x10   : > { %v174_v3 = vld [vmem:[%s829_s22] sm:$0xff]  ;;  %v175_v5 = vld [vmem:[%s829_s22 + $0x8] sm:$0xff]  ;;  %v176_v7 = vld [vmem:[%s829_s22 + $0x10] sm:$0xff] }
  0x11   : > { %v190_v4 = vld [vmem:[%s829_s22 + $0x80] sm:$0xff]  ;;  %713 = vmatprep.mubr.msk.f32.mxu0 %vm215_vm3, %v174_v3  ;;  %v191_v6 = vld [vmem:[%s829_s22 + $0x88] sm:$0xff]  ;;  %v192_v8 = vld [vmem:[%s829_s22 + $0x90] sm:$0xff] }
  0x12   : > { %737 = vmatprep.mubr.msk.f32.mxu1 %vm215_vm3, %v190_v4  ;;  %714 = vmatmul.mubr.msk.f32.vlgmr.msra.gmra.mrb[0].mxu0 %vm215_vm3, %v175_v5  ;;  %v177_v9 = vld [vmem:[%s829_s22 + $0x18] sm:$0xff]  ;;  %v178_v11 = vld [vmem:[%s829_s22 + $0x20] sm:$0xff]  ;;  %v179_v13 = vld [vmem:[%s829_s22 + $0x28] sm:$0xff] }
  0x13   : > { %738 = vmatmul.mubr.msk.f32.vlgmr.msra.gmra.mrb[0].mxu1 %vm215_vm3, %v191_v6  ;;  %716 = vmatprep.mubr.msk.f32.mxu0 %vm215_vm3, %v176_v7  ;;  %v193_v10 = vld [vmem:[%s829_s22 + $0x98] sm:$0xff]  ;;  %v194_v12 = vld [vmem:[%s829_s22 + $0xa0] sm:$0xff]  ;;  %v195_v14 = vld [vmem:[%s829_s22 + $0xa8] sm:$0xff] }
  0x14   : > { %740 = vmatprep.mubr.msk.f32.mxu1 %vm215_vm3, %v192_v8  ;;  %v180_v15 = vld [vmem:[%s829_s22 + $0x30] sm:$0xff]  ;;  %v181_v17 = vld [vmem:[%s829_s22 + $0x38] sm:$0xff]  ;;  %v182_v19 = vld [vmem:[%s829_s22 + $0x40] sm:$0xff] }
  0x15   : > { %v196_v16 = vld [vmem:[%s829_s22 + $0xb0] sm:$0xff]  ;;  %v197_v18 = vld [vmem:[%s829_s22 + $0xb8] sm:$0xff]  ;;  %v198_v20 = vld [vmem:[%s829_s22 + $0xc0] sm:$0xff] }
  0x16   : > { %717 = vmatmul.mubr.msk.f32.gmra.mrb[2].mxu0 %vm215_vm3, %v177_v9  ;;  %v183_v21 = vld [vmem:[%s829_s22 + $0x48] sm:$0xff]  ;;  %v184_v23 = vld [vmem:[%s829_s22 + $0x50] sm:$0xff]  ;;  %v185_v25 = vld [vmem:[%s829_s22 + $0x58] sm:$0xff] }
  0x17   : > { %741 = vmatmul.mubr.msk.f32.gmra.mrb[2].mxu1 %vm215_vm3, %v193_v10  ;;  %719 = vmatprep.mubr.msk.f32.mxu0 %vm215_vm3, %v178_v11  ;;  %v199_v22 = vld [vmem:[%s829_s22 + $0xc8] sm:$0xff]  ;;  %v200_v24 = vld [vmem:[%s829_s22 + $0xd0] sm:$0xff]  ;;  %v201_v26 = vld [vmem:[%s829_s22 + $0xd8] sm:$0xff] }
  0x18   : > { %743 = vmatprep.mubr.msk.f32.mxu1 %vm215_vm3, %v194_v12  ;;  %v186_v27 = vld [vmem:[%s829_s22 + $0x60] sm:$0xff]  ;;  %v187_v29 = vld [vmem:[%s829_s22 + $0x68] sm:$0xff]  ;;  %v188_v31 = vld [vmem:[%s829_s22 + $0x70] sm:$0xff] }
  0x19   : > { %v202_v28 = vld [vmem:[%s829_s22 + $0xe0] sm:$0xff]  ;;  %v203_v30 = vld [vmem:[%s829_s22 + $0xe8] sm:$0xff]  ;;  %v204_v32 = vld [vmem:[%s829_s22 + $0xf0] sm:$0xff] }
  0x1a   : > { %720 = vmatmul.mubr.msk.f32.gmra.mrb[4].mxu0 %vm215_vm3, %v179_v13  ;;  %v189_v33 = vld [vmem:[%s829_s22 + $0x78] sm:$0xff] }
  0x1b   : > { %744 = vmatmul.mubr.msk.f32.gmra.mrb[4].mxu1 %vm215_vm3, %v195_v14  ;;  %722 = vmatprep.mubr.msk.f32.mxu0 %vm215_vm3, %v180_v15  ;;  %v205_v34 = vld [vmem:[%s829_s22 + $0xf8] sm:$0xff] }
  0x1c   : > { %746 = vmatprep.mubr.msk.f32.mxu1 %vm215_vm3, %v196_v16 }
  0x1e   : > { %723 = vmatmul.mubr.msk.f32.gmra.mrb[6].mxu0 %vm215_vm3, %v181_v17 }
  0x1f   : > { %747 = vmatmul.mubr.msk.f32.gmra.mrb[6].mxu1 %vm215_vm3, %v197_v18  ;;  %725 = vmatprep.mubr.msk.f32.mxu0 %vm215_vm3, %v182_v19 }
  0x20   : > { %749 = vmatprep.mubr.msk.f32.mxu1 %vm215_vm3, %v198_v20 }
  0x22   : > { %726 = vmatmul.mubr.msk.f32.gmra.mrb[8].mxu0 %vm215_vm3, %v183_v21 }
  0x23   : > { %750 = vmatmul.mubr.msk.f32.gmra.mrb[8].mxu1 %vm215_vm3, %v199_v22  ;;  %728 = vmatprep.mubr.msk.f32.mxu0 %vm215_vm3, %v184_v23 }
  0x24   : > { %752 = vmatprep.mubr.msk.f32.mxu1 %vm215_vm3, %v200_v24 }
  0x26   : > { %729 = vmatmul.mubr.msk.f32.gmra.mrb[10].mxu0 %vm215_vm3, %v185_v25 }
  0x27   : > { %753 = vmatmul.mubr.msk.f32.gmra.mrb[10].mxu1 %vm215_vm3, %v201_v26  ;;  %731 = vmatprep.mubr.msk.f32.mxu0 %vm215_vm3, %v186_v27 }
  0x28   : > { %755 = vmatprep.mubr.msk.f32.mxu1 %vm215_vm3, %v202_v28 }
  0x2a   : > { %732 = vmatmul.mubr.msk.f32.gmra.mrb[12].mxu0 %vm215_vm3, %v187_v29 }
  0x2b   : > { %756 = vmatmul.mubr.msk.f32.gmra.mrb[12].mxu1 %vm215_vm3, %v203_v30  ;;  %734 = vmatprep.mubr.msk.f32.mxu0 %vm215_vm3, %v188_v31 }
  0x2c   : > { %758 = vmatprep.mubr.msk.f32.mxu1 %vm215_vm3, %v204_v32 }
  0x2e   : > { %735 = vmatmul.mubr.msk.f32.gmra.mrb[14].mxu0 %vm215_vm3, %v189_v33 }
  0x2f   : > { %759 = vmatmul.mubr.msk.f32.gmra.mrb[14].mxu1 %vm215_vm3, %v205_v34 }
  0xe5   : > { %v715_v36 = vpop.f32.mrb[0].mxu0 }
  0xe6   : > { %v739_v37 = vpop.f32.mrb[0].mxu1  ;;  %v388_v38 = vadd.f32 %v715_v36, %v898_v35  ;;  %v382_v40 = vpop.f32.mrb[1].mxu0 }
  0xe7   : > { %v468_v39 = vadd.f32 %v739_v37, %v898_v35  ;;  %v462_v41 = vpop.f32.mrb[1].mxu1  ;;  %v383_v42 = vadd.f32 %v898_v35, %v382_v40 }
  0xe8   : > { %v463_v43 = vadd.f32 %v898_v35, %v462_v41  ;;  %543 = vst.msk [vmem:[%s905_s27 + $0x8] sm:$0xff] %vm541_vm4, %v388_v38 }
  0xe9   : > { %559 = vst.msk [vmem:[%s905_s27 + $0x88] sm:$0xff] %vm541_vm4, %v468_v39  ;;  %542 = vst.msk [vmem:[%s905_s27] sm:$0xff] %vm541_vm4, %v383_v42  ;;  %v718_v44 = vpop.f32.mrb[2].mxu0 }
  0xea   : > { %558 = vst.msk [vmem:[%s905_s27 + $0x80] sm:$0xff] %vm541_vm4, %v463_v43  ;;  %v742_v45 = vpop.f32.mrb[2].mxu1  ;;  %v398_v46 = vadd.f32 %v718_v44, %v898_v35  ;;  %v392_v48 = vpop.f32.mrb[3].mxu0 }
  0xeb   : > { %v478_v47 = vadd.f32 %v742_v45, %v898_v35  ;;  %v472_v49 = vpop.f32.mrb[3].mxu1  ;;  %v393_v50 = vadd.f32 %v898_v35, %v392_v48 }
  0xec   : > { %v473_v51 = vadd.f32 %v898_v35, %v472_v49  ;;  %545 = vst.msk [vmem:[%s905_s27 + $0x18] sm:$0xff] %vm541_vm4, %v398_v46 }
  0xed   : > { %561 = vst.msk [vmem:[%s905_s27 + $0x98] sm:$0xff] %vm541_vm4, %v478_v47  ;;  %544 = vst.msk [vmem:[%s905_s27 + $0x10] sm:$0xff] %vm541_vm4, %v393_v50  ;;  %v721_v52 = vpop.f32.mrb[4].mxu0 }
  0xee   : > { %560 = vst.msk [vmem:[%s905_s27 + $0x90] sm:$0xff] %vm541_vm4, %v473_v51  ;;  %v745_v53 = vpop.f32.mrb[4].mxu1  ;;  %v408_v54 = vadd.f32 %v721_v52, %v898_v35  ;;  %v402_v56 = vpop.f32.mrb[5].mxu0 }
  0xef   : > { %v488_v55 = vadd.f32 %v745_v53, %v898_v35  ;;  %v482_v57 = vpop.f32.mrb[5].mxu1  ;;  %v403_v58 = vadd.f32 %v898_v35, %v402_v56 }
  0xf0   : > { %v483_v59 = vadd.f32 %v898_v35, %v482_v57  ;;  %547 = vst.msk [vmem:[%s905_s27 + $0x28] sm:$0xff] %vm541_vm4, %v408_v54 }
  0xf1   : > { %563 = vst.msk [vmem:[%s905_s27 + $0xa8] sm:$0xff] %vm541_vm4, %v488_v55  ;;  %546 = vst.msk [vmem:[%s905_s27 + $0x20] sm:$0xff] %vm541_vm4, %v403_v58  ;;  %v724_v60 = vpop.f32.mrb[6].mxu0 }
  0xf2   : > { %562 = vst.msk [vmem:[%s905_s27 + $0xa0] sm:$0xff] %vm541_vm4, %v483_v59  ;;  %v748_v61 = vpop.f32.mrb[6].mxu1  ;;  %v418_v62 = vadd.f32 %v724_v60, %v898_v35  ;;  %v412_v0 = vpop.f32.mrb[7].mxu0 }
  0xf3   : > { %v498_v63 = vadd.f32 %v748_v61, %v898_v35  ;;  %v492_v1 = vpop.f32.mrb[7].mxu1  ;;  %v413_v2 = vadd.f32 %v898_v35, %v412_v0 }
  0xf4   : > { %v493_v3 = vadd.f32 %v898_v35, %v492_v1  ;;  %549 = vst.msk [vmem:[%s905_s27 + $0x38] sm:$0xff] %vm541_vm4, %v418_v62 }
  0xf5   : > { %565 = vst.msk [vmem:[%s905_s27 + $0xb8] sm:$0xff] %vm541_vm4, %v498_v63  ;;  %548 = vst.msk [vmem:[%s905_s27 + $0x30] sm:$0xff] %vm541_vm4, %v413_v2  ;;  %v727_v4 = vpop.f32.mrb[8].mxu0 }
  0xf6   : > { %564 = vst.msk [vmem:[%s905_s27 + $0xb0] sm:$0xff] %vm541_vm4, %v493_v3  ;;  %v751_v5 = vpop.f32.mrb[8].mxu1  ;;  %v428_v6 = vadd.f32 %v727_v4, %v898_v35  ;;  %v422_v8 = vpop.f32.mrb[9].mxu0 }
  0xf7   : > { %v508_v7 = vadd.f32 %v751_v5, %v898_v35  ;;  %v502_v9 = vpop.f32.mrb[9].mxu1  ;;  %v423_v10 = vadd.f32 %v898_v35, %v422_v8 }
  0xf8   : > { %v503_v11 = vadd.f32 %v898_v35, %v502_v9  ;;  %551 = vst.msk [vmem:[%s905_s27 + $0x48] sm:$0xff] %vm541_vm4, %v428_v6 }
  0xf9   : > { %567 = vst.msk [vmem:[%s905_s27 + $0xc8] sm:$0xff] %vm541_vm4, %v508_v7  ;;  %550 = vst.msk [vmem:[%s905_s27 + $0x40] sm:$0xff] %vm541_vm4, %v423_v10  ;;  %v730_v12 = vpop.f32.mrb[10].mxu0 }
  0xfa   : > { %566 = vst.msk [vmem:[%s905_s27 + $0xc0] sm:$0xff] %vm541_vm4, %v503_v11  ;;  %v754_v13 = vpop.f32.mrb[10].mxu1  ;;  %v438_v14 = vadd.f32 %v730_v12, %v898_v35  ;;  %v432_v16 = vpop.f32.mrb[11].mxu0 }
  0xfb   : > { %v518_v15 = vadd.f32 %v754_v13, %v898_v35  ;;  %v512_v17 = vpop.f32.mrb[11].mxu1  ;;  %v433_v18 = vadd.f32 %v898_v35, %v432_v16 }
  0xfc   : > { %v513_v19 = vadd.f32 %v898_v35, %v512_v17  ;;  %553 = vst.msk [vmem:[%s905_s27 + $0x58] sm:$0xff] %vm541_vm4, %v438_v14 }
  0xfd   : > { %569 = vst.msk [vmem:[%s905_s27 + $0xd8] sm:$0xff] %vm541_vm4, %v518_v15  ;;  %552 = vst.msk [vmem:[%s905_s27 + $0x50] sm:$0xff] %vm541_vm4, %v433_v18  ;;  %v733_v20 = vpop.f32.mrb[12].mxu0 }
  0xfe   : > { %568 = vst.msk [vmem:[%s905_s27 + $0xd0] sm:$0xff] %vm541_vm4, %v513_v19  ;;  %v757_v21 = vpop.f32.mrb[12].mxu1  ;;  %v448_v22 = vadd.f32 %v733_v20, %v898_v35  ;;  %v442_v24 = vpop.f32.mrb[13].mxu0 }
  0xff   : > { %v528_v23 = vadd.f32 %v757_v21, %v898_v35  ;;  %v522_v25 = vpop.f32.mrb[13].mxu1  ;;  %v443_v26 = vadd.f32 %v898_v35, %v442_v24 }
 0x100   : > { %v523_v27 = vadd.f32 %v898_v35, %v522_v25  ;;  %555 = vst.msk [vmem:[%s905_s27 + $0x68] sm:$0xff] %vm541_vm4, %v448_v22 }
 0x101   : > { %571 = vst.msk [vmem:[%s905_s27 + $0xe8] sm:$0xff] %vm541_vm4, %v528_v23  ;;  %554 = vst.msk [vmem:[%s905_s27 + $0x60] sm:$0xff] %vm541_vm4, %v443_v26  ;;  %v736_v28 = vpop.f32.mrb[14].mxu0 }
 0x102   : > { %570 = vst.msk [vmem:[%s905_s27 + $0xe0] sm:$0xff] %vm541_vm4, %v523_v27  ;;  %v760_v29 = vpop.f32.mrb[14].mxu1  ;;  %v458_v30 = vadd.f32 %v736_v28, %v898_v35  ;;  %v452_v32 = vpop.f32.mrb[15].mxu0 }
 0x103   : > { %v538_v31 = vadd.f32 %v760_v29, %v898_v35  ;;  %v532_v33 = vpop.f32.mrb[15].mxu1  ;;  %v453_v34 = vadd.f32 %v898_v35, %v452_v32 }
 0x104   : > { %v533_v36 = vadd.f32 %v898_v35, %v532_v33  ;;  %557 = vst.msk [vmem:[%s905_s27 + $0x78] sm:$0xff] %vm541_vm4, %v458_v30 }
 0x105   : > { %573 = vst.msk [vmem:[%s905_s27 + $0xf8] sm:$0xff] %vm541_vm4, %v538_v31  ;;  %556 = vst.msk [vmem:[%s905_s27 + $0x70] sm:$0xff] %vm541_vm4, %v453_v34 }
 0x106   : > { %572 = vst.msk [vmem:[%s905_s27 + $0xf0] sm:$0xff] %vm541_vm4, %v533_v36 }
 0x107 PF: > { %s13_s12 = sadd.s32 1, %s784_s12  }
 0x108   : > { %p10_p4 = scmp.ge.s32.totalorder %s13_s12, 4  }
 0x10a   :  { %12 = sbr.rel (!%p10_p4) target bundleno = 1 (0x1), region = 62 }

// kernel: neg.8
= control target key start
LH: loop header
LB: loop body
LE: loop exit
PB: predicated region body
PF: predicated region fallthrough
CT: control target
= control target key end

     0   :  { %s520_s0 = inlined_call_operand.vmem [shape: f32[8,32,32], index: 0, kind: input, shape index: {}]   ;;  %s521_s1 = inlined_call_operand.vmem [shape: f32[8,32,32], index: 1, kind: output, shape index: {}]  }
   0x1   :  { %v2_v0 = vld [vmem:[%s520_s0] sm:$0xff]  ;;  %v270_v14 = vld [vmem:[%s520_s0 + $0x8] sm:$0xff]  ;;  %v286_v31 = vld [vmem:[%s520_s0 + $0x10] sm:$0xff] }
   0x2   :  { %v256_v1 = vld [vmem:[%s520_s0 + $0x20] sm:$0xff]  ;;  %v5_v3 = vxor.u32 2147483648, %v2_v0  ;;  %v68_v17 = vxor.u32 2147483648, %v270_v14  ;;  %v272_v18 = vld [vmem:[%s520_s0 + $0x28] sm:$0xff]  ;;  %v288_v32 = vld [vmem:[%s520_s0 + $0x30] sm:$0xff]  ;;  %v132_v34 = vxor.u32 2147483648, %v286_v31 }
   0x3   :  { %v258_v2 = vld [vmem:[%s520_s0 + $0x40] sm:$0xff]  ;;  %v12_v4 = vxor.u32 2147483648, %v256_v1  ;;  %v274_v19 = vld [vmem:[%s520_s0 + $0x48] sm:$0xff]  ;;  %v76_v21 = vxor.u32 2147483648, %v272_v18  ;;  %v140_v35 = vxor.u32 2147483648, %v288_v32  ;;  %v290_v36 = vld [vmem:[%s520_s0 + $0x50] sm:$0xff] }
   0x4   :  { %v20_v5 = vxor.u32 2147483648, %v258_v2  ;;  %v260_v6 = vld [vmem:[%s520_s0 + $0x60] sm:$0xff]  ;;  %7 = vst [vmem:[%s521_s1] sm:$0xff] %v5_v3  ;;  %v276_v20 = vld [vmem:[%s520_s0 + $0x68] sm:$0xff]  ;;  %v84_v22 = vxor.u32 2147483648, %v274_v19  ;;  %271 = vst [vmem:[%s521_s1 + $0x8] sm:$0xff] %v68_v17  ;;  %v148_v39 = vxor.u32 2147483648, %v290_v36 }
   0x5   :  { %v262_v7 = vld [vmem:[%s520_s0 + $0x80] sm:$0xff]  ;;  %v28_v9 = vxor.u32 2147483648, %v260_v6  ;;  %257 = vst [vmem:[%s521_s1 + $0x20] sm:$0xff] %v12_v4  ;;  %v92_v23 = vxor.u32 2147483648, %v276_v20  ;;  %v278_v24 = vld [vmem:[%s520_s0 + $0x88] sm:$0xff]  ;;  %273 = vst [vmem:[%s521_s1 + $0x28] sm:$0xff] %v76_v21 }
   0x6   :  { %v264_v8 = vld [vmem:[%s520_s0 + $0xa0] sm:$0xff]  ;;  %v36_v10 = vxor.u32 2147483648, %v262_v7  ;;  %259 = vst [vmem:[%s521_s1 + $0x40] sm:$0xff] %v20_v5  ;;  %v280_v25 = vld [vmem:[%s520_s0 + $0xa8] sm:$0xff]  ;;  %v100_v27 = vxor.u32 2147483648, %v278_v24  ;;  %275 = vst [vmem:[%s521_s1 + $0x48] sm:$0xff] %v84_v22 }
   0x7   :  { %v44_v11 = vxor.u32 2147483648, %v264_v8  ;;  %v266_v12 = vld [vmem:[%s520_s0 + $0xc0] sm:$0xff]  ;;  %261 = vst [vmem:[%s521_s1 + $0x60] sm:$0xff] %v28_v9  ;;  %v282_v26 = vld [vmem:[%s520_s0 + $0xc8] sm:$0xff]  ;;  %v108_v28 = vxor.u32 2147483648, %v280_v25  ;;  %277 = vst [vmem:[%s521_s1 + $0x68] sm:$0xff] %v92_v23 }
   0x8   :  { %v268_v13 = vld [vmem:[%s520_s0 + $0xe0] sm:$0xff]  ;;  %v52_v15 = vxor.u32 2147483648, %v266_v12  ;;  %263 = vst [vmem:[%s521_s1 + $0x80] sm:$0xff] %v36_v10  ;;  %v116_v29 = vxor.u32 2147483648, %v282_v26  ;;  %v284_v30 = vld [vmem:[%s520_s0 + $0xe8] sm:$0xff]  ;;  %v292_v37 = vld [vmem:[%s520_s0 + $0x70] sm:$0xff] }
   0x9   :  { %v60_v16 = vxor.u32 2147483648, %v268_v13  ;;  %265 = vst [vmem:[%s521_s1 + $0xa0] sm:$0xff] %v44_v11  ;;  %v124_v33 = vxor.u32 2147483648, %v284_v30  ;;  %v294_v38 = vld [vmem:[%s520_s0 + $0x90] sm:$0xff]  ;;  %279 = vst [vmem:[%s521_s1 + $0x88] sm:$0xff] %v100_v27  ;;  %v156_v40 = vxor.u32 2147483648, %v292_v37 }
   0xa   :  { %267 = vst [vmem:[%s521_s1 + $0xc0] sm:$0xff] %v52_v15  ;;  %281 = vst [vmem:[%s521_s1 + $0xa8] sm:$0xff] %v108_v28  ;;  %v164_v41 = vxor.u32 2147483648, %v294_v38  ;;  %v296_v42 = vld [vmem:[%s520_s0 + $0xb0] sm:$0xff]  ;;  %v302_v48 = vld [vmem:[%s520_s0 + $0x18] sm:$0xff] }
   0xb   :  { %269 = vst [vmem:[%s521_s1 + $0xe0] sm:$0xff] %v60_v16  ;;  %283 = vst [vmem:[%s521_s1 + $0xc8] sm:$0xff] %v116_v29  ;;  %v298_v43 = vld [vmem:[%s520_s0 + $0xd0] sm:$0xff]  ;;  %v172_v45 = vxor.u32 2147483648, %v296_v42  ;;  %v304_v49 = vld [vmem:[%s520_s0 + $0x38] sm:$0xff]  ;;  %v196_v51 = vxor.u32 2147483648, %v302_v48 }
   0xc   :  { %v300_v44 = vld [vmem:[%s520_s0 + $0xf0] sm:$0xff]  ;;  %285 = vst [vmem:[%s521_s1 + $0xe8] sm:$0xff] %v124_v33  ;;  %287 = vst [vmem:[%s521_s1 + $0x10] sm:$0xff] %v132_v34  ;;  %v180_v46 = vxor.u32 2147483648, %v298_v43  ;;  %v306_v50 = vld [vmem:[%s520_s0 + $0x58] sm:$0xff]  ;;  %v204_v52 = vxor.u32 2147483648, %v304_v49 }
   0xd   :  { %289 = vst [vmem:[%s521_s1 + $0x30] sm:$0xff] %v140_v35  ;;  %v188_v47 = vxor.u32 2147483648, %v300_v44  ;;  %291 = vst [vmem:[%s521_s1 + $0x50] sm:$0xff] %v148_v39  ;;  %v212_v53 = vxor.u32 2147483648, %v306_v50  ;;  %v308_v54 = vld [vmem:[%s520_s0 + $0x78] sm:$0xff] }
   0xe   :  { %293 = vst [vmem:[%s521_s1 + $0x70] sm:$0xff] %v156_v40  ;;  %295 = vst [vmem:[%s521_s1 + $0x90] sm:$0xff] %v164_v41  ;;  %v310_v55 = vld [vmem:[%s520_s0 + $0x98] sm:$0xff]  ;;  %v220_v57 = vxor.u32 2147483648, %v308_v54 }
   0xf   :  { %v312_v56 = vld [vmem:[%s520_s0 + $0xb8] sm:$0xff]  ;;  %297 = vst [vmem:[%s521_s1 + $0xb0] sm:$0xff] %v172_v45  ;;  %299 = vst [vmem:[%s521_s1 + $0xd0] sm:$0xff] %v180_v46  ;;  %v228_v58 = vxor.u32 2147483648, %v310_v55 }
  0x10   :  { %301 = vst [vmem:[%s521_s1 + $0xf0] sm:$0xff] %v188_v47  ;;  %v236_v59 = vxor.u32 2147483648, %v312_v56  ;;  %v314_v60 = vld [vmem:[%s520_s0 + $0xd8] sm:$0xff]  ;;  %303 = vst [vmem:[%s521_s1 + $0x18] sm:$0xff] %v196_v51 }
  0x11   :  { %v316_v61 = vld [vmem:[%s520_s0 + $0xf8] sm:$0xff]  ;;  %305 = vst [vmem:[%s521_s1 + $0x38] sm:$0xff] %v204_v52  ;;  %307 = vst [vmem:[%s521_s1 + $0x58] sm:$0xff] %v212_v53  ;;  %v244_v62 = vxor.u32 2147483648, %v314_v60 }
  0x12   :  { %v252_v63 = vxor.u32 2147483648, %v316_v61  ;;  %309 = vst [vmem:[%s521_s1 + $0x78] sm:$0xff] %v220_v57  ;;  %311 = vst [vmem:[%s521_s1 + $0x98] sm:$0xff] %v228_v58 }
  0x13   :  { %313 = vst [vmem:[%s521_s1 + $0xb8] sm:$0xff] %v236_v59  ;;  %315 = vst [vmem:[%s521_s1 + $0xd8] sm:$0xff] %v244_v62 }
  0x14   :  { %317 = vst [vmem:[%s521_s1 + $0xf8] sm:$0xff] %v252_v63 }

// kernel: ffno_forward.11
= control target key start
LH: loop header
LB: loop body
LE: loop exit
PB: predicated region body
PF: predicated region fallthrough
CT: control target
= control target key end

     0   :  { %s1872_s9 = smov 0   ;;  %s1874_s10 = smov 0   ;;  %s2123_s0 = inlined_call_operand.vmem [shape: f32[16,32,64], index: 0, kind: input, shape index: {}]   ;;  %s2124_s1 = inlined_call_operand.vmem [shape: f32[16,64,64], index: 1, kind: input, shape index: {}]   ;;  %s2125_s2 = inlined_call_operand.vmem [shape: f32[32,1024], index: 2, kind: output, shape index: {}]  }
   0x1   :  { %s1876_s11 = smov 0  }
   0x2 LB: > { %s1885_s12 = sadd.s32 4294967295, %s1854_s11   ;;  %s1887_s13 = sadd.s32 1, %s1854_s11   ;;  %s1854_s11 = sphi %s1876_s11, %s2129_s11   ;;  %s1850_s10 = sphi %s1874_s10, %s2128_s10   ;;  %s1846_s9 = sphi %s1872_s9, %s2127_s9  }
   0x3   : > { %s68_s14 = ssub.s32 %s1854_s11, %s1887_s13  ;;  %s71_s15 = sadd.s32 1, %s1850_s10 }
   0x4   : > { %p69_p0 = scmp.eq.s32.totalorder %s68_s14, 0  ;;  %p81_p1 = scmp.ne.s32.totalorder %s1850_s10, %s1846_s9 }
   0x5   : > { %p82_p2 = scmp.eq.s32.totalorder %s1885_s12, 1  ;;  %p1275_p3 = scmp.ge.s32.totalorder %s1854_s11, 1 }
   0x6   : > { %s1895_s16 = scalar_select %p69_p0, %s1850_s10, %s71_s15  }
   0x7   : > { %p1897_p4 = por %p82_p2, %p81_p1  ;;  %p126_p5 = scmp.lt.s32.totalorder %s1854_s11, 3 }
   0x9   : > { %p127_p6 = pnand %p1275_p3, %p126_p5 }
   0xa   : > { %s1277_s18 = sshll.u32 (!%p127_p6), %s1885_s12, 3  ;;  %vm181_vm0 = vcmask (!%p127_p6), 523264   ;;  %s1856_s27 = smov (!%p127_p6), 64  }
   0xb   : > { %130 = sbr.rel (%p127_p6) target bundleno = 430 (0x1ae), region = 28  ;;  %p155_p7 = scmp.lt.s32.totalorder (!%p127_p6), %s1277_s18, 15 }
   0xc   : > { %s151_s28 = sand.u32 (!%p127_p6), 1, %s1846_s9  }
   0xd   : > { %s1276_s29 = sshll.u32 (!%p127_p6), %s151_s28, 7 }
   0xe   : > { %s2058_s30 = scalar_lea.vmem (!%p127_p6), [#allocation2], %s1276_s29 }
  0x12   : > { %s2131_s18 = smov (!%p155_p7, %s1277_s18), 15  ;;  %s1406_s3 = sshll.u32 (%p1897_p4), %s1885_s12, 5 }
  0x13   : > { %s1405_s19 = sshll.u32 %s2131_s18, 6  ;;  %s1404_s20 = sshll.u32 %s2131_s18, 5 }
  0x14   : > { %s1905_s23 = scalar_lea.vmem %s2124_s1, %s1405_s19  ;;  %s1910_s26 = scalar_lea.vmem %s2123_s0, %s1404_s20 }
  0x15   : > { %v1291_v0 = vld [vmem:[%s1905_s23 + $0x40] sm:$0xff]  ;;  %v1292_v1 = vld [vmem:[%s1905_s23 + $0x48] sm:$0xff]  ;;  %v1293_v2 = vld [vmem:[%s1905_s23 + $0x50] sm:$0xff]  ;;  %s1161_s6 = scalar_lea.vmem (%p1897_p4), %s2125_s2, %s1406_s3 }
  0x16   : > { %v1695_v3 = vpack.c.bf16 %v1292_v1, %v1291_v0  ;;  %v1294_v4 = vld [vmem:[%s1905_s23 + $0x58] sm:$0xff]  ;;  %v1295_v6 = vld [vmem:[%s1905_s23 + $0x60] sm:$0xff]  ;;  %v1296_v7 = vld [vmem:[%s1905_s23 + $0x68] sm:$0xff] }
  0x17   : > { %v1699_v5 = vpack.c.bf16 %v1294_v4, %v1293_v2  ;;  %v1287_v8 = vld [vmem:[%s1910_s26 + $0x20] sm:$0xff]  ;;  %v1703_v9 = vpack.c.bf16 %v1296_v7, %v1295_v6  ;;  %v1297_v10 = vld [vmem:[%s1905_s23 + $0x70] sm:$0xff]  ;;  %v1298_v11 = vld [vmem:[%s1905_s23 + $0x78] sm:$0xff] }
  0x18   : > { %1696 = vmatprep.subr.bf16.mxu1 %v1695_v3  ;;  %1541 = vmatprep.mubr.msk.f32.mxu1 %vm181_vm0, %v1287_v8  ;;  %v1707_v12 = vpack.c.bf16 %v1298_v11, %v1297_v10  ;;  %v1323_v13 = vld [vmem:[%s1905_s23 + $0xc0] sm:$0xff]  ;;  %v1324_v14 = vld [vmem:[%s1905_s23 + $0xc8] sm:$0xff]  ;;  %v1325_v16 = vld [vmem:[%s1905_s23 + $0xd0] sm:$0xff] }
  0x19   : > { %1698 = vmatpush3.bf16.msra.mxu1 %v1695_v3  ;;  %v1727_v15 = vpack.c.bf16 %v1324_v14, %v1323_v13  ;;  %v1326_v17 = vld [vmem:[%s1905_s23 + $0xd8] sm:$0xff]  ;;  %v1288_v18 = vld [vmem:[%s1910_s26 + $0x28] sm:$0xff]  ;;  %v173_v19 = vld [vmem:[%s1905_s23] sm:$0xff] }
  0x1a   : > { %1700 = vmatprep.subr.bf16.mxu1 %v1699_v5  ;;  %v174_v20 = vld [vmem:[%s1905_s23 + $0x8] sm:$0xff]  ;;  %v175_v21 = vld [vmem:[%s1905_s23 + $0x10] sm:$0xff]  ;;  %v1731_v22 = vpack.c.bf16 %v1326_v17, %v1325_v16  ;;  %v176_v25 = vld [vmem:[%s1905_s23 + $0x18] sm:$0xff] }
  0x1b   : > { %v1289_v23 = vld [vmem:[%s1910_s26 + $0x30] sm:$0xff]  ;;  %v1679_v24 = vpack.c.bf16 %v174_v20, %v173_v19  ;;  %v1327_v26 = vld [vmem:[%s1905_s23 + $0xe0] sm:$0xff]  ;;  %v1328_v27 = vld [vmem:[%s1905_s23 + $0xe8] sm:$0xff]  ;;  %v1683_v28 = vpack.c.bf16 %v176_v25, %v175_v21 }
  0x1c   : > { %v177_v29 = vld [vmem:[%s1905_s23 + $0x20] sm:$0xff]  ;;  %v178_v30 = vld [vmem:[%s1905_s23 + $0x28] sm:$0xff]  ;;  %v1290_v32 = vld [vmem:[%s1910_s26 + $0x38] sm:$0xff]  ;;  %v1735_v33 = vpack.c.bf16 %v1328_v27, %v1327_v26 }
  0x1d   : > { %1702 = vmatpush3.bf16.msra.mxu1 %v1699_v5  ;;  %1680 = vmatprep.subr.bf16.mxu0 %v1679_v24  ;;  %v169_v31 = vld [vmem:[%s1910_s26] sm:$0xff]  ;;  %v1329_v35 = vld [vmem:[%s1905_s23 + $0xf0] sm:$0xff]  ;;  %v1330_v36 = vld [vmem:[%s1905_s23 + $0xf8] sm:$0xff]  ;;  %v1687_v37 = vpack.c.bf16 %v178_v30, %v177_v29 }
  0x1e   : > { %1704 = vmatprep.subr.bf16.mxu1 %v1703_v9  ;;  %v1319_v34 = vld [vmem:[%s1910_s26 + $0x60] sm:$0xff]  ;;  %1682 = vmatpush3.bf16.msra.mxu0 %v1679_v24  ;;  %v179_v38 = vld [vmem:[%s1905_s23 + $0x30] sm:$0xff]  ;;  %v180_v39 = vld [vmem:[%s1905_s23 + $0x38] sm:$0xff]  ;;  %v1739_v40 = vpack.c.bf16 %v1330_v36, %v1329_v35 }
  0x1f   : > { %1684 = vmatprep.subr.bf16.mxu0 %v1683_v28  ;;  %1519 = vmatprep.mubr.msk.f32.mxu0 %vm181_vm0, %v169_v31  ;;  %v1355_v41 = vld [vmem:[%s1905_s23 + $0x140] sm:$0xff]  ;;  %v1356_v42 = vld [vmem:[%s1905_s23 + $0x148] sm:$0xff]  ;;  %v1691_v43 = vpack.c.bf16 %v180_v39, %v179_v38  ;;  %v1357_v47 = vld [vmem:[%s1905_s23 + $0x150] sm:$0xff] }
  0x20   : > { %v1307_v44 = vld [vmem:[%s1905_s23 + $0x80] sm:$0xff]  ;;  %v1308_v45 = vld [vmem:[%s1905_s23 + $0x88] sm:$0xff]  ;;  %v1759_v46 = vpack.c.bf16 %v1356_v42, %v1355_v41  ;;  %v1358_v48 = vld [vmem:[%s1905_s23 + $0x158] sm:$0xff] }
  0x21   : > { %1706 = vmatpush3.bf16.msra.mxu1 %v1703_v9  ;;  %v1711_v49 = vpack.c.bf16 %v1308_v45, %v1307_v44  ;;  %v1320_v50 = vld [vmem:[%s1910_s26 + $0x68] sm:$0xff]  ;;  %v1309_v51 = vld [vmem:[%s1905_s23 + $0x90] sm:$0xff]  ;;  %v1310_v52 = vld [vmem:[%s1905_s23 + $0x98] sm:$0xff]  ;;  %v1763_v53 = vpack.c.bf16 %v1358_v48, %v1357_v47 }
  0x22   : > { %1708 = vmatprep.subr.bf16.mxu1 %v1707_v12  ;;  %1686 = vmatpush3.bf16.msra.mxu0 %v1683_v28  ;;  %v1321_v54 = vld [vmem:[%s1910_s26 + $0x70] sm:$0xff]  ;;  %v1359_v55 = vld [vmem:[%s1905_s23 + $0x160] sm:$0xff]  ;;  %v1360_v56 = vld [vmem:[%s1905_s23 + $0x168] sm:$0xff]  ;;  %v1715_v58 = vpack.c.bf16 %v1310_v52, %v1309_v51 }
  0x23   : > { %1688 = vmatprep.subr.bf16.mxu0 %v1687_v37  ;;  %v170_v57 = vld [vmem:[%s1910_s26 + $0x8] sm:$0xff]  ;;  %v171_v59 = vld [vmem:[%s1910_s26 + $0x10] sm:$0xff]  ;;  %v1322_v60 = vld [vmem:[%s1910_s26 + $0x78] sm:$0xff]  ;;  %v1767_v63 = vpack.c.bf16 %v1360_v56, %v1359_v55 }
  0x24   : > { %v1311_v61 = vld [vmem:[%s1905_s23 + $0xa0] sm:$0xff]  ;;  %v1312_v62 = vld [vmem:[%s1905_s23 + $0xa8] sm:$0xff]  ;;  %v1361_v1 = vld [vmem:[%s1905_s23 + $0x170] sm:$0xff] }
  0x25   : > { %1710 = vmatpush3.bf16.msra.mxu1 %v1707_v12  ;;  %v1351_v0 = vld [vmem:[%s1910_s26 + $0xa0] sm:$0xff]  ;;  %v1362_v2 = vld [vmem:[%s1905_s23 + $0x178] sm:$0xff]  ;;  %v1719_v4 = vpack.c.bf16 %v1312_v62, %v1311_v61  ;;  %v1313_v6 = vld [vmem:[%s1905_s23 + $0xb0] sm:$0xff] }
  0x26   : > { %1728 = vmatprep.subr.bf16.mxu1 %v1727_v15  ;;  %1690 = vmatpush3.bf16.msra.mxu0 %v1687_v37  ;;  %v172_v3 = vld [vmem:[%s1910_s26 + $0x18] sm:$0xff]  ;;  %v1303_v5 = vld [vmem:[%s1910_s26 + $0x40] sm:$0xff]  ;;  %v1771_v8 = vpack.c.bf16 %v1362_v2, %v1361_v1  ;;  %v1388_v10 = vld [vmem:[%s1905_s23 + $0x1c8] sm:$0xff] }
  0x27   : > { %1692 = vmatprep.subr.bf16.mxu0 %v1691_v43  ;;  %v1314_v7 = vld [vmem:[%s1905_s23 + $0xb8] sm:$0xff]  ;;  %v1387_v9 = vld [vmem:[%s1905_s23 + $0x1c0] sm:$0xff]  ;;  %v1340_v13 = vld [vmem:[%s1905_s23 + $0x108] sm:$0xff] }
  0x28   : > { %1542 = vmatmul.mubr.msk.f32.vlgmr.msra.gmra.mrb[0].mxu1 %vm181_vm0, %v1288_v18  ;;  %v1723_v11 = vpack.c.bf16 %v1314_v7, %v1313_v6  ;;  %v1339_v12 = vld [vmem:[%s1905_s23 + $0x100] sm:$0xff]  ;;  %v1791_v14 = vpack.c.bf16 %v1388_v10, %v1387_v9  ;;  %v1390_v16 = vld [vmem:[%s1905_s23 + $0x1d8] sm:$0xff]  ;;  %v1352_v18 = vld [vmem:[%s1910_s26 + $0xa8] sm:$0xff] }
  0x29   : > { %1730 = vmatpush3.bf16.msra.mxu1 %v1727_v15  ;;  %1544 = vmatprep.mubr.msk.f32.mxu1 %vm181_vm0, %v1289_v23  ;;  %v1389_v15 = vld [vmem:[%s1905_s23 + $0x1d0] sm:$0xff]  ;;  %v1743_v17 = vpack.c.bf16 %v1340_v13, %v1339_v12  ;;  %v1342_v20 = vld [vmem:[%s1905_s23 + $0x118] sm:$0xff]  ;;  %v1391_v23 = vld [vmem:[%s1905_s23 + $0x1e0] sm:$0xff] }
  0x2a   : > { %1732 = vmatprep.subr.bf16.mxu1 %v1731_v22  ;;  %1694 = vmatpush3.bf16.msra.mxu0 %v1691_v43  ;;  %v1341_v19 = vld [vmem:[%s1905_s23 + $0x110] sm:$0xff]  ;;  %v1795_v21 = vpack.c.bf16 %v1390_v16, %v1389_v15  ;;  %v1392_v24 = vld [vmem:[%s1905_s23 + $0x1e8] sm:$0xff]  ;;  %v1354_v28 = vld [vmem:[%s1910_s26 + $0xb8] sm:$0xff] }
  0x2b   : > { %1712 = vmatprep.subr.bf16.mxu0 %v1711_v49  ;;  %v1304_v25 = vld [vmem:[%s1910_s26 + $0x48] sm:$0xff]  ;;  %v1747_v26 = vpack.c.bf16 %v1342_v20, %v1341_v19  ;;  %v1305_v27 = vld [vmem:[%s1910_s26 + $0x50] sm:$0xff]  ;;  %v1343_v29 = vld [vmem:[%s1905_s23 + $0x120] sm:$0xff]  ;;  %v1799_v31 = vpack.c.bf16 %v1392_v24, %v1391_v23 }
  0x2c   : > { %1545 = vmatmul.mubr.msk.f32.gmra.mrb[2].mxu1 %vm181_vm0, %v1290_v32  ;;  %v1344_v30 = vld [vmem:[%s1905_s23 + $0x128] sm:$0xff]  ;;  %v1383_v32 = vld [vmem:[%s1910_s26 + $0xe0] sm:$0xff]  ;;  %v1306_v35 = vld [vmem:[%s1910_s26 + $0x58] sm:$0xff] }
  0x2d   : > { %1734 = vmatpush3.bf16.msra.mxu1 %v1731_v22  ;;  %1585 = vmatprep.mubr.msk.f32.mxu1 %vm181_vm0, %v1319_v34  ;;  %v1353_v22 = vld [vmem:[%s1910_s26 + $0xb0] sm:$0xff]  ;;  %v1394_v34 = vld [vmem:[%s1905_s23 + $0x1f8] sm:$0xff]  ;;  %v1751_v36 = vpack.c.bf16 %v1344_v30, %v1343_v29  ;;  %v1335_v37 = vld [vmem:[%s1910_s26 + $0x80] sm:$0xff] }
  0x2e   : > { %1736 = vmatprep.subr.bf16.mxu1 %v1735_v33  ;;  %1520 = vmatmul.mubr.msk.f32.vlgmr.msra.gmra.mrb[0].mxu0 %vm181_vm0, %v170_v57  ;;  %v1345_v38 = vld [vmem:[%s1905_s23 + $0x130] sm:$0xff]  ;;  %v1346_v39 = vld [vmem:[%s1905_s23 + $0x138] sm:$0xff]  ;;  %v1371_v42 = vld [vmem:[%s1905_s23 + $0x180] sm:$0xff] }
  0x2f   : > { %1714 = vmatpush3.bf16.msra.mxu0 %v1711_v49  ;;  %1522 = vmatprep.mubr.msk.f32.mxu0 %vm181_vm0, %v171_v59  ;;  %v1755_v41 = vpack.c.bf16 %v1346_v39, %v1345_v38  ;;  %v1372_v43 = vld [vmem:[%s1905_s23 + $0x188] sm:$0xff]  ;;  %v1374_v47 = vld [vmem:[%s1905_s23 + $0x198] sm:$0xff]  ;;  %v1385_v48 = vld [vmem:[%s1910_s26 + $0xf0] sm:$0xff] }
  0x30   : > { %1716 = vmatprep.subr.bf16.mxu0 %v1715_v58  ;;  %v1775_v44 = vpack.c.bf16 %v1372_v43, %v1371_v42  ;;  %v1384_v45 = vld [vmem:[%s1910_s26 + $0xe8] sm:$0xff]  ;;  %v1337_v51 = vld [vmem:[%s1910_s26 + $0x90] sm:$0xff]  ;;  %v1386_v52 = vld [vmem:[%s1910_s26 + $0xf8] sm:$0xff] }
  0x31   : > { %1738 = vmatpush3.bf16.msra.mxu1 %v1735_v33  ;;  %v1393_v33 = vld [vmem:[%s1905_s23 + $0x1f0] sm:$0xff]  ;;  %v1336_v49 = vld [vmem:[%s1910_s26 + $0x88] sm:$0xff]  ;;  %v1338_v55 = vld [vmem:[%s1910_s26 + $0x98] sm:$0xff] }
  0x32   : > { %1740 = vmatprep.subr.bf16.mxu1 %v1739_v40  ;;  %1523 = vmatmul.mubr.msk.f32.gmra.mrb[2].mxu0 %vm181_vm0, %v172_v3  ;;  %v1367_v57 = vld [vmem:[%s1910_s26 + $0xc0] sm:$0xff]  ;;  %v1378_v59 = vld [vmem:[%s1905_s23 + $0x1b8] sm:$0xff]  ;;  %v1368_v61 = vld [vmem:[%s1910_s26 + $0xc8] sm:$0xff] }
  0x33   : > { %1718 = vmatpush3.bf16.msra.mxu0 %v1715_v58  ;;  %1563 = vmatprep.mubr.msk.f32.mxu0 %vm181_vm0, %v1303_v5  ;;  %v1377_v58 = vld [vmem:[%s1905_s23 + $0x1b0] sm:$0xff] }
  0x34   : > { %1720 = vmatprep.subr.bf16.mxu0 %v1719_v4  ;;  %v1369_v62 = vld [vmem:[%s1910_s26 + $0xd0] sm:$0xff] }
  0x35   : > { %1742 = vmatpush3.bf16.msra.mxu1 %v1739_v40  ;;  %v1803_v40 = vpack.c.bf16 %v1394_v34, %v1393_v33 }
  0x36   : > { %1760 = vmatprep.subr.bf16.mxu1 %v1759_v46 }
  0x37   : > { %1722 = vmatpush3.bf16.msra.mxu0 %v1719_v4 }
  0x38   : > { %1586 = vmatmul.mubr.msk.f32.vlgmr.msra.gmra.mrb[4].mxu1 %vm181_vm0, %v1320_v50  ;;  %1724 = vmatprep.subr.bf16.mxu0 %v1723_v11 }
  0x39   : > { %1762 = vmatpush3.bf16.msra.mxu1 %v1759_v46  ;;  %1588 = vmatprep.mubr.msk.f32.mxu1 %vm181_vm0, %v1321_v54  ;;  %v1373_v46 = vld [vmem:[%s1905_s23 + $0x190] sm:$0xff]  ;;  %v1376_v54 = vld [vmem:[%s1905_s23 + $0x1a8] sm:$0xff] }
  0x3a   : > { %1764 = vmatprep.subr.bf16.mxu1 %v1763_v53  ;;  %v1779_v50 = vpack.c.bf16 %v1374_v47, %v1373_v46 }
  0x3b   : > { %1726 = vmatpush3.bf16.msra.mxu0 %v1723_v11 }
  0x3c   : > { %1589 = vmatmul.mubr.msk.f32.gmra.mrb[6].mxu1 %vm181_vm0, %v1322_v60  ;;  %1744 = vmatprep.subr.bf16.mxu0 %v1743_v17  ;;  %v1787_v60 = vpack.c.bf16 %v1378_v59, %v1377_v58 }
  0x3d   : > { %1766 = vmatpush3.bf16.msra.mxu1 %v1763_v53  ;;  %1629 = vmatprep.mubr.msk.f32.mxu1 %vm181_vm0, %v1351_v0  ;;  %v1375_v53 = vld [vmem:[%s1905_s23 + $0x1a0] sm:$0xff] }
  0x3e   : > { %1768 = vmatprep.subr.bf16.mxu1 %v1767_v63  ;;  %1564 = vmatmul.mubr.msk.f32.vlgmr.msra.gmra.mrb[4].mxu0 %vm181_vm0, %v1304_v25  ;;  %v1783_v56 = vpack.c.bf16 %v1376_v54, %v1375_v53 }
  0x3f   : > { %1746 = vmatpush3.bf16.msra.mxu0 %v1743_v17  ;;  %1566 = vmatprep.mubr.msk.f32.mxu0 %vm181_vm0, %v1305_v27 }
  0x40   : > { %1748 = vmatprep.subr.bf16.mxu0 %v1747_v26 }
  0x41   : > { %1770 = vmatpush3.bf16.msra.mxu1 %v1767_v63  ;;  %v1370_v63 = vld [vmem:[%s1910_s26 + $0xd8] sm:$0xff] }
  0x42   : > { %1772 = vmatprep.subr.bf16.mxu1 %v1771_v8  ;;  %1567 = vmatmul.mubr.msk.f32.gmra.mrb[6].mxu0 %vm181_vm0, %v1306_v35 }
  0x43   : > { %1750 = vmatpush3.bf16.msra.mxu0 %v1747_v26  ;;  %1607 = vmatprep.mubr.msk.f32.mxu0 %vm181_vm0, %v1335_v37 }
  0x44   : > { %1752 = vmatprep.subr.bf16.mxu0 %v1751_v36 }
  0x45   : > { %1774 = vmatpush3.bf16.msra.mxu1 %v1771_v8 }
  0x46   : > { %1792 = vmatprep.subr.bf16.mxu1 %v1791_v14 }
  0x47   : > { %1754 = vmatpush3.bf16.msra.mxu0 %v1751_v36 }
  0x48   : > { %1630 = vmatmul.mubr.msk.f32.vlgmr.msra.gmra.mrb[8].mxu1 %vm181_vm0, %v1352_v18  ;;  %1756 = vmatprep.subr.bf16.mxu0 %v1755_v41 }
  0x49   : > { %1794 = vmatpush3.bf16.msra.mxu1 %v1791_v14  ;;  %1632 = vmatprep.mubr.msk.f32.mxu1 %vm181_vm0, %v1353_v22 }
  0x4a   : > { %1796 = vmatprep.subr.bf16.mxu1 %v1795_v21 }
  0x4b   : > { %1758 = vmatpush3.bf16.msra.mxu0 %v1755_v41 }
  0x4c   : > { %1633 = vmatmul.mubr.msk.f32.gmra.mrb[10].mxu1 %vm181_vm0, %v1354_v28  ;;  %1776 = vmatprep.subr.bf16.mxu0 %v1775_v44 }
  0x4d   : > { %1798 = vmatpush3.bf16.msra.mxu1 %v1795_v21  ;;  %1673 = vmatprep.mubr.msk.f32.mxu1 %vm181_vm0, %v1383_v32 }
  0x4e   : > { %1800 = vmatprep.subr.bf16.mxu1 %v1799_v31  ;;  %1608 = vmatmul.mubr.msk.f32.vlgmr.msra.gmra.mrb[8].mxu0 %vm181_vm0, %v1336_v49 }
  0x4f   : > { %1778 = vmatpush3.bf16.msra.mxu0 %v1775_v44  ;;  %1610 = vmatprep.mubr.msk.f32.mxu0 %vm181_vm0, %v1337_v51 }
  0x50   : > { %1780 = vmatprep.subr.bf16.mxu0 %v1779_v50 }
  0x51   : > { %1802 = vmatpush3.bf16.msra.mxu1 %v1799_v31 }
  0x52   : > { %1804 = vmatprep.subr.bf16.mxu1 %v1803_v40  ;;  %1611 = vmatmul.mubr.msk.f32.gmra.mrb[10].mxu0 %vm181_vm0, %v1338_v55 }
  0x53   : > { %1782 = vmatpush3.bf16.msra.mxu0 %v1779_v50  ;;  %1651 = vmatprep.mubr.msk.f32.mxu0 %vm181_vm0, %v1367_v57 }
  0x54   : > { %1784 = vmatprep.subr.bf16.mxu0 %v1783_v56 }
  0x55   : > { %1806 = vmatpush3.bf16.msra.mxu1 %v1803_v40 }
  0x57   : > { %1786 = vmatpush3.bf16.msra.mxu0 %v1783_v56 }
  0x58   : > { %1674 = vmatmul.mubr.msk.f32.vlgmr.msra.gmra.mrb[12].mxu1 %vm181_vm0, %v1384_v45  ;;  %1788 = vmatprep.subr.bf16.mxu0 %v1787_v60 }
  0x59   : > { %1676 = vmatprep.mubr.msk.f32.mxu1 %vm181_vm0, %v1385_v48 }
  0x5b   : > { %1790 = vmatpush3.bf16.msra.mxu0 %v1787_v60 }
  0x5c   : > { %1677 = vmatmul.mubr.msk.f32.gmra.mrb[14].mxu1 %vm181_vm0, %v1386_v52 }
  0x5e   : > { %1652 = vmatmul.mubr.msk.f32.vlgmr.msra.gmra.mrb[12].mxu0 %vm181_vm0, %v1368_v61 }
  0x5f   : > { %1654 = vmatprep.mubr.msk.f32.mxu0 %vm181_vm0, %v1369_v62 }
  0x62   : > { %1655 = vmatmul.mubr.msk.f32.gmra.mrb[14].mxu0 %vm181_vm0, %v1370_v63 }
  0xfb   : > { %v1543_v0 = vpop.f32.mrb[0].mxu1 }
  0xfc   : > { %1062 = vrot.lane.b32.xlu0 %v1543_v0, %s1856_s27  ;;  %v371_v1 = vpop.f32.mrb[1].mxu1 }
  0xff   : > { %v1546_v2 = vpop.f32.mrb[2].mxu1 }
 0x100   : > { %1060 = vrot.lane.b32.xlu0 %v371_v1, %s1856_s27  ;;  %1066 = vrot.lane.b32.xlu1 %v1546_v2, %s1856_s27  ;;  %v381_v3 = vpop.f32.mrb[3].mxu1 }
 0x101   : > { %v1521_v6 = vpop.f32.mrb[0].mxu0 }
 0x102   : > { %v260_v7 = vpop.f32.mrb[1].mxu0 }
 0x104   : > { %1064 = vrot.lane.b32.xlu1 %v381_v3, %s1856_s27 }
 0x105   : > { %v1524_v10 = vpop.f32.mrb[2].mxu0 }
 0x106   : > { %v270_v11 = vpop.f32.mrb[3].mxu0 }
 0x10b   : > { %v1587_v4 = vpop.f32.mrb[4].mxu1 }
 0x10c   : > { %v593_v5 = vpop.f32.mrb[5].mxu1  ;;  %1078 = vrot.lane.b32.xlu1 %v1587_v4, %s1856_s27 }
 0x10d   : > { %1076 = vrot.lane.b32.xlu0 %v593_v5, %s1856_s27 }
 0x10f   : > { %v1590_v8 = vpop.f32.mrb[6].mxu1 }
 0x110   : > { %v603_v9 = vpop.f32.mrb[7].mxu1  ;;  %1082 = vrot.lane.b32.xlu1 %v1590_v8, %s1856_s27 }
 0x111   : > { %1080 = vrot.lane.b32.xlu0 %v603_v9, %s1856_s27  ;;  %v1565_v14 = vpop.f32.mrb[4].mxu0 }
 0x112   : > { %v482_v15 = vpop.f32.mrb[5].mxu0 }
 0x115   : > { %v1568_v18 = vpop.f32.mrb[6].mxu0 }
 0x116   : > { %v492_v19 = vpop.f32.mrb[7].mxu0 }
 0x11b   : > { %v1631_v12 = vpop.f32.mrb[8].mxu1 }
 0x11c   : > { %v815_v13 = vpop.f32.mrb[9].mxu1  ;;  %1094 = vrot.lane.b32.xlu1 %v1631_v12, %s1856_s27 }
 0x11d   : > { %1092 = vrot.lane.b32.xlu0 %v815_v13, %s1856_s27 }
 0x11f   : > { %v1634_v16 = vpop.f32.mrb[10].mxu1 }
 0x120   : > { %v825_v17 = vpop.f32.mrb[11].mxu1  ;;  %1098 = vrot.lane.b32.xlu1 %v1634_v16, %s1856_s27 }
 0x121   : > { %1096 = vrot.lane.b32.xlu0 %v825_v17, %s1856_s27  ;;  %v1609_v22 = vpop.f32.mrb[8].mxu0 }
 0x122   : > { %v704_v23 = vpop.f32.mrb[9].mxu0 }
 0x125   : > { %v1612_v26 = vpop.f32.mrb[10].mxu0 }
 0x126   : > { %v714_v27 = vpop.f32.mrb[11].mxu0 }
 0x12b   : > { %v1675_v20 = vpop.f32.mrb[12].mxu1 }
 0x12c   : > { %1110 = vrot.lane.b32.xlu1 %v1675_v20, %s1856_s27  ;;  %v1037_v21 = vpop.f32.mrb[13].mxu1 }
 0x12d   : > { %1108 = vrot.lane.b32.xlu0 %v1037_v21, %s1856_s27 }
 0x12f   : > { %v1678_v24 = vpop.f32.mrb[14].mxu1 }
 0x130   : > { %1114 = vrot.lane.b32.xlu1 %v1678_v24, %s1856_s27  ;;  %v1047_v25 = vpop.f32.mrb[15].mxu1 }
 0x131   : > { %1112 = vrot.lane.b32.xlu0 %v1047_v25, %s1856_s27  ;;  %v1653_v28 = vpop.f32.mrb[12].mxu0 }
 0x132   : > { %v926_v29 = vpop.f32.mrb[13].mxu0 }
 0x135   : > { %v1656_v30 = vpop.f32.mrb[14].mxu0 }
 0x136   : > { %v936_v31 = vpop.f32.mrb[15].mxu0 }
 0x16e   : > { %v1063_v32 = vpop.permute.xlu0 %1062 }
 0x16f   : > { %v1121_v33 = vsel %vm181_vm0, %v1521_v6, %v1063_v32 }
 0x170   : > { %1140 = vst [vmem:[%s2058_s30 + $0x20] sm:$0xff] %v1121_v33 }
 0x172   : > { %v1061_v34 = vpop.permute.xlu0 %1060  ;;  %v1067_v35 = vpop.permute.xlu1 %1066 }
 0x173   : > { %v1120_v36 = vsel %vm181_vm0, %v260_v7, %v1061_v34  ;;  %v1123_v37 = vsel %vm181_vm0, %v1524_v10, %v1067_v35 }
 0x174   : > { %1136 = vst [vmem:[%s2058_s30] sm:$0xff] %v1120_v36  ;;  %1148 = vst [vmem:[%s2058_s30 + $0x60] sm:$0xff] %v1123_v37 }
 0x176   : > { %v1065_v38 = vpop.permute.xlu1 %1064 }
 0x177   : > { %v1122_v39 = vsel %vm181_vm0, %v270_v11, %v1065_v38  ;;  %v1182_v4 = vld [vmem:[%s2058_s30 + $0x20] sm:$0xff] (%p1897_p4) }
 0x178   : > { %1144 = vst [vmem:[%s2058_s30 + $0x40] sm:$0xff] %v1122_v39  ;;  %1183 = vst [vmem:[%s1161_s6 + $0x40] sm:$0xff] (%p1897_p4), %v1182_v4 }
 0x17b   : > { %v1174_v0 = vld [vmem:[%s2058_s30] sm:$0xff] (%p1897_p4) }
 0x17c   : > { %1175 = vst [vmem:[%s1161_s6] sm:$0xff] (%p1897_p4), %v1174_v0  ;;  %v1198_v12 = vld [vmem:[%s2058_s30 + $0x60] sm:$0xff] (%p1897_p4) }
 0x17d   : > { %1199 = vst [vmem:[%s1161_s6 + $0xc0] sm:$0xff] (%p1897_p4), %v1198_v12 }
 0x17e   : > { %v1079_v40 = vpop.permute.xlu1 %1078 }
 0x17f   : > { %v1125_v41 = vsel %vm181_vm0, %v1565_v14, %v1079_v40  ;;  %v1077_v42 = vpop.permute.xlu0 %1076  ;;  %v1190_v8 = vld [vmem:[%s2058_s30 + $0x40] sm:$0xff] (%p1897_p4) }
 0x180   : > { %1141 = vst [vmem:[%s2058_s30 + $0x28] sm:$0xff] %v1125_v41  ;;  %v1124_v43 = vsel %vm181_vm0, %v482_v15, %v1077_v42  ;;  %1191 = vst [vmem:[%s1161_s6 + $0x80] sm:$0xff] (%p1897_p4), %v1190_v8 }
 0x181   : > { %1137 = vst [vmem:[%s2058_s30 + $0x8] sm:$0xff] %v1124_v43 }
 0x182   : > { %v1083_v44 = vpop.permute.xlu1 %1082 }
 0x183   : > { %v1127_v45 = vsel %vm181_vm0, %v1568_v18, %v1083_v44  ;;  %v1081_v46 = vpop.permute.xlu0 %1080 }
 0x184   : > { %1149 = vst [vmem:[%s2058_s30 + $0x68] sm:$0xff] %v1127_v45  ;;  %v1126_v47 = vsel %vm181_vm0, %v492_v19, %v1081_v46 }
 0x185   : > { %1145 = vst [vmem:[%s2058_s30 + $0x48] sm:$0xff] %v1126_v47 }
 0x187   : > { %v1184_v5 = vld [vmem:[%s2058_s30 + $0x28] sm:$0xff] (%p1897_p4) }
 0x188   : > { %v1176_v1 = vld [vmem:[%s2058_s30 + $0x8] sm:$0xff] (%p1897_p4)  ;;  %1185 = vst [vmem:[%s1161_s6 + $0x48] sm:$0xff] (%p1897_p4), %v1184_v5 }
 0x189   : > { %1177 = vst [vmem:[%s1161_s6 + $0x8] sm:$0xff] (%p1897_p4), %v1176_v1 }
 0x18b   : > { %v1200_v13 = vld [vmem:[%s2058_s30 + $0x68] sm:$0xff] (%p1897_p4) }
 0x18c   : > { %v1192_v9 = vld [vmem:[%s2058_s30 + $0x48] sm:$0xff] (%p1897_p4)  ;;  %1201 = vst [vmem:[%s1161_s6 + $0xc8] sm:$0xff] (%p1897_p4), %v1200_v13 }
 0x18d   : > { %1193 = vst [vmem:[%s1161_s6 + $0x88] sm:$0xff] (%p1897_p4), %v1192_v9 }
 0x18e   : > { %v1095_v48 = vpop.permute.xlu1 %1094 }
 0x18f   : > { %v1129_v49 = vsel %vm181_vm0, %v1609_v22, %v1095_v48  ;;  %v1093_v50 = vpop.permute.xlu0 %1092 }
 0x190   : > { %1142 = vst [vmem:[%s2058_s30 + $0x30] sm:$0xff] %v1129_v49  ;;  %v1128_v51 = vsel %vm181_vm0, %v704_v23, %v1093_v50 }
 0x191   : > { %1138 = vst [vmem:[%s2058_s30 + $0x10] sm:$0xff] %v1128_v51 }
 0x192   : > { %v1099_v52 = vpop.permute.xlu1 %1098 }
 0x193   : > { %v1131_v53 = vsel %vm181_vm0, %v1612_v26, %v1099_v52  ;;  %v1097_v54 = vpop.permute.xlu0 %1096 }
 0x194   : > { %1150 = vst [vmem:[%s2058_s30 + $0x70] sm:$0xff] %v1131_v53  ;;  %v1130_v55 = vsel %vm181_vm0, %v714_v27, %v1097_v54 }
 0x195   : > { %1146 = vst [vmem:[%s2058_s30 + $0x50] sm:$0xff] %v1130_v55 }
 0x197   : > { %v1186_v6 = vld [vmem:[%s2058_s30 + $0x30] sm:$0xff] (%p1897_p4) }
 0x198   : > { %v1178_v2 = vld [vmem:[%s2058_s30 + $0x10] sm:$0xff] (%p1897_p4)  ;;  %1187 = vst [vmem:[%s1161_s6 + $0x50] sm:$0xff] (%p1897_p4), %v1186_v6 }
 0x199   : > { %1179 = vst [vmem:[%s1161_s6 + $0x10] sm:$0xff] (%p1897_p4), %v1178_v2 }
 0x19b   : > { %v1202_v14 = vld [vmem:[%s2058_s30 + $0x70] sm:$0xff] (%p1897_p4) }
 0x19c   : > { %v1194_v10 = vld [vmem:[%s2058_s30 + $0x50] sm:$0xff] (%p1897_p4)  ;;  %1203 = vst [vmem:[%s1161_s6 + $0xd0] sm:$0xff] (%p1897_p4), %v1202_v14 }
 0x19d   : > { %1195 = vst [vmem:[%s1161_s6 + $0x90] sm:$0xff] (%p1897_p4), %v1194_v10 }
 0x19e   : > { %v1111_v56 = vpop.permute.xlu1 %1110 }
 0x19f   : > { %v1133_v57 = vsel %vm181_vm0, %v1653_v28, %v1111_v56  ;;  %v1109_v58 = vpop.permute.xlu0 %1108  ;;  %1158 = sbr.rel (!%p1897_p4) target bundleno = 430 (0x1ae), region = 32 }
 0x1a0   : > { %1143 = vst [vmem:[%s2058_s30 + $0x38] sm:$0xff] %v1133_v57  ;;  %v1132_v59 = vsel %vm181_vm0, %v926_v29, %v1109_v58 }
 0x1a1   : > { %1139 = vst [vmem:[%s2058_s30 + $0x18] sm:$0xff] %v1132_v59 }
 0x1a2   : > { %v1115_v60 = vpop.permute.xlu1 %1114 }
 0x1a3   : > { %v1135_v61 = vsel %vm181_vm0, %v1656_v30, %v1115_v60  ;;  %v1113_v62 = vpop.permute.xlu0 %1112 }
 0x1a4   : > { %1151 = vst [vmem:[%s2058_s30 + $0x78] sm:$0xff] %v1135_v61  ;;  %v1134_v63 = vsel %vm181_vm0, %v936_v31, %v1113_v62 }
 0x1a5   : > { %1147 = vst [vmem:[%s2058_s30 + $0x58] sm:$0xff] %v1134_v63 }
 0x1a7   : > { %v1188_v7 = vld [vmem:[%s2058_s30 + $0x38] sm:$0xff] }
 0x1a8   : > { %v1180_v3 = vld [vmem:[%s2058_s30 + $0x18] sm:$0xff]  ;;  %1189 = vst [vmem:[%s1161_s6 + $0x58] sm:$0xff] %v1188_v7 }
 0x1a9   : > { %1181 = vst [vmem:[%s1161_s6 + $0x18] sm:$0xff] %v1180_v3 }
 0x1ab   : > { %v1204_v15 = vld [vmem:[%s2058_s30 + $0x78] sm:$0xff] }
 0x1ac   : > { %v1196_v11 = vld [vmem:[%s2058_s30 + $0x58] sm:$0xff]  ;;  %1205 = vst [vmem:[%s1161_s6 + $0xd8] sm:$0xff] %v1204_v15 }
 0x1ad   : > { %1197 = vst [vmem:[%s1161_s6 + $0x98] sm:$0xff] %v1196_v11 }
 0x1ae PF: > { %p9_p8 = scmp.ge.s32.totalorder %s1887_s13, 4   ;;  %s2127_s9 = smov %s1850_s10 }
 0x1af   : > { %s2128_s10 = smov %s1895_s16  ;;  %s2129_s11 = smov %s1887_s13 }
 0x1b0   :  { %11 = sbr.rel (!%p9_p8) target bundleno = 2 (0x2), region = 98 }

// kernel: reverse.18
= control target key start
LH: loop header
LB: loop body
LE: loop exit
PB: predicated region body
PF: predicated region fallthrough
CT: control target
= control target key end

     0   :  { %v167_v12 = vlaneseq  ;;  %v160_v34 = vld [vmem:[#allocation0 + $0x7] ss:$-1 sm:$0xff]  ;;  %v174_v37 = vld [vmem:[#allocation0 + $0x17] ss:$-1 sm:$0xff]  ;;  %s1132_s0 = inlined_call_operand.vmem [shape: f32[2,16,32,7], index: 0, kind: input, shape index: {}]   ;;  %s1133_s1 = inlined_call_operand.vmem [shape: f32[2,16,32,7], index: 1, kind: output, shape index: {}]  }
   0x1   :  { %v92_v0 = vld [vmem:[%s1132_s0] sm:$0xff]  ;;  %v94_v1 = vld [vmem:[%s1132_s0 + $0x8] sm:$0xff]  ;;  %v96_v2 = vld [vmem:[%s1132_s0 + $0x10] sm:$0xff]  ;;  %v161_v35 = vrot.slane %v160_v34, 1  ;;  %v175_v39 = vrot.slane %v174_v37, 1 }
   0x2   :  { %93 = vst [vmem:[#allocation0 + $0x8] sm:$0xff] %v92_v0  ;;  %95 = vst [vmem:[#allocation0 + $0x18] sm:$0xff] %v94_v1  ;;  %v98_v3 = vld [vmem:[%s1132_s0 + $0x18] sm:$0xff]  ;;  %v100_v4 = vld [vmem:[%s1132_s0 + $0x20] sm:$0xff]  ;;  %v945_v25 = vshrl.u32 %v167_v12, 7 }
   0x3   :  { %97 = vst [vmem:[#allocation0 + $0x28] sm:$0xff] %v96_v2  ;;  %v102_v5 = vld [vmem:[%s1132_s0 + $0x28] sm:$0xff]  ;;  %99 = vst [vmem:[#allocation0 + $0x38] sm:$0xff] %v98_v3  ;;  %v104_v6 = vld [vmem:[%s1132_s0 + $0x30] sm:$0xff] }
   0x4   :  { %101 = vst [vmem:[#allocation0 + $0x48] sm:$0xff] %v100_v4  ;;  %103 = vst [vmem:[#allocation0 + $0x58] sm:$0xff] %v102_v5  ;;  %v106_v7 = vld [vmem:[%s1132_s0 + $0x38] sm:$0xff]  ;;  %v108_v8 = vld [vmem:[%s1132_s0 + $0x40] sm:$0xff]  ;;  %vm169_vm0 = vcmp.lt.s32.totalorder %v945_v25, 7 }
   0x5   :  { %105 = vst [vmem:[#allocation0 + $0x68] sm:$0xff] %v104_v6  ;;  %107 = vst [vmem:[#allocation0 + $0x78] sm:$0xff] %v106_v7  ;;  %v110_v9 = vld [vmem:[%s1132_s0 + $0x48] sm:$0xff]  ;;  %v112_v10 = vld [vmem:[%s1132_s0 + $0x50] sm:$0xff] }
   0x6   :  { %109 = vst [vmem:[#allocation0 + $0x88] sm:$0xff] %v108_v8  ;;  %v114_v11 = vld [vmem:[%s1132_s0 + $0x58] sm:$0xff]  ;;  %111 = vst [vmem:[#allocation0 + $0x98] sm:$0xff] %v110_v9  ;;  %v116_v13 = vld [vmem:[%s1132_s0 + $0x60] sm:$0xff] }
   0x7   :  { %113 = vst [vmem:[#allocation0 + $0xa8] sm:$0xff] %v112_v10  ;;  %115 = vst [vmem:[#allocation0 + $0xb8] sm:$0xff] %v114_v11  ;;  %v118_v14 = vld [vmem:[%s1132_s0 + $0x68] sm:$0xff]  ;;  %v120_v15 = vld [vmem:[%s1132_s0 + $0x70] sm:$0xff] }
   0x8   :  { %117 = vst [vmem:[#allocation0 + $0xc8] sm:$0xff] %v116_v13  ;;  %119 = vst [vmem:[#allocation0 + $0xd8] sm:$0xff] %v118_v14  ;;  %v122_v16 = vld [vmem:[%s1132_s0 + $0x78] sm:$0xff]  ;;  %v124_v17 = vld [vmem:[%s1132_s0 + $0x80] sm:$0xff] }
   0x9   :  { %121 = vst [vmem:[#allocation0 + $0xe8] sm:$0xff] %v120_v15  ;;  %v126_v18 = vld [vmem:[%s1132_s0 + $0x88] sm:$0xff]  ;;  %123 = vst [vmem:[#allocation0 + $0xf8] sm:$0xff] %v122_v16  ;;  %v128_v19 = vld [vmem:[%s1132_s0 + $0x90] sm:$0xff] }
   0xa   :  { %125 = vst [vmem:[#allocation0 + $0x108] sm:$0xff] %v124_v17  ;;  %127 = vst [vmem:[#allocation0 + $0x118] sm:$0xff] %v126_v18  ;;  %v130_v20 = vld [vmem:[%s1132_s0 + $0x98] sm:$0xff]  ;;  %v132_v21 = vld [vmem:[%s1132_s0 + $0xa0] sm:$0xff] }
   0xb   :  { %129 = vst [vmem:[#allocation0 + $0x128] sm:$0xff] %v128_v19  ;;  %131 = vst [vmem:[#allocation0 + $0x138] sm:$0xff] %v130_v20  ;;  %v134_v22 = vld [vmem:[%s1132_s0 + $0xa8] sm:$0xff]  ;;  %v136_v23 = vld [vmem:[%s1132_s0 + $0xb0] sm:$0xff] }
   0xc   :  { %133 = vst [vmem:[#allocation0 + $0x148] sm:$0xff] %v132_v21  ;;  %v138_v24 = vld [vmem:[%s1132_s0 + $0xb8] sm:$0xff]  ;;  %135 = vst [vmem:[#allocation0 + $0x158] sm:$0xff] %v134_v22  ;;  %v140_v26 = vld [vmem:[%s1132_s0 + $0xc0] sm:$0xff] }
   0xd   :  { %137 = vst [vmem:[#allocation0 + $0x168] sm:$0xff] %v136_v23  ;;  %139 = vst [vmem:[#allocation0 + $0x178] sm:$0xff] %v138_v24  ;;  %v142_v27 = vld [vmem:[%s1132_s0 + $0xc8] sm:$0xff]  ;;  %v144_v28 = vld [vmem:[%s1132_s0 + $0xd0] sm:$0xff] }
   0xe   :  { %141 = vst [vmem:[#allocation0 + $0x188] sm:$0xff] %v140_v26  ;;  %143 = vst [vmem:[#allocation0 + $0x198] sm:$0xff] %v142_v27  ;;  %v146_v29 = vld [vmem:[%s1132_s0 + $0xd8] sm:$0xff]  ;;  %v148_v30 = vld [vmem:[%s1132_s0 + $0xe0] sm:$0xff] }
   0xf   :  { %145 = vst [vmem:[#allocation0 + $0x1a8] sm:$0xff] %v144_v28  ;;  %v150_v31 = vld [vmem:[%s1132_s0 + $0xe8] sm:$0xff]  ;;  %147 = vst [vmem:[#allocation0 + $0x1b8] sm:$0xff] %v146_v29  ;;  %v152_v32 = vld [vmem:[%s1132_s0 + $0xf0] sm:$0xff] }
  0x10   :  { %149 = vst [vmem:[#allocation0 + $0x1c8] sm:$0xff] %v148_v30  ;;  %151 = vst [vmem:[#allocation0 + $0x1d8] sm:$0xff] %v150_v31  ;;  %v154_v33 = vld [vmem:[%s1132_s0 + $0xf8] sm:$0xff]  ;;  %v165_v36 = vld [vmem:[#allocation0 + $0xf] ss:$-1 sm:$0xff] }
  0x11   :  { %153 = vst [vmem:[#allocation0 + $0x1e8] sm:$0xff] %v152_v32  ;;  %155 = vst [vmem:[#allocation0 + $0x1f8] sm:$0xff] %v154_v33  ;;  %v166_v38 = vrot.slane %v165_v36, 1  ;;  %v179_v40 = vld [vmem:[#allocation0 + $0x1f] ss:$-1 sm:$0xff] }
  0x12   :  { %v188_v41 = vld [vmem:[#allocation0 + $0x27] ss:$-1 sm:$0xff]  ;;  %162 = vst [vmem:[#allocation1] sm:$0xff] %v161_v35  ;;  %v180_v42 = vrot.slane %v179_v40, 1  ;;  %v193_v44 = vld [vmem:[#allocation0 + $0x2f] ss:$-1 sm:$0xff] }
  0x13   :  { %v189_v43 = vrot.slane %v188_v41, 1  ;;  %v202_v45 = vld [vmem:[#allocation0 + $0x37] ss:$-1 sm:$0xff]  ;;  %170 = vst.msk [vmem:[#allocation1] sm:$0xff] %vm169_vm0, %v166_v38  ;;  %176 = vst [vmem:[#allocation1 + $0x8] sm:$0xff] %v175_v39  ;;  %v194_v46 = vrot.slane %v193_v44, 1 }
  0x14   :  { %v203_v47 = vrot.slane %v202_v45, 1  ;;  %v207_v48 = vld [vmem:[#allocation0 + $0x3f] ss:$-1 sm:$0xff]  ;;  %v216_v49 = vld [vmem:[#allocation0 + $0x47] ss:$-1 sm:$0xff]  ;;  %184 = vst.msk [vmem:[#allocation1 + $0x8] sm:$0xff] %vm169_vm0, %v180_v42 }
  0x15   :  { %190 = vst [vmem:[#allocation1 + $0x10] sm:$0xff] %v189_v43  ;;  %v208_v50 = vrot.slane %v207_v48, 1  ;;  %v217_v51 = vrot.slane %v216_v49, 1  ;;  %v221_v52 = vld [vmem:[#allocation0 + $0x4f] ss:$-1 sm:$0xff] }
  0x16   :  { %v230_v53 = vld [vmem:[#allocation0 + $0x57] ss:$-1 sm:$0xff]  ;;  %198 = vst.msk [vmem:[#allocation1 + $0x10] sm:$0xff] %vm169_vm0, %v194_v46  ;;  %204 = vst [vmem:[#allocation1 + $0x18] sm:$0xff] %v203_v47  ;;  %v222_v54 = vrot.slane %v221_v52, 1 }
  0x17   :  { %v231_v55 = vrot.slane %v230_v53, 1  ;;  %v235_v56 = vld [vmem:[#allocation0 + $0x5f] ss:$-1 sm:$0xff]  ;;  %v244_v57 = vld [vmem:[#allocation0 + $0x67] ss:$-1 sm:$0xff]  ;;  %212 = vst.msk [vmem:[#allocation1 + $0x18] sm:$0xff] %vm169_vm0, %v208_v50 }
  0x18   :  { %218 = vst [vmem:[#allocation1 + $0x20] sm:$0xff] %v217_v51  ;;  %v236_v58 = vrot.slane %v235_v56, 1  ;;  %v245_v59 = vrot.slane %v244_v57, 1  ;;  %v249_v60 = vld [vmem:[#allocation0 + $0x6f] ss:$-1 sm:$0xff] }
  0x19   :  { %v258_v61 = vld [vmem:[#allocation0 + $0x77] ss:$-1 sm:$0xff]  ;;  %226 = vst.msk [vmem:[#allocation1 + $0x20] sm:$0xff] %vm169_vm0, %v222_v54  ;;  %232 = vst [vmem:[#allocation1 + $0x28] sm:$0xff] %v231_v55  ;;  %v250_v62 = vrot.slane %v249_v60, 1 }
  0x1a   :  { %v259_v63 = vrot.slane %v258_v61, 1  ;;  %v263_v0 = vld [vmem:[#allocation0 + $0x7f] ss:$-1 sm:$0xff]  ;;  %v272_v1 = vld [vmem:[#allocation0 + $0x87] ss:$-1 sm:$0xff]  ;;  %240 = vst.msk [vmem:[#allocation1 + $0x28] sm:$0xff] %vm169_vm0, %v236_v58 }
  0x1b   :  { %246 = vst [vmem:[#allocation1 + $0x30] sm:$0xff] %v245_v59  ;;  %v264_v2 = vrot.slane %v263_v0, 1  ;;  %v273_v3 = vrot.slane %v272_v1, 1  ;;  %v277_v4 = vld [vmem:[#allocation0 + $0x8f] ss:$-1 sm:$0xff] }
  0x1c   :  { %v286_v5 = vld [vmem:[#allocation0 + $0x97] ss:$-1 sm:$0xff]  ;;  %254 = vst.msk [vmem:[#allocation1 + $0x30] sm:$0xff] %vm169_vm0, %v250_v62  ;;  %260 = vst [vmem:[#allocation1 + $0x38] sm:$0xff] %v259_v63  ;;  %v278_v6 = vrot.slane %v277_v4, 1 }
  0x1d   :  { %v287_v7 = vrot.slane %v286_v5, 1  ;;  %v291_v8 = vld [vmem:[#allocation0 + $0x9f] ss:$-1 sm:$0xff]  ;;  %v300_v9 = vld [vmem:[#allocation0 + $0xa7] ss:$-1 sm:$0xff]  ;;  %268 = vst.msk [vmem:[#allocation1 + $0x38] sm:$0xff] %vm169_vm0, %v264_v2 }
  0x1e   :  { %274 = vst [vmem:[#allocation1 + $0x40] sm:$0xff] %v273_v3  ;;  %v292_v10 = vrot.slane %v291_v8, 1  ;;  %v301_v11 = vrot.slane %v300_v9, 1  ;;  %v305_v12 = vld [vmem:[#allocation0 + $0xaf] ss:$-1 sm:$0xff] }
  0x1f   :  { %v314_v13 = vld [vmem:[#allocation0 + $0xb7] ss:$-1 sm:$0xff]  ;;  %282 = vst.msk [vmem:[#allocation1 + $0x40] sm:$0xff] %vm169_vm0, %v278_v6  ;;  %288 = vst [vmem:[#allocation1 + $0x48] sm:$0xff] %v287_v7  ;;  %v306_v14 = vrot.slane %v305_v12, 1 }
  0x20   :  { %v315_v15 = vrot.slane %v314_v13, 1  ;;  %v319_v16 = vld [vmem:[#allocation0 + $0xbf] ss:$-1 sm:$0xff]  ;;  %v328_v17 = vld [vmem:[#allocation0 + $0xc7] ss:$-1 sm:$0xff]  ;;  %296 = vst.msk [vmem:[#allocation1 + $0x48] sm:$0xff] %vm169_vm0, %v292_v10 }
  0x21   :  { %302 = vst [vmem:[#allocation1 + $0x50] sm:$0xff] %v301_v11  ;;  %v320_v18 = vrot.slane %v319_v16, 1  ;;  %v329_v19 = vrot.slane %v328_v17, 1  ;;  %v333_v20 = vld [vmem:[#allocation0 + $0xcf] ss:$-1 sm:$0xff] }
  0x22   :  { %v342_v21 = vld [vmem:[#allocation0 + $0xd7] ss:$-1 sm:$0xff]  ;;  %310 = vst.msk [vmem:[#allocation1 + $0x50] sm:$0xff] %vm169_vm0, %v306_v14  ;;  %316 = vst [vmem:[#allocation1 + $0x58] sm:$0xff] %v315_v15  ;;  %v334_v22 = vrot.slane %v333_v20, 1 }
  0x23   :  { %v343_v23 = vrot.slane %v342_v21, 1  ;;  %v347_v24 = vld [vmem:[#allocation0 + $0xdf] ss:$-1 sm:$0xff]  ;;  %v356_v26 = vld [vmem:[#allocation0 + $0xe7] ss:$-1 sm:$0xff]  ;;  %324 = vst.msk [vmem:[#allocation1 + $0x58] sm:$0xff] %vm169_vm0, %v320_v18 }
  0x24   :  { %330 = vst [vmem:[#allocation1 + $0x60] sm:$0xff] %v329_v19  ;;  %v348_v27 = vrot.slane %v347_v24, 1  ;;  %v357_v28 = vrot.slane %v356_v26, 1  ;;  %v361_v29 = vld [vmem:[#allocation0 + $0xef] ss:$-1 sm:$0xff] }
  0x25   :  { %v370_v30 = vld [vmem:[#allocation0 + $0xf7] ss:$-1 sm:$0xff]  ;;  %338 = vst.msk [vmem:[#allocation1 + $0x60] sm:$0xff] %vm169_vm0, %v334_v22  ;;  %344 = vst [vmem:[#allocation1 + $0x68] sm:$0xff] %v343_v23  ;;  %v362_v31 = vrot.slane %v361_v29, 1 }
  0x26   :  { %v371_v32 = vrot.slane %v370_v30, 1  ;;  %v375_v33 = vld [vmem:[#allocation0 + $0xff] ss:$-1 sm:$0xff]  ;;  %v384_v34 = vld [vmem:[#allocation0 + $0x107] ss:$-1 sm:$0xff]  ;;  %352 = vst.msk [vmem:[#allocation1 + $0x68] sm:$0xff] %vm169_vm0, %v348_v27 }
  0x27   :  { %358 = vst [vmem:[#allocation1 + $0x70] sm:$0xff] %v357_v28  ;;  %v376_v35 = vrot.slane %v375_v33, 1  ;;  %v385_v36 = vrot.slane %v384_v34, 1  ;;  %v389_v37 = vld [vmem:[#allocation0 + $0x10f] ss:$-1 sm:$0xff]  ;;  %v710_v25 = vld [vmem:[#allocation1 + $0x40] sm:$0xff] }
  0x28   :  { %v398_v38 = vld [vmem:[#allocation0 + $0x117] ss:$-1 sm:$0xff]  ;;  %366 = vst.msk [vmem:[#allocation1 + $0x70] sm:$0xff] %vm169_vm0, %v362_v31  ;;  %372 = vst [vmem:[#allocation1 + $0x78] sm:$0xff] %v371_v32  ;;  %v390_v39 = vrot.slane %v389_v37, 1 }
  0x29   :  { %v399_v40 = vrot.slane %v398_v38, 1  ;;  %v403_v41 = vld [vmem:[#allocation0 + $0x11f] ss:$-1 sm:$0xff]  ;;  %v412_v42 = vld [vmem:[#allocation0 + $0x127] ss:$-1 sm:$0xff]  ;;  %380 = vst.msk [vmem:[#allocation1 + $0x78] sm:$0xff] %vm169_vm0, %v376_v35 }
  0x2a   :  { %386 = vst [vmem:[#allocation1 + $0x80] sm:$0xff] %v385_v36  ;;  %v404_v43 = vrot.slane %v403_v41, 1  ;;  %v413_v44 = vrot.slane %v412_v42, 1  ;;  %v417_v45 = vld [vmem:[#allocation0 + $0x12f] ss:$-1 sm:$0xff]  ;;  %v694_v35 = vld [vmem:[#allocation1] sm:$0xff] }
  0x2b   :  { %v426_v46 = vld [vmem:[#allocation0 + $0x137] ss:$-1 sm:$0xff]  ;;  %394 = vst.msk [vmem:[#allocation1 + $0x80] sm:$0xff] %vm169_vm0, %v390_v39  ;;  %400 = vst [vmem:[#allocation1 + $0x88] sm:$0xff] %v399_v40  ;;  %v418_v47 = vrot.slane %v417_v45, 1  ;;  %v696_v36 = vld [vmem:[#allocation1 + $0x8] sm:$0xff] }
  0x2c   :  { %v427_v48 = vrot.slane %v426_v46, 1  ;;  %v431_v49 = vld [vmem:[#allocation0 + $0x13f] ss:$-1 sm:$0xff]  ;;  %v440_v50 = vld [vmem:[#allocation0 + $0x147] ss:$-1 sm:$0xff]  ;;  %408 = vst.msk [vmem:[#allocation1 + $0x88] sm:$0xff] %vm169_vm0, %v404_v43  ;;  %695 = vst [vmem:[%s1133_s1] sm:$0xff] %v694_v35 }
  0x2d   :  { %414 = vst [vmem:[#allocation1 + $0x90] sm:$0xff] %v413_v44  ;;  %v432_v51 = vrot.slane %v431_v49, 1  ;;  %v441_v52 = vrot.slane %v440_v50, 1  ;;  %v445_v53 = vld [vmem:[#allocation0 + $0x14f] ss:$-1 sm:$0xff]  ;;  %697 = vst [vmem:[%s1133_s1 + $0x8] sm:$0xff] %v696_v36 }
  0x2e   :  { %v454_v54 = vld [vmem:[#allocation0 + $0x157] ss:$-1 sm:$0xff]  ;;  %422 = vst.msk [vmem:[#allocation1 + $0x90] sm:$0xff] %vm169_vm0, %v418_v47  ;;  %428 = vst [vmem:[#allocation1 + $0x98] sm:$0xff] %v427_v48  ;;  %v446_v55 = vrot.slane %v445_v53, 1  ;;  %v700_v39 = vld [vmem:[#allocation1 + $0x18] sm:$0xff] }
  0x2f   :  { %v455_v56 = vrot.slane %v454_v54, 1  ;;  %v459_v57 = vld [vmem:[#allocation0 + $0x15f] ss:$-1 sm:$0xff]  ;;  %v468_v58 = vld [vmem:[#allocation0 + $0x167] ss:$-1 sm:$0xff]  ;;  %436 = vst.msk [vmem:[#allocation1 + $0x98] sm:$0xff] %vm169_vm0, %v432_v51 }
  0x30   :  { %442 = vst [vmem:[#allocation1 + $0xa0] sm:$0xff] %v441_v52  ;;  %v460_v59 = vrot.slane %v459_v57, 1  ;;  %v469_v60 = vrot.slane %v468_v58, 1  ;;  %v473_v61 = vld [vmem:[#allocation0 + $0x16f] ss:$-1 sm:$0xff]  ;;  %v698_v38 = vld [vmem:[#allocation1 + $0x10] sm:$0xff] }
  0x31   :  { %v482_v62 = vld [vmem:[#allocation0 + $0x177] ss:$-1 sm:$0xff]  ;;  %450 = vst.msk [vmem:[#allocation1 + $0xa0] sm:$0xff] %vm169_vm0, %v446_v55  ;;  %456 = vst [vmem:[#allocation1 + $0xa8] sm:$0xff] %v455_v56  ;;  %v474_v63 = vrot.slane %v473_v61, 1  ;;  %v702_v40 = vld [vmem:[#allocation1 + $0x20] sm:$0xff] }
  0x32   :  { %v483_v0 = vrot.slane %v482_v62, 1  ;;  %v487_v1 = vld [vmem:[#allocation0 + $0x17f] ss:$-1 sm:$0xff]  ;;  %v496_v2 = vld [vmem:[#allocation0 + $0x187] ss:$-1 sm:$0xff]  ;;  %464 = vst.msk [vmem:[#allocation1 + $0xa8] sm:$0xff] %vm169_vm0, %v460_v59 }
  0x33   :  { %470 = vst [vmem:[#allocation1 + $0xb0] sm:$0xff] %v469_v60  ;;  %v488_v3 = vrot.slane %v487_v1, 1  ;;  %v497_v4 = vrot.slane %v496_v2, 1  ;;  %v501_v5 = vld [vmem:[#allocation0 + $0x18f] ss:$-1 sm:$0xff]  ;;  %699 = vst [vmem:[%s1133_s1 + $0x10] sm:$0xff] %v698_v38 }
  0x34   :  { %v510_v6 = vld [vmem:[#allocation0 + $0x197] ss:$-1 sm:$0xff]  ;;  %478 = vst.msk [vmem:[#allocation1 + $0xb0] sm:$0xff] %vm169_vm0, %v474_v63  ;;  %484 = vst [vmem:[#allocation1 + $0xb8] sm:$0xff] %v483_v0  ;;  %v502_v7 = vrot.slane %v501_v5, 1  ;;  %v704_v41 = vld [vmem:[#allocation1 + $0x28] sm:$0xff] }
  0x35   :  { %v511_v8 = vrot.slane %v510_v6, 1  ;;  %v515_v9 = vld [vmem:[#allocation0 + $0x19f] ss:$-1 sm:$0xff]  ;;  %v524_v10 = vld [vmem:[#allocation0 + $0x1a7] ss:$-1 sm:$0xff]  ;;  %492 = vst.msk [vmem:[#allocation1 + $0xb8] sm:$0xff] %vm169_vm0, %v488_v3 }
  0x36   :  { %498 = vst [vmem:[#allocation1 + $0xc0] sm:$0xff] %v497_v4  ;;  %v516_v11 = vrot.slane %v515_v9, 1  ;;  %v525_v12 = vrot.slane %v524_v10, 1  ;;  %v529_v13 = vld [vmem:[#allocation0 + $0x1af] ss:$-1 sm:$0xff]  ;;  %701 = vst [vmem:[%s1133_s1 + $0x18] sm:$0xff] %v700_v39 }
  0x37   :  { %v538_v14 = vld [vmem:[#allocation0 + $0x1b7] ss:$-1 sm:$0xff]  ;;  %506 = vst.msk [vmem:[#allocation1 + $0xc0] sm:$0xff] %vm169_vm0, %v502_v7  ;;  %512 = vst [vmem:[#allocation1 + $0xc8] sm:$0xff] %v511_v8  ;;  %v530_v15 = vrot.slane %v529_v13, 1  ;;  %v708_v43 = vld [vmem:[#allocation1 + $0x38] sm:$0xff] }
  0x38   :  { %v539_v16 = vrot.slane %v538_v14, 1  ;;  %v543_v17 = vld [vmem:[#allocation0 + $0x1bf] ss:$-1 sm:$0xff]  ;;  %v552_v18 = vld [vmem:[#allocation0 + $0x1c7] ss:$-1 sm:$0xff]  ;;  %520 = vst.msk [vmem:[#allocation1 + $0xc8] sm:$0xff] %vm169_vm0, %v516_v11 }
  0x39   :  { %526 = vst [vmem:[#allocation1 + $0xd0] sm:$0xff] %v525_v12  ;;  %v544_v19 = vrot.slane %v543_v17, 1  ;;  %v553_v20 = vrot.slane %v552_v18, 1  ;;  %v557_v21 = vld [vmem:[#allocation0 + $0x1cf] ss:$-1 sm:$0xff]  ;;  %703 = vst [vmem:[%s1133_s1 + $0x20] sm:$0xff] %v702_v40 }
  0x3a   :  { %v566_v22 = vld [vmem:[#allocation0 + $0x1d7] ss:$-1 sm:$0xff]  ;;  %534 = vst.msk [vmem:[#allocation1 + $0xd0] sm:$0xff] %vm169_vm0, %v530_v15  ;;  %540 = vst [vmem:[#allocation1 + $0xd8] sm:$0xff] %v539_v16  ;;  %v558_v23 = vrot.slane %v557_v21, 1  ;;  %v712_v44 = vld [vmem:[#allocation1 + $0x48] sm:$0xff] }
  0x3b   :  { %v567_v24 = vrot.slane %v566_v22, 1  ;;  %v571_v26 = vld [vmem:[#allocation0 + $0x1df] ss:$-1 sm:$0xff]  ;;  %v580_v27 = vld [vmem:[#allocation0 + $0x1e7] ss:$-1 sm:$0xff]  ;;  %548 = vst.msk [vmem:[#allocation1 + $0xd8] sm:$0xff] %vm169_vm0, %v544_v19 }
  0x3c   :  { %554 = vst [vmem:[#allocation1 + $0xe0] sm:$0xff] %v553_v20  ;;  %v572_v28 = vrot.slane %v571_v26, 1  ;;  %v581_v29 = vrot.slane %v580_v27, 1  ;;  %v585_v30 = vld [vmem:[#allocation0 + $0x1ef] ss:$-1 sm:$0xff]  ;;  %v706_v42 = vld [vmem:[#allocation1 + $0x30] sm:$0xff] }
  0x3d   :  { %v594_v31 = vld [vmem:[#allocation0 + $0x1f7] ss:$-1 sm:$0xff]  ;;  %562 = vst.msk [vmem:[#allocation1 + $0xe0] sm:$0xff] %vm169_vm0, %v558_v23  ;;  %568 = vst [vmem:[#allocation1 + $0xe8] sm:$0xff] %v567_v24  ;;  %v586_v32 = vrot.slane %v585_v30, 1  ;;  %v716_v46 = vld [vmem:[#allocation1 + $0x58] sm:$0xff] }
  0x3e   :  { %v595_v33 = vrot.slane %v594_v31, 1  ;;  %v599_v34 = vld [vmem:[#allocation0 + $0x1ff] ss:$-1 sm:$0xff]  ;;  %576 = vst.msk [vmem:[#allocation1 + $0xe8] sm:$0xff] %vm169_vm0, %v572_v28  ;;  %582 = vst [vmem:[#allocation1 + $0xf0] sm:$0xff] %v581_v29  ;;  %v714_v45 = vld [vmem:[#allocation1 + $0x50] sm:$0xff] }
  0x3f   :  { %v600_v37 = vrot.slane %v599_v34, 1  ;;  %590 = vst.msk [vmem:[#allocation1 + $0xf0] sm:$0xff] %vm169_vm0, %v586_v32  ;;  %705 = vst [vmem:[%s1133_s1 + $0x28] sm:$0xff] %v704_v41  ;;  %v718_v47 = vld [vmem:[#allocation1 + $0x60] sm:$0xff]  ;;  %v720_v48 = vld [vmem:[#allocation1 + $0x68] sm:$0xff] }
  0x40   :  { %596 = vst [vmem:[#allocation1 + $0xf8] sm:$0xff] %v595_v33  ;;  %707 = vst [vmem:[%s1133_s1 + $0x30] sm:$0xff] %v706_v42  ;;  %v722_v49 = vld [vmem:[#allocation1 + $0x70] sm:$0xff]  ;;  %v724_v50 = vld [vmem:[#allocation1 + $0x78] sm:$0xff] }
  0x41   :  { %604 = vst.msk [vmem:[#allocation1 + $0xf8] sm:$0xff] %vm169_vm0, %v600_v37  ;;  %709 = vst [vmem:[%s1133_s1 + $0x38] sm:$0xff] %v708_v43  ;;  %v726_v51 = vld [vmem:[#allocation1 + $0x80] sm:$0xff]  ;;  %v728_v52 = vld [vmem:[#allocation1 + $0x88] sm:$0xff] }
  0x42   :  { %711 = vst [vmem:[%s1133_s1 + $0x40] sm:$0xff] %v710_v25  ;;  %713 = vst [vmem:[%s1133_s1 + $0x48] sm:$0xff] %v712_v44  ;;  %v730_v53 = vld [vmem:[#allocation1 + $0x90] sm:$0xff]  ;;  %v732_v54 = vld [vmem:[#allocation1 + $0x98] sm:$0xff] }
  0x43   :  { %715 = vst [vmem:[%s1133_s1 + $0x50] sm:$0xff] %v714_v45  ;;  %717 = vst [vmem:[%s1133_s1 + $0x58] sm:$0xff] %v716_v46  ;;  %v734_v55 = vld [vmem:[#allocation1 + $0xa0] sm:$0xff]  ;;  %v736_v56 = vld [vmem:[#allocation1 + $0xa8] sm:$0xff] }
  0x44   :  { %719 = vst [vmem:[%s1133_s1 + $0x60] sm:$0xff] %v718_v47  ;;  %721 = vst [vmem:[%s1133_s1 + $0x68] sm:$0xff] %v720_v48  ;;  %v738_v57 = vld [vmem:[#allocation1 + $0xb0] sm:$0xff]  ;;  %v740_v58 = vld [vmem:[#allocation1 + $0xb8] sm:$0xff] }
  0x45   :  { %723 = vst [vmem:[%s1133_s1 + $0x70] sm:$0xff] %v722_v49  ;;  %725 = vst [vmem:[%s1133_s1 + $0x78] sm:$0xff] %v724_v50  ;;  %v742_v59 = vld [vmem:[#allocation1 + $0xc0] sm:$0xff]  ;;  %v744_v60 = vld [vmem:[#allocation1 + $0xc8] sm:$0xff] }
  0x46   :  { %727 = vst [vmem:[%s1133_s1 + $0x80] sm:$0xff] %v726_v51  ;;  %729 = vst [vmem:[%s1133_s1 + $0x88] sm:$0xff] %v728_v52  ;;  %v746_v61 = vld [vmem:[#allocation1 + $0xd0] sm:$0xff]  ;;  %v748_v62 = vld [vmem:[#allocation1 + $0xd8] sm:$0xff] }
  0x47   :  { %731 = vst [vmem:[%s1133_s1 + $0x90] sm:$0xff] %v730_v53  ;;  %733 = vst [vmem:[%s1133_s1 + $0x98] sm:$0xff] %v732_v54  ;;  %v750_v63 = vld [vmem:[#allocation1 + $0xe0] sm:$0xff]  ;;  %v752_v0 = vld [vmem:[#allocation1 + $0xe8] sm:$0xff] }
  0x48   :  { %735 = vst [vmem:[%s1133_s1 + $0xa0] sm:$0xff] %v734_v55  ;;  %737 = vst [vmem:[%s1133_s1 + $0xa8] sm:$0xff] %v736_v56  ;;  %v754_v1 = vld [vmem:[#allocation1 + $0xf0] sm:$0xff]  ;;  %v756_v2 = vld [vmem:[#allocation1 + $0xf8] sm:$0xff] }
  0x49   :  { %739 = vst [vmem:[%s1133_s1 + $0xb0] sm:$0xff] %v738_v57  ;;  %741 = vst [vmem:[%s1133_s1 + $0xb8] sm:$0xff] %v740_v58 }
  0x4a   :  { %743 = vst [vmem:[%s1133_s1 + $0xc0] sm:$0xff] %v742_v59  ;;  %745 = vst [vmem:[%s1133_s1 + $0xc8] sm:$0xff] %v744_v60 }
  0x4b   :  { %747 = vst [vmem:[%s1133_s1 + $0xd0] sm:$0xff] %v746_v61  ;;  %749 = vst [vmem:[%s1133_s1 + $0xd8] sm:$0xff] %v748_v62 }
  0x4c   :  { %751 = vst [vmem:[%s1133_s1 + $0xe0] sm:$0xff] %v750_v63  ;;  %753 = vst [vmem:[%s1133_s1 + $0xe8] sm:$0xff] %v752_v0 }
  0x4d   :  { %755 = vst [vmem:[%s1133_s1 + $0xf0] sm:$0xff] %v754_v1  ;;  %757 = vst [vmem:[%s1133_s1 + $0xf8] sm:$0xff] %v756_v2 }

// kernel: ffno_forward.12
= control target key start
LH: loop header
LB: loop body
LE: loop exit
PB: predicated region body
PF: predicated region fallthrough
CT: control target
= control target key end

     0   :  { %s811_s12 = smov 0   ;;  %s1016_s0 = inlined_call_operand.vmem [shape: f32[512,32], index: 0, kind: input, shape index: {}]   ;;  %s1017_s1 = inlined_call_operand.vmem [shape: f32[32,32], index: 1, kind: input, shape index: {}]   ;;  %s1018_s2 = inlined_call_operand.vmem [shape: f32[1,32], index: 2, kind: input, shape index: {}]   ;;  %s1019_s3 = inlined_call_operand.vmem [shape: f32[512,32], index: 3, kind: output, shape index: {}]  }
   0x1 LB: > { %s627_s13 = sadd.s32 4294967295, %s789_s12   ;;  %p631_p0 = scmp.ge.s32.totalorder %s789_s12, 1  ;;  %s789_s12 = sphi %s811_s12, %s13_s12  }
   0x2   : > { %p138_p1 = scmp.lt.s32.totalorder %s789_s12, 3 }
   0x4   : > { %p139_p2 = pnand %p631_p0, %p138_p1 }
   0x5   : > { %v206_v0 = vld [vmem:[%s1017_s1] sm:$0xff] (!%p139_p2)  ;;  %v207_v1 = vld [vmem:[%s1017_s1 + $0x8] sm:$0xff] (!%p139_p2)  ;;  %v208_v2 = vld [vmem:[%s1017_s1 + $0x10] sm:$0xff] (!%p139_p2)  ;;  %s632_s20 = sshll.u32 (!%p139_p2), %s627_s13, 5  ;;  %vm217_vm0 = vcmask (!%p139_p2), 261120  }
   0x6   : > { %142 = sbr.rel (%p139_p2) target bundleno = 263 (0x107), region = 32  ;;  %v763_v3 = vpack.c.bf16 (!%p139_p2), %v207_v1, %v206_v0  ;;  %v209_v4 = vld [vmem:[%s1017_s1 + $0x18] sm:$0xff] (!%p139_p2)  ;;  %p163_p3 = scmp.lt.s32.totalorder (!%p139_p2), %s632_s20, 63  ;;  %v908_v38 = vld [vmem:[%s1018_s2] ss:$0 sm:$0xff] (!%p139_p2) }
   0x7   : > { %v767_v5 = vpack.c.bf16 (!%p139_p2), %v209_v4, %v208_v2 }
   0x8   : > { %764 = vmatprep.subr.bf16.mxu0 (!%p139_p2), %v763_v3  ;;  %771 = vmatprep.subr.bf16.mxu1 (!%p139_p2), %v763_v3 }
   0x9   : > { %766 = vmatpush3.bf16.msra.mxu0 (!%p139_p2), %v763_v3  ;;  %773 = vmatpush3.bf16.msra.mxu1 (!%p139_p2), %v763_v3 }
   0xa   : > { %768 = vmatprep.subr.bf16.mxu0 (!%p139_p2), %v767_v5  ;;  %772 = vmatprep.subr.bf16.mxu1 (!%p139_p2), %v767_v5 }
   0xd   : > { %s1021_s20 = smov (!%p163_p3, %s632_s20), 63  ;;  %770 = vmatpush3.bf16.msra.mxu0 %v767_v5  ;;  %774 = vmatpush3.bf16.msra.mxu1 %v767_v5 }
   0xe   : > { %s633_s23 = sshll.u32 %s1021_s20, 3 }
   0xf   : > { %s839_s26 = scalar_lea.vmem %s1016_s0, %s633_s23  ;;  %s915_s4 = scalar_lea.vmem %s1019_s3, %s633_s23 }
  0x10   : > { %v174_v6 = vld [vmem:[%s839_s26] sm:$0xff]  ;;  %v175_v8 = vld [vmem:[%s839_s26 + $0x8] sm:$0xff]  ;;  %v176_v10 = vld [vmem:[%s839_s26 + $0x10] sm:$0xff] }
  0x11   : > { %v190_v7 = vld [vmem:[%s839_s26 + $0x80] sm:$0xff]  ;;  %v191_v9 = vld [vmem:[%s839_s26 + $0x88] sm:$0xff]  ;;  %715 = vmatprep.mubr.msk.f32.mxu0 %vm217_vm0, %v174_v6  ;;  %v192_v11 = vld [vmem:[%s839_s26 + $0x90] sm:$0xff] }
  0x12   : > { %739 = vmatprep.mubr.msk.f32.mxu1 %vm217_vm0, %v190_v7  ;;  %716 = vmatmul.mubr.msk.f32.vlgmr.msra.gmra.mrb[0].mxu0 %vm217_vm0, %v175_v8  ;;  %v177_v12 = vld [vmem:[%s839_s26 + $0x18] sm:$0xff]  ;;  %v178_v14 = vld [vmem:[%s839_s26 + $0x20] sm:$0xff]  ;;  %v179_v16 = vld [vmem:[%s839_s26 + $0x28] sm:$0xff] }
  0x13   : > { %740 = vmatmul.mubr.msk.f32.vlgmr.msra.gmra.mrb[0].mxu1 %vm217_vm0, %v191_v9  ;;  %718 = vmatprep.mubr.msk.f32.mxu0 %vm217_vm0, %v176_v10  ;;  %v193_v13 = vld [vmem:[%s839_s26 + $0x98] sm:$0xff]  ;;  %v194_v15 = vld [vmem:[%s839_s26 + $0xa0] sm:$0xff]  ;;  %v195_v17 = vld [vmem:[%s839_s26 + $0xa8] sm:$0xff] }
  0x14   : > { %742 = vmatprep.mubr.msk.f32.mxu1 %vm217_vm0, %v192_v11  ;;  %v180_v18 = vld [vmem:[%s839_s26 + $0x30] sm:$0xff]  ;;  %v181_v20 = vld [vmem:[%s839_s26 + $0x38] sm:$0xff]  ;;  %v182_v22 = vld [vmem:[%s839_s26 + $0x40] sm:$0xff] }
  0x15   : > { %v196_v19 = vld [vmem:[%s839_s26 + $0xb0] sm:$0xff]  ;;  %v197_v21 = vld [vmem:[%s839_s26 + $0xb8] sm:$0xff]  ;;  %v198_v23 = vld [vmem:[%s839_s26 + $0xc0] sm:$0xff] }
  0x16   : > { %719 = vmatmul.mubr.msk.f32.gmra.mrb[2].mxu0 %vm217_vm0, %v177_v12  ;;  %v183_v24 = vld [vmem:[%s839_s26 + $0x48] sm:$0xff]  ;;  %v184_v26 = vld [vmem:[%s839_s26 + $0x50] sm:$0xff]  ;;  %v185_v28 = vld [vmem:[%s839_s26 + $0x58] sm:$0xff] }
  0x17   : > { %743 = vmatmul.mubr.msk.f32.gmra.mrb[2].mxu1 %vm217_vm0, %v193_v13  ;;  %721 = vmatprep.mubr.msk.f32.mxu0 %vm217_vm0, %v178_v14  ;;  %v199_v25 = vld [vmem:[%s839_s26 + $0xc8] sm:$0xff]  ;;  %v200_v27 = vld [vmem:[%s839_s26 + $0xd0] sm:$0xff]  ;;  %v201_v29 = vld [vmem:[%s839_s26 + $0xd8] sm:$0xff] }
  0x18   : > { %745 = vmatprep.mubr.msk.f32.mxu1 %vm217_vm0, %v194_v15  ;;  %v186_v30 = vld [vmem:[%s839_s26 + $0x60] sm:$0xff]  ;;  %v187_v32 = vld [vmem:[%s839_s26 + $0x68] sm:$0xff]  ;;  %v188_v34 = vld [vmem:[%s839_s26 + $0x70] sm:$0xff] }
  0x19   : > { %v202_v31 = vld [vmem:[%s839_s26 + $0xe0] sm:$0xff]  ;;  %v203_v33 = vld [vmem:[%s839_s26 + $0xe8] sm:$0xff]  ;;  %v204_v35 = vld [vmem:[%s839_s26 + $0xf0] sm:$0xff] }
  0x1a   : > { %722 = vmatmul.mubr.msk.f32.gmra.mrb[4].mxu0 %vm217_vm0, %v179_v16  ;;  %v189_v36 = vld [vmem:[%s839_s26 + $0x78] sm:$0xff] }
  0x1b   : > { %746 = vmatmul.mubr.msk.f32.gmra.mrb[4].mxu1 %vm217_vm0, %v195_v17  ;;  %724 = vmatprep.mubr.msk.f32.mxu0 %vm217_vm0, %v180_v18  ;;  %v205_v37 = vld [vmem:[%s839_s26 + $0xf8] sm:$0xff] }
  0x1c   : > { %748 = vmatprep.mubr.msk.f32.mxu1 %vm217_vm0, %v196_v19 }
  0x1e   : > { %725 = vmatmul.mubr.msk.f32.gmra.mrb[6].mxu0 %vm217_vm0, %v181_v20 }
  0x1f   : > { %749 = vmatmul.mubr.msk.f32.gmra.mrb[6].mxu1 %vm217_vm0, %v197_v21  ;;  %727 = vmatprep.mubr.msk.f32.mxu0 %vm217_vm0, %v182_v22 }
  0x20   : > { %751 = vmatprep.mubr.msk.f32.mxu1 %vm217_vm0, %v198_v23 }
  0x22   : > { %728 = vmatmul.mubr.msk.f32.gmra.mrb[8].mxu0 %vm217_vm0, %v183_v24 }
  0x23   : > { %752 = vmatmul.mubr.msk.f32.gmra.mrb[8].mxu1 %vm217_vm0, %v199_v25  ;;  %730 = vmatprep.mubr.msk.f32.mxu0 %vm217_vm0, %v184_v26 }
  0x24   : > { %754 = vmatprep.mubr.msk.f32.mxu1 %vm217_vm0, %v200_v27 }
  0x26   : > { %731 = vmatmul.mubr.msk.f32.gmra.mrb[10].mxu0 %vm217_vm0, %v185_v28 }
  0x27   : > { %755 = vmatmul.mubr.msk.f32.gmra.mrb[10].mxu1 %vm217_vm0, %v201_v29  ;;  %733 = vmatprep.mubr.msk.f32.mxu0 %vm217_vm0, %v186_v30 }
  0x28   : > { %757 = vmatprep.mubr.msk.f32.mxu1 %vm217_vm0, %v202_v31 }
  0x2a   : > { %734 = vmatmul.mubr.msk.f32.gmra.mrb[12].mxu0 %vm217_vm0, %v187_v32 }
  0x2b   : > { %758 = vmatmul.mubr.msk.f32.gmra.mrb[12].mxu1 %vm217_vm0, %v203_v33  ;;  %736 = vmatprep.mubr.msk.f32.mxu0 %vm217_vm0, %v188_v34 }
  0x2c   : > { %760 = vmatprep.mubr.msk.f32.mxu1 %vm217_vm0, %v204_v35 }
  0x2e   : > { %737 = vmatmul.mubr.msk.f32.gmra.mrb[14].mxu0 %vm217_vm0, %v189_v36 }
  0x2f   : > { %761 = vmatmul.mubr.msk.f32.gmra.mrb[14].mxu1 %vm217_vm0, %v205_v37 }
  0xe5   : > { %v717_v39 = vpop.f32.mrb[0].mxu0 }
  0xe6   : > { %v741_v40 = vpop.f32.mrb[0].mxu1  ;;  %v386_v41 = vadd.f32 %v717_v39, %v908_v38  ;;  %v380_v43 = vpop.f32.mrb[1].mxu0 }
  0xe7   : > { %v466_v42 = vadd.f32 %v741_v40, %v908_v38  ;;  %v460_v44 = vpop.f32.mrb[1].mxu1  ;;  %v381_v45 = vadd.f32 %v908_v38, %v380_v43 }
  0xe8   : > { %v461_v46 = vadd.f32 %v908_v38, %v460_v44  ;;  %540 = vst.msk [vmem:[%s915_s4 + $0x8] sm:$0xff] %vm217_vm0, %v386_v41 }
  0xe9   : > { %556 = vst.msk [vmem:[%s915_s4 + $0x88] sm:$0xff] %vm217_vm0, %v466_v42  ;;  %539 = vst.msk [vmem:[%s915_s4] sm:$0xff] %vm217_vm0, %v381_v45  ;;  %v720_v47 = vpop.f32.mrb[2].mxu0 }
  0xea   : > { %555 = vst.msk [vmem:[%s915_s4 + $0x80] sm:$0xff] %vm217_vm0, %v461_v46  ;;  %v744_v48 = vpop.f32.mrb[2].mxu1  ;;  %v396_v49 = vadd.f32 %v720_v47, %v908_v38  ;;  %v390_v51 = vpop.f32.mrb[3].mxu0 }
  0xeb   : > { %v476_v50 = vadd.f32 %v744_v48, %v908_v38  ;;  %v470_v52 = vpop.f32.mrb[3].mxu1  ;;  %v391_v53 = vadd.f32 %v908_v38, %v390_v51 }
  0xec   : > { %v471_v54 = vadd.f32 %v908_v38, %v470_v52  ;;  %542 = vst.msk [vmem:[%s915_s4 + $0x18] sm:$0xff] %vm217_vm0, %v396_v49 }
  0xed   : > { %558 = vst.msk [vmem:[%s915_s4 + $0x98] sm:$0xff] %vm217_vm0, %v476_v50  ;;  %541 = vst.msk [vmem:[%s915_s4 + $0x10] sm:$0xff] %vm217_vm0, %v391_v53  ;;  %v723_v55 = vpop.f32.mrb[4].mxu0 }
  0xee   : > { %557 = vst.msk [vmem:[%s915_s4 + $0x90] sm:$0xff] %vm217_vm0, %v471_v54  ;;  %v747_v56 = vpop.f32.mrb[4].mxu1  ;;  %v406_v57 = vadd.f32 %v723_v55, %v908_v38  ;;  %v400_v59 = vpop.f32.mrb[5].mxu0 }
  0xef   : > { %v486_v58 = vadd.f32 %v747_v56, %v908_v38  ;;  %v480_v60 = vpop.f32.mrb[5].mxu1  ;;  %v401_v61 = vadd.f32 %v908_v38, %v400_v59 }
  0xf0   : > { %v481_v62 = vadd.f32 %v908_v38, %v480_v60  ;;  %544 = vst.msk [vmem:[%s915_s4 + $0x28] sm:$0xff] %vm217_vm0, %v406_v57 }
  0xf1   : > { %560 = vst.msk [vmem:[%s915_s4 + $0xa8] sm:$0xff] %vm217_vm0, %v486_v58  ;;  %543 = vst.msk [vmem:[%s915_s4 + $0x20] sm:$0xff] %vm217_vm0, %v401_v61  ;;  %v726_v63 = vpop.f32.mrb[6].mxu0 }
  0xf2   : > { %559 = vst.msk [vmem:[%s915_s4 + $0xa0] sm:$0xff] %vm217_vm0, %v481_v62  ;;  %v750_v0 = vpop.f32.mrb[6].mxu1  ;;  %v416_v1 = vadd.f32 %v726_v63, %v908_v38  ;;  %v410_v3 = vpop.f32.mrb[7].mxu0 }
  0xf3   : > { %v496_v2 = vadd.f32 %v750_v0, %v908_v38  ;;  %v490_v4 = vpop.f32.mrb[7].mxu1  ;;  %v411_v5 = vadd.f32 %v908_v38, %v410_v3 }
  0xf4   : > { %v491_v6 = vadd.f32 %v908_v38, %v490_v4  ;;  %546 = vst.msk [vmem:[%s915_s4 + $0x38] sm:$0xff] %vm217_vm0, %v416_v1 }
  0xf5   : > { %562 = vst.msk [vmem:[%s915_s4 + $0xb8] sm:$0xff] %vm217_vm0, %v496_v2  ;;  %545 = vst.msk [vmem:[%s915_s4 + $0x30] sm:$0xff] %vm217_vm0, %v411_v5  ;;  %v729_v7 = vpop.f32.mrb[8].mxu0 }
  0xf6   : > { %561 = vst.msk [vmem:[%s915_s4 + $0xb0] sm:$0xff] %vm217_vm0, %v491_v6  ;;  %v753_v8 = vpop.f32.mrb[8].mxu1  ;;  %v426_v9 = vadd.f32 %v729_v7, %v908_v38  ;;  %v420_v11 = vpop.f32.mrb[9].mxu0 }
  0xf7   : > { %v506_v10 = vadd.f32 %v753_v8, %v908_v38  ;;  %v500_v12 = vpop.f32.mrb[9].mxu1  ;;  %v421_v13 = vadd.f32 %v908_v38, %v420_v11 }
  0xf8   : > { %v501_v14 = vadd.f32 %v908_v38, %v500_v12  ;;  %548 = vst.msk [vmem:[%s915_s4 + $0x48] sm:$0xff] %vm217_vm0, %v426_v9 }
  0xf9   : > { %564 = vst.msk [vmem:[%s915_s4 + $0xc8] sm:$0xff] %vm217_vm0, %v506_v10  ;;  %547 = vst.msk [vmem:[%s915_s4 + $0x40] sm:$0xff] %vm217_vm0, %v421_v13  ;;  %v732_v15 = vpop.f32.mrb[10].mxu0 }
  0xfa   : > { %563 = vst.msk [vmem:[%s915_s4 + $0xc0] sm:$0xff] %vm217_vm0, %v501_v14  ;;  %v756_v16 = vpop.f32.mrb[10].mxu1  ;;  %v436_v17 = vadd.f32 %v732_v15, %v908_v38  ;;  %v430_v19 = vpop.f32.mrb[11].mxu0 }
  0xfb   : > { %v516_v18 = vadd.f32 %v756_v16, %v908_v38  ;;  %v510_v20 = vpop.f32.mrb[11].mxu1  ;;  %v431_v21 = vadd.f32 %v908_v38, %v430_v19 }
  0xfc   : > { %v511_v22 = vadd.f32 %v908_v38, %v510_v20  ;;  %550 = vst.msk [vmem:[%s915_s4 + $0x58] sm:$0xff] %vm217_vm0, %v436_v17 }
  0xfd   : > { %566 = vst.msk [vmem:[%s915_s4 + $0xd8] sm:$0xff] %vm217_vm0, %v516_v18  ;;  %549 = vst.msk [vmem:[%s915_s4 + $0x50] sm:$0xff] %vm217_vm0, %v431_v21  ;;  %v735_v23 = vpop.f32.mrb[12].mxu0 }
  0xfe   : > { %565 = vst.msk [vmem:[%s915_s4 + $0xd0] sm:$0xff] %vm217_vm0, %v511_v22  ;;  %v759_v24 = vpop.f32.mrb[12].mxu1  ;;  %v446_v25 = vadd.f32 %v735_v23, %v908_v38  ;;  %v440_v27 = vpop.f32.mrb[13].mxu0 }
  0xff   : > { %v526_v26 = vadd.f32 %v759_v24, %v908_v38  ;;  %v520_v28 = vpop.f32.mrb[13].mxu1  ;;  %v441_v29 = vadd.f32 %v908_v38, %v440_v27 }
 0x100   : > { %v521_v30 = vadd.f32 %v908_v38, %v520_v28  ;;  %552 = vst.msk [vmem:[%s915_s4 + $0x68] sm:$0xff] %vm217_vm0, %v446_v25 }
 0x101   : > { %568 = vst.msk [vmem:[%s915_s4 + $0xe8] sm:$0xff] %vm217_vm0, %v526_v26  ;;  %551 = vst.msk [vmem:[%s915_s4 + $0x60] sm:$0xff] %vm217_vm0, %v441_v29  ;;  %v738_v31 = vpop.f32.mrb[14].mxu0 }
 0x102   : > { %567 = vst.msk [vmem:[%s915_s4 + $0xe0] sm:$0xff] %vm217_vm0, %v521_v30  ;;  %v762_v32 = vpop.f32.mrb[14].mxu1  ;;  %v456_v33 = vadd.f32 %v738_v31, %v908_v38  ;;  %v450_v35 = vpop.f32.mrb[15].mxu0 }
 0x103   : > { %v536_v34 = vadd.f32 %v762_v32, %v908_v38  ;;  %v530_v36 = vpop.f32.mrb[15].mxu1  ;;  %v451_v37 = vadd.f32 %v908_v38, %v450_v35 }
 0x104   : > { %v531_v39 = vadd.f32 %v908_v38, %v530_v36  ;;  %554 = vst.msk [vmem:[%s915_s4 + $0x78] sm:$0xff] %vm217_vm0, %v456_v33 }
 0x105   : > { %570 = vst.msk [vmem:[%s915_s4 + $0xf8] sm:$0xff] %vm217_vm0, %v536_v34  ;;  %553 = vst.msk [vmem:[%s915_s4 + $0x70] sm:$0xff] %vm217_vm0, %v451_v37 }
 0x106   : > { %569 = vst.msk [vmem:[%s915_s4 + $0xf0] sm:$0xff] %vm217_vm0, %v531_v39 }
 0x107 PF: > { %s13_s12 = sadd.s32 1, %s789_s12  }
 0x108   : > { %p10_p4 = scmp.ge.s32.totalorder %s13_s12, 4  }
 0x10a   :  { %12 = sbr.rel (!%p10_p4) target bundleno = 1 (0x1), region = 62 }

// kernel: ffno_forward.19
= control target key start
LH: loop header
LB: loop body
LE: loop exit
PB: predicated region body
PF: predicated region fallthrough
CT: control target
= control target key end

     0   :  { %s1334_s20 = smov 0   ;;  %s1621_s0 = inlined_call_operand.vmem [shape: f32[512,32], index: 0, kind: input, shape index: {}]   ;;  %s1622_s1 = inlined_call_operand.vmem [shape: f32[32,128], index: 1, kind: input, shape index: {}]   ;;  %s1623_s2 = inlined_call_operand.vmem [shape: f32[1,128], index: 2, kind: input, shape index: {}]   ;;  %s1624_s3 = inlined_call_operand.vmem [shape: f32[128,1], index: 3, kind: input, shape index: {}]   ;;  %s1625_s4 = inlined_call_operand.<no memory space> [shape: f32[1,1], index: 4, kind: input, shape index: {}]   ;;  %s1626_s5 = inlined_call_operand.vmem [shape: f32[512,1], index: 5, kind: output, shape index: {}]  }
   0x1   :  { %v10_v0 = vstv %s1625_s4 }
   0x2   :  { %11 = vst [vmem:[#allocation2] sm:$0x1] %v10_v0 }
   0x3 LB: > { %s964_s21 = sadd.s32 4294967295, %s1299_s20   ;;  %p968_p0 = scmp.ge.s32.totalorder %s1299_s20, 1  ;;  %s1299_s20 = sphi %s1334_s20, %s17_s20  }
   0x4   : > { %p190_p1 = scmp.lt.s32.totalorder %s1299_s20, 3 }
   0x6   : > { %p191_p2 = pnand %p968_p0, %p190_p1 }
   0x7   : > { %v262_v1 = vld [vmem:[%s1622_s1] sm:$0xff] (!%p191_p2)  ;;  %v263_v2 = vld [vmem:[%s1622_s1 + $0x8] sm:$0xff] (!%p191_p2)  ;;  %v264_v3 = vld [vmem:[%s1622_s1 + $0x10] sm:$0xff] (!%p191_p2)  ;;  %s969_s27 = sshll.u32 (!%p191_p2), %s964_s21, 5  ;;  %vm273_vm0 = vcmask (!%p191_p2), 261120   ;;  %vm875_vm1 = vcmask (!%p191_p2), 7168  }
   0x8   : > { %194 = sbr.rel (%p191_p2) target bundleno = 514 (0x202), region = 40  ;;  %v1229_v4 = vpack.c.bf16 (!%p191_p2), %v263_v2, %v262_v1  ;;  %v265_v5 = vld [vmem:[%s1622_s1 + $0x18] sm:$0xff] (!%p191_p2)  ;;  %p219_p3 = scmp.lt.s32.totalorder (!%p191_p2), %s969_s27, 63  ;;  %v627_v6 = vld [vmem:[%s1624_s3] sm:$0xff] (!%p191_p2)  ;;  %v628_v7 = vld [vmem:[%s1624_s3 + $0x8] sm:$0xff] (!%p191_p2) }
   0x9   : > { %v1233_v8 = vpack.c.bf16 (!%p191_p2), %v265_v5, %v264_v3  ;;  %v1237_v9 = vpack.c.bf16 (!%p191_p2), %v628_v7, %v627_v6  ;;  %v629_v10 = vld [vmem:[%s1624_s3 + $0x10] sm:$0xff] (!%p191_p2)  ;;  %v630_v11 = vld [vmem:[%s1624_s3 + $0x18] sm:$0xff] (!%p191_p2)  ;;  %v631_v13 = vld [vmem:[%s1624_s3 + $0x20] sm:$0xff] (!%p191_p2) }
   0xa   : > { %1230 = vmatprep.subr.bf16.mxu0 (!%p191_p2), %v1229_v4  ;;  %v1241_v12 = vpack.c.bf16 (!%p191_p2), %v630_v11, %v629_v10  ;;  %v632_v14 = vld [vmem:[%s1624_s3 + $0x28] sm:$0xff] (!%p191_p2)  ;;  %v633_v19 = vld [vmem:[%s1624_s3 + $0x30] sm:$0xff] (!%p191_p2)  ;;  %v634_v20 = vld [vmem:[%s1624_s3 + $0x38] sm:$0xff] (!%p191_p2) }
   0xb   : > { %1232 = vmatpush3.bf16.msra.mxu0 (!%p191_p2), %v1229_v4  ;;  %1269 = vmatprep.subr.bf16.mxu1 (!%p191_p2), %v1237_v9  ;;  %v1245_v17 = vpack.c.bf16 (!%p191_p2), %v632_v14, %v631_v13  ;;  %v1249_v22 = vpack.c.bf16 (!%p191_p2), %v634_v20, %v633_v19  ;;  %v635_v24 = vld [vmem:[%s1624_s3 + $0x40] sm:$0xff] (!%p191_p2)  ;;  %v636_v25 = vld [vmem:[%s1624_s3 + $0x48] sm:$0xff] (!%p191_p2)  ;;  %v637_v29 = vld [vmem:[%s1624_s3 + $0x50] sm:$0xff] (!%p191_p2) }
   0xc   : > { %1234 = vmatprep.subr.bf16.mxu0 (!%p191_p2), %v1233_v8  ;;  %1277 = vmatpush3.bf16.msra.mxu1 (!%p191_p2), %v1237_v9  ;;  %v1253_v27 = vpack.c.bf16 (!%p191_p2), %v636_v25, %v635_v24  ;;  %v638_v30 = vld [vmem:[%s1624_s3 + $0x58] sm:$0xff] (!%p191_p2)  ;;  %v639_v34 = vld [vmem:[%s1624_s3 + $0x60] sm:$0xff] (!%p191_p2)  ;;  %v640_v35 = vld [vmem:[%s1624_s3 + $0x68] sm:$0xff] (!%p191_p2) }
   0xd   : > { %1270 = vmatprep.subr.bf16.mxu1 (!%p191_p2), %v1241_v12  ;;  %v1257_v32 = vpack.c.bf16 (!%p191_p2), %v638_v30, %v637_v29  ;;  %v1261_v37 = vpack.c.bf16 (!%p191_p2), %v640_v35, %v639_v34  ;;  %v641_v60 = vld [vmem:[%s1624_s3 + $0x70] sm:$0xff] (!%p191_p2)  ;;  %v642_v61 = vld [vmem:[%s1624_s3 + $0x78] sm:$0xff] (!%p191_p2)  ;;  %v1479_v63 = vld [vmem:[%s1623_s2] ss:$0 sm:$0xff] (!%p191_p2) }
   0xe   : > { %v1265_v62 = vpack.c.bf16 (!%p191_p2), %v642_v61, %v641_v60 }
   0xf   : > { %s1628_s27 = smov (!%p219_p3, %s969_s27), 63  ;;  %1236 = vmatpush3.bf16.msra.mxu0 %v1233_v8 }
  0x10   : > { %s970_s13 = sshll.u32 %s1628_s27, 3  ;;  %1238 = vmatprep.subr.bf16.mxu0 %v1237_v9  ;;  %1278 = vmatpush3.bf16.msra.mxu1 %v1241_v12 }
  0x11   : > { %s1380_s21 = scalar_lea.vmem %s1621_s0, %s970_s13  ;;  %1271 = vmatprep.subr.bf16.mxu1 %v1245_v17  ;;  %s1520_s23 = scalar_lea.vmem %s1626_s5, %s970_s13 }
  0x12   : > { %v230_v15 = vld [vmem:[%s1380_s21] sm:$0xff]  ;;  %v231_v16 = vld [vmem:[%s1380_s21 + $0x8] sm:$0xff]  ;;  %v232_v18 = vld [vmem:[%s1380_s21 + $0x10] sm:$0xff] }
  0x13   : > { %1101 = vmatprep.mubr.msk.f32.mxu0 %vm273_vm0, %v230_v15  ;;  %v233_v21 = vld [vmem:[%s1380_s21 + $0x18] sm:$0xff]  ;;  %v234_v23 = vld [vmem:[%s1380_s21 + $0x20] sm:$0xff]  ;;  %v235_v26 = vld [vmem:[%s1380_s21 + $0x28] sm:$0xff] }
  0x14   : > { %1102 = vmatmul.mubr.msk.f32.vlgmr.msra.gmra.mrb[0].mxu0 %vm273_vm0, %v231_v16  ;;  %1279 = vmatpush3.bf16.msra.mxu1 %v1245_v17  ;;  %v236_v28 = vld [vmem:[%s1380_s21 + $0x30] sm:$0xff]  ;;  %v237_v31 = vld [vmem:[%s1380_s21 + $0x38] sm:$0xff]  ;;  %v238_v33 = vld [vmem:[%s1380_s21 + $0x40] sm:$0xff] }
  0x15   : > { %1104 = vmatprep.mubr.msk.f32.mxu0 %vm273_vm0, %v232_v18  ;;  %1240 = vmatpush3.bf16.msra.mxu0 %v1237_v9  ;;  %v239_v36 = vld [vmem:[%s1380_s21 + $0x48] sm:$0xff]  ;;  %v240_v38 = vld [vmem:[%s1380_s21 + $0x50] sm:$0xff]  ;;  %v241_v39 = vld [vmem:[%s1380_s21 + $0x58] sm:$0xff] }
  0x16   : > { %1242 = vmatprep.subr.bf16.mxu0 %v1241_v12  ;;  %1272 = vmatprep.subr.bf16.mxu1 %v1249_v22  ;;  %v242_v40 = vld [vmem:[%s1380_s21 + $0x60] sm:$0xff]  ;;  %v243_v41 = vld [vmem:[%s1380_s21 + $0x68] sm:$0xff]  ;;  %v244_v42 = vld [vmem:[%s1380_s21 + $0x70] sm:$0xff] }
  0x17   : > { %v245_v43 = vld [vmem:[%s1380_s21 + $0x78] sm:$0xff]  ;;  %v246_v44 = vld [vmem:[%s1380_s21 + $0x80] sm:$0xff]  ;;  %v247_v45 = vld [vmem:[%s1380_s21 + $0x88] sm:$0xff] }
  0x18   : > { %1105 = vmatmul.mubr.msk.f32.gmra.mrb[2].mxu0 %vm273_vm0, %v233_v21  ;;  %1280 = vmatpush3.bf16.msra.mxu1 %v1249_v22  ;;  %v248_v46 = vld [vmem:[%s1380_s21 + $0x90] sm:$0xff]  ;;  %v249_v47 = vld [vmem:[%s1380_s21 + $0x98] sm:$0xff]  ;;  %v250_v48 = vld [vmem:[%s1380_s21 + $0xa0] sm:$0xff] }
  0x19   : > { %1107 = vmatprep.mubr.msk.f32.mxu0 %vm273_vm0, %v234_v23  ;;  %1244 = vmatpush3.bf16.msra.mxu0 %v1241_v12  ;;  %v251_v49 = vld [vmem:[%s1380_s21 + $0xa8] sm:$0xff]  ;;  %v252_v50 = vld [vmem:[%s1380_s21 + $0xb0] sm:$0xff]  ;;  %v253_v51 = vld [vmem:[%s1380_s21 + $0xb8] sm:$0xff] }
  0x1a   : > { %1246 = vmatprep.subr.bf16.mxu0 %v1245_v17  ;;  %1273 = vmatprep.subr.bf16.mxu1 %v1253_v27  ;;  %v254_v52 = vld [vmem:[%s1380_s21 + $0xc0] sm:$0xff]  ;;  %v255_v53 = vld [vmem:[%s1380_s21 + $0xc8] sm:$0xff]  ;;  %v256_v54 = vld [vmem:[%s1380_s21 + $0xd0] sm:$0xff] }
  0x1b   : > { %v257_v55 = vld [vmem:[%s1380_s21 + $0xd8] sm:$0xff]  ;;  %v258_v56 = vld [vmem:[%s1380_s21 + $0xe0] sm:$0xff]  ;;  %v259_v57 = vld [vmem:[%s1380_s21 + $0xe8] sm:$0xff] }
  0x1c   : > { %1108 = vmatmul.mubr.msk.f32.gmra.mrb[4].mxu0 %vm273_vm0, %v235_v26  ;;  %1281 = vmatpush3.bf16.msra.mxu1 %v1253_v27  ;;  %v260_v58 = vld [vmem:[%s1380_s21 + $0xf0] sm:$0xff]  ;;  %v261_v59 = vld [vmem:[%s1380_s21 + $0xf8] sm:$0xff] }
  0x1d   : > { %1110 = vmatprep.mubr.msk.f32.mxu0 %vm273_vm0, %v236_v28  ;;  %1248 = vmatpush3.bf16.msra.mxu0 %v1245_v17 }
  0x1e   : > { %1250 = vmatprep.subr.bf16.mxu0 %v1249_v22  ;;  %1274 = vmatprep.subr.bf16.mxu1 %v1257_v32 }
  0x20   : > { %1111 = vmatmul.mubr.msk.f32.gmra.mrb[6].mxu0 %vm273_vm0, %v237_v31  ;;  %1282 = vmatpush3.bf16.msra.mxu1 %v1257_v32 }
  0x21   : > { %1113 = vmatprep.mubr.msk.f32.mxu0 %vm273_vm0, %v238_v33  ;;  %1252 = vmatpush3.bf16.msra.mxu0 %v1249_v22 }
  0x22   : > { %1254 = vmatprep.subr.bf16.mxu0 %v1253_v27  ;;  %1275 = vmatprep.subr.bf16.mxu1 %v1261_v37 }
  0x24   : > { %1114 = vmatmul.mubr.msk.f32.gmra.mrb[8].mxu0 %vm273_vm0, %v239_v36  ;;  %1283 = vmatpush3.bf16.msra.mxu1 %v1261_v37 }
  0x25   : > { %1116 = vmatprep.mubr.msk.f32.mxu0 %vm273_vm0, %v240_v38  ;;  %1256 = vmatpush3.bf16.msra.mxu0 %v1253_v27 }
  0x26   : > { %1258 = vmatprep.subr.bf16.mxu0 %v1257_v32  ;;  %1276 = vmatprep.subr.bf16.mxu1 %v1265_v62 }
  0x28   : > { %1117 = vmatmul.mubr.msk.f32.gmra.mrb[10].mxu0 %vm273_vm0, %v241_v39  ;;  %1284 = vmatpush3.bf16.msra.mxu1 %v1265_v62 }
  0x29   : > { %1119 = vmatprep.mubr.msk.f32.mxu0 %vm273_vm0, %v242_v40  ;;  %1260 = vmatpush3.bf16.msra.mxu0 %v1257_v32 }
  0x2a   : > { %1262 = vmatprep.subr.bf16.mxu0 %v1261_v37 }
  0x2c   : > { %1120 = vmatmul.mubr.msk.f32.gmra.mrb[12].mxu0 %vm273_vm0, %v243_v41 }
  0x2d   : > { %1122 = vmatprep.mubr.msk.f32.mxu0 %vm273_vm0, %v244_v42  ;;  %1264 = vmatpush3.bf16.msra.mxu0 %v1261_v37 }
  0x2e   : > { %1266 = vmatprep.subr.bf16.mxu0 %v1265_v62 }
  0x30   : > { %1123 = vmatmul.mubr.msk.f32.gmra.mrb[14].mxu0 %vm273_vm0, %v245_v43 }
  0x31   : > { %1125 = vmatprep.mubr.msk.f32.mxu0 %vm273_vm0, %v246_v44  ;;  %1268 = vmatpush3.bf16.msra.mxu0 %v1265_v62 }
  0x34   : > { %1126 = vmatmul.mubr.msk.f32.gmra.mrb[16].mxu0 %vm273_vm0, %v247_v45 }
  0x35   : > { %1128 = vmatprep.mubr.msk.f32.mxu0 %vm273_vm0, %v248_v46 }
  0x38   : > { %1129 = vmatmul.mubr.msk.f32.gmra.mrb[18].mxu0 %vm273_vm0, %v249_v47 }
  0x39   : > { %1131 = vmatprep.mubr.msk.f32.mxu0 %vm273_vm0, %v250_v48 }
  0x3c   : > { %1132 = vmatmul.mubr.msk.f32.gmra.mrb[20].mxu0 %vm273_vm0, %v251_v49 }
  0x3d   : > { %1134 = vmatprep.mubr.msk.f32.mxu0 %vm273_vm0, %v252_v50 }
  0x40   : > { %1135 = vmatmul.mubr.msk.f32.gmra.mrb[22].mxu0 %vm273_vm0, %v253_v51 }
  0x41   : > { %1137 = vmatprep.mubr.msk.f32.mxu0 %vm273_vm0, %v254_v52 }
  0x44   : > { %1138 = vmatmul.mubr.msk.f32.gmra.mrb[24].mxu0 %vm273_vm0, %v255_v53 }
  0x45   : > { %1140 = vmatprep.mubr.msk.f32.mxu0 %vm273_vm0, %v256_v54 }
  0x48   : > { %1141 = vmatmul.mubr.msk.f32.gmra.mrb[26].mxu0 %vm273_vm0, %v257_v55 }
  0x49   : > { %1143 = vmatprep.mubr.msk.f32.mxu0 %vm273_vm0, %v258_v56 }
  0x4c   : > { %1144 = vmatmul.mubr.msk.f32.gmra.mrb[28].mxu0 %vm273_vm0, %v259_v57 }
  0x4d   : > { %1146 = vmatprep.mubr.msk.f32.mxu0 %vm273_vm0, %v260_v58 }
  0x50   : > { %1147 = vmatmul.mubr.msk.f32.gmra.mrb[30].mxu0 %vm273_vm0, %v261_v59 }
  0xe7   : > { %v1103_v0 = vpop.f32.mrb[0].mxu0 }
  0xe8   : > { %v442_v1 = vadd.f32 %v1103_v0, %v1479_v63  ;;  %v436_v2 = vpop.f32.mrb[1].mxu0 }
  0xe9   : > { %v437_v3 = vadd.f32 %v1479_v63, %v436_v2 }
  0xea   : > { %v596_v6 = vmax.f32 %v442_v1, 0.0 }
  0xeb   : > { %v595_v4 = vmax.f32 %v437_v3, 0.0  ;;  %v1106_v5 = vpop.f32.mrb[2].mxu0 }
  0xec   : > { %v452_v7 = vadd.f32 %v1106_v5, %v1479_v63  ;;  %v446_v8 = vpop.f32.mrb[3].mxu0 }
  0xed   : > { %v447_v9 = vadd.f32 %v1479_v63, %v446_v8  ;;  %1181 = vmatprep.mubr.f32.mxu0 %v595_v4 }
  0xee   : > { %1182 = vmatmul.mubr.f32.vlgmr.msra.gmra.mrb[32].mxu0 %v596_v6  ;;  %v598_v12 = vmax.f32 %v452_v7, 0.0 }
  0xef   : > { %v597_v10 = vmax.f32 %v447_v9, 0.0  ;;  %v1109_v11 = vpop.f32.mrb[4].mxu0 }
  0xf0   : > { %v462_v13 = vadd.f32 %v1109_v11, %v1479_v63  ;;  %v456_v14 = vpop.f32.mrb[5].mxu0 }
  0xf1   : > { %v457_v15 = vadd.f32 %v1479_v63, %v456_v14  ;;  %1184 = vmatprep.mubr.f32.mxu0 %v597_v10 }
  0xf2   : > { %1185 = vmatmul.mubr.f32.gmra.mrb[34].mxu0 %v598_v12  ;;  %v600_v18 = vmax.f32 %v462_v13, 0.0 }
  0xf3   : > { %v599_v16 = vmax.f32 %v457_v15, 0.0  ;;  %v1112_v17 = vpop.f32.mrb[6].mxu0 }
  0xf4   : > { %v472_v19 = vadd.f32 %v1112_v17, %v1479_v63  ;;  %v466_v20 = vpop.f32.mrb[7].mxu0 }
  0xf5   : > { %1187 = vmatprep.mubr.f32.mxu0 %v599_v16  ;;  %v467_v21 = vadd.f32 %v1479_v63, %v466_v20 }
  0xf6   : > { %1188 = vmatmul.mubr.f32.gmra.mrb[36].mxu0 %v600_v18  ;;  %v602_v24 = vmax.f32 %v472_v19, 0.0 }
  0xf7   : > { %v1115_v22 = vpop.f32.mrb[8].mxu0  ;;  %v601_v23 = vmax.f32 %v467_v21, 0.0 }
  0xf8   : > { %v482_v25 = vadd.f32 %v1115_v22, %v1479_v63  ;;  %v476_v26 = vpop.f32.mrb[9].mxu0 }
  0xf9   : > { %v477_v27 = vadd.f32 %v1479_v63, %v476_v26  ;;  %1190 = vmatprep.mubr.f32.mxu1 %v601_v23 }
  0xfa   : > { %1191 = vmatmul.mubr.f32.vlgmr.msra.gmra.mrb[0].mxu1 %v602_v24  ;;  %v604_v30 = vmax.f32 %v482_v25, 0.0 }
  0xfb   : > { %v603_v28 = vmax.f32 %v477_v27, 0.0  ;;  %v1118_v29 = vpop.f32.mrb[10].mxu0 }
  0xfc   : > { %v492_v31 = vadd.f32 %v1118_v29, %v1479_v63  ;;  %v486_v32 = vpop.f32.mrb[11].mxu0 }
  0xfd   : > { %v487_v33 = vadd.f32 %v1479_v63, %v486_v32  ;;  %1193 = vmatprep.mubr.f32.mxu1 %v603_v28 }
  0xfe   : > { %1194 = vmatmul.mubr.f32.gmra.mrb[2].mxu1 %v604_v30  ;;  %v606_v36 = vmax.f32 %v492_v31, 0.0 }
  0xff   : > { %v605_v34 = vmax.f32 %v487_v33, 0.0  ;;  %v1121_v35 = vpop.f32.mrb[12].mxu0  ;;  %v1513_v33 = vld [vmem:[#allocation2] ss:$0 sm:$0xff] }
 0x100   : > { %v502_v37 = vadd.f32 %v1121_v35, %v1479_v63  ;;  %v496_v38 = vpop.f32.mrb[13].mxu0 }
 0x101   : > { %v497_v39 = vadd.f32 %v1479_v63, %v496_v38  ;;  %1196 = vmatprep.mubr.f32.mxu1 %v605_v34 }
 0x102   : > { %1197 = vmatmul.mubr.f32.gmra.mrb[4].mxu1 %v606_v36  ;;  %v608_v42 = vmax.f32 %v502_v37, 0.0 }
 0x103   : > { %v607_v40 = vmax.f32 %v497_v39, 0.0  ;;  %v1124_v41 = vpop.f32.mrb[14].mxu0 }
 0x104   : > { %v512_v43 = vadd.f32 %v1124_v41, %v1479_v63  ;;  %v506_v44 = vpop.f32.mrb[15].mxu0 }
 0x105   : > { %v507_v45 = vadd.f32 %v1479_v63, %v506_v44  ;;  %1199 = vmatprep.mubr.f32.mxu1 %v607_v40 }
 0x106   : > { %1200 = vmatmul.mubr.f32.gmra.mrb[6].mxu1 %v608_v42  ;;  %v610_v48 = vmax.f32 %v512_v43, 0.0 }
 0x107   : > { %v609_v46 = vmax.f32 %v507_v45, 0.0  ;;  %v1127_v47 = vpop.f32.mrb[16].mxu0 }
 0x108   : > { %v522_v49 = vadd.f32 %v1127_v47, %v1479_v63  ;;  %v516_v50 = vpop.f32.mrb[17].mxu0 }
 0x109   : > { %v517_v51 = vadd.f32 %v1479_v63, %v516_v50  ;;  %1202 = vmatprep.mubr.f32.mxu1 %v609_v46 }
 0x10a   : > { %1203 = vmatmul.mubr.f32.gmra.mrb[8].mxu1 %v610_v48  ;;  %v612_v54 = vmax.f32 %v522_v49, 0.0 }
 0x10b   : > { %v611_v52 = vmax.f32 %v517_v51, 0.0  ;;  %v1130_v53 = vpop.f32.mrb[18].mxu0 }
 0x10c   : > { %v532_v55 = vadd.f32 %v1130_v53, %v1479_v63  ;;  %v526_v56 = vpop.f32.mrb[19].mxu0 }
 0x10d   : > { %v527_v57 = vadd.f32 %v1479_v63, %v526_v56  ;;  %1205 = vmatprep.mubr.f32.mxu1 %v611_v52 }
 0x10e   : > { %1206 = vmatmul.mubr.f32.gmra.mrb[10].mxu1 %v612_v54  ;;  %v614_v60 = vmax.f32 %v532_v55, 0.0 }
 0x10f   : > { %v613_v58 = vmax.f32 %v527_v57, 0.0  ;;  %v1133_v59 = vpop.f32.mrb[20].mxu0 }
 0x110   : > { %v542_v61 = vadd.f32 %v1133_v59, %v1479_v63  ;;  %v536_v62 = vpop.f32.mrb[21].mxu0 }
 0x111   : > { %v537_v0 = vadd.f32 %v1479_v63, %v536_v62  ;;  %1208 = vmatprep.mubr.f32.mxu1 %v613_v58 }
 0x112   : > { %1209 = vmatmul.mubr.f32.gmra.mrb[12].mxu1 %v614_v60  ;;  %v616_v3 = vmax.f32 %v542_v61, 0.0 }
 0x113   : > { %v615_v1 = vmax.f32 %v537_v0, 0.0  ;;  %v1136_v2 = vpop.f32.mrb[22].mxu0 }
 0x114   : > { %v552_v4 = vadd.f32 %v1136_v2, %v1479_v63  ;;  %v546_v5 = vpop.f32.mrb[23].mxu0 }
 0x115   : > { %v547_v6 = vadd.f32 %v1479_v63, %v546_v5  ;;  %1211 = vmatprep.mubr.f32.mxu1 %v615_v1 }
 0x116   : > { %1212 = vmatmul.mubr.f32.gmra.mrb[14].mxu1 %v616_v3  ;;  %v618_v9 = vmax.f32 %v552_v4, 0.0 }
 0x117   : > { %v617_v7 = vmax.f32 %v547_v6, 0.0  ;;  %v1139_v8 = vpop.f32.mrb[24].mxu0 }
 0x118   : > { %v562_v10 = vadd.f32 %v1139_v8, %v1479_v63  ;;  %v556_v11 = vpop.f32.mrb[25].mxu0 }
 0x119   : > { %v557_v12 = vadd.f32 %v1479_v63, %v556_v11  ;;  %1214 = vmatprep.mubr.f32.mxu1 %v617_v7 }
 0x11a   : > { %1215 = vmatmul.mubr.f32.gmra.mrb[16].mxu1 %v618_v9  ;;  %v620_v15 = vmax.f32 %v562_v10, 0.0 }
 0x11b   : > { %v619_v13 = vmax.f32 %v557_v12, 0.0  ;;  %v1142_v14 = vpop.f32.mrb[26].mxu0 }
 0x11c   : > { %v572_v16 = vadd.f32 %v1142_v14, %v1479_v63  ;;  %v566_v17 = vpop.f32.mrb[27].mxu0 }
 0x11d   : > { %v567_v18 = vadd.f32 %v1479_v63, %v566_v17  ;;  %1217 = vmatprep.mubr.f32.mxu1 %v619_v13 }
 0x11e   : > { %1218 = vmatmul.mubr.f32.gmra.mrb[18].mxu1 %v620_v15  ;;  %v622_v21 = vmax.f32 %v572_v16, 0.0 }
 0x11f   : > { %v621_v19 = vmax.f32 %v567_v18, 0.0  ;;  %v1145_v20 = vpop.f32.mrb[28].mxu0 }
 0x120   : > { %v582_v22 = vadd.f32 %v1145_v20, %v1479_v63  ;;  %v576_v23 = vpop.f32.mrb[29].mxu0 }
 0x121   : > { %v577_v24 = vadd.f32 %v1479_v63, %v576_v23  ;;  %1220 = vmatprep.mubr.f32.mxu1 %v621_v19 }
 0x122   : > { %1221 = vmatmul.mubr.f32.gmra.mrb[20].mxu1 %v622_v21  ;;  %v624_v27 = vmax.f32 %v582_v22, 0.0 }
 0x123   : > { %v623_v25 = vmax.f32 %v577_v24, 0.0  ;;  %v1148_v26 = vpop.f32.mrb[30].mxu0 }
 0x124   : > { %v592_v28 = vadd.f32 %v1148_v26, %v1479_v63  ;;  %v586_v29 = vpop.f32.mrb[31].mxu0 }
 0x125   : > { %v587_v30 = vadd.f32 %v1479_v63, %v586_v29  ;;  %1223 = vmatprep.mubr.f32.mxu1 %v623_v25 }
 0x126   : > { %1224 = vmatmul.mubr.f32.gmra.mrb[22].mxu1 %v624_v27  ;;  %v626_v32 = vmax.f32 %v592_v28, 0.0 }
 0x127   : > { %v625_v31 = vmax.f32 %v587_v30, 0.0 }
 0x129   : > { %1226 = vmatprep.mubr.f32.mxu1 %v625_v31 }
 0x12a   : > { %1227 = vmatmul.mubr.f32.gmra.mrb[24].mxu1 %v626_v32 }
 0x1c1   : > { %v1183_v34 = vpop.f32.mrb[32].mxu0 }
 0x1c2   : > { %v722_v63 = vadd.f32 %v1183_v34, %v1513_v33  ;;  %v716_v35 = vpop.f32.mrb[33].mxu0 }
 0x1c3   : > { %v717_v36 = vadd.f32 %v1513_v33, %v716_v35 }
 0x1c4   : > { %877 = vst.msk [vmem:[%s1520_s23 + $0x8] sm:$0xff] %vm875_vm1, %v722_v63 }
 0x1c5   : > { %876 = vst.msk [vmem:[%s1520_s23] sm:$0xff] %vm875_vm1, %v717_v36  ;;  %v1186_v37 = vpop.f32.mrb[34].mxu0 }
 0x1c6   : > { %v732_v38 = vadd.f32 %v1186_v37, %v1513_v33  ;;  %v726_v39 = vpop.f32.mrb[35].mxu0 }
 0x1c7   : > { %v727_v40 = vadd.f32 %v1513_v33, %v726_v39 }
 0x1c8   : > { %879 = vst.msk [vmem:[%s1520_s23 + $0x18] sm:$0xff] %vm875_vm1, %v732_v38 }
 0x1c9   : > { %878 = vst.msk [vmem:[%s1520_s23 + $0x10] sm:$0xff] %vm875_vm1, %v727_v40  ;;  %v1189_v41 = vpop.f32.mrb[36].mxu0 }
 0x1ca   : > { %v742_v42 = vadd.f32 %v1189_v41, %v1513_v33  ;;  %v736_v43 = vpop.f32.mrb[37].mxu0 }
 0x1cb   : > { %v737_v44 = vadd.f32 %v1513_v33, %v736_v43 }
 0x1cc   : > { %881 = vst.msk [vmem:[%s1520_s23 + $0x28] sm:$0xff] %vm875_vm1, %v742_v42 }
 0x1cd   : > { %880 = vst.msk [vmem:[%s1520_s23 + $0x20] sm:$0xff] %vm875_vm1, %v737_v44  ;;  %v1192_v45 = vpop.f32.mrb[0].mxu1 }
 0x1ce   : > { %v752_v46 = vadd.f32 %v1192_v45, %v1513_v33  ;;  %v746_v47 = vpop.f32.mrb[1].mxu1 }
 0x1cf   : > { %v747_v48 = vadd.f32 %v1513_v33, %v746_v47 }
 0x1d0   : > { %883 = vst.msk [vmem:[%s1520_s23 + $0x38] sm:$0xff] %vm875_vm1, %v752_v46 }
 0x1d1   : > { %882 = vst.msk [vmem:[%s1520_s23 + $0x30] sm:$0xff] %vm875_vm1, %v747_v48  ;;  %v1195_v49 = vpop.f32.mrb[2].mxu1 }
 0x1d2   : > { %v762_v50 = vadd.f32 %v1195_v49, %v1513_v33  ;;  %v756_v51 = vpop.f32.mrb[3].mxu1 }
 0x1d3   : > { %v757_v52 = vadd.f32 %v1513_v33, %v756_v51 }
 0x1d4   : > { %885 = vst.msk [vmem:[%s1520_s23 + $0x48] sm:$0xff] %vm875_vm1, %v762_v50 }
 0x1d5   : > { %884 = vst.msk [vmem:[%s1520_s23 + $0x40] sm:$0xff] %vm875_vm1, %v757_v52  ;;  %v1198_v53 = vpop.f32.mrb[4].mxu1 }
 0x1d6   : > { %v772_v54 = vadd.f32 %v1198_v53, %v1513_v33  ;;  %v766_v55 = vpop.f32.mrb[5].mxu1 }
 0x1d7   : > { %v767_v56 = vadd.f32 %v1513_v33, %v766_v55 }
 0x1d8   : > { %887 = vst.msk [vmem:[%s1520_s23 + $0x58] sm:$0xff] %vm875_vm1, %v772_v54 }
 0x1d9   : > { %886 = vst.msk [vmem:[%s1520_s23 + $0x50] sm:$0xff] %vm875_vm1, %v767_v56  ;;  %v1201_v57 = vpop.f32.mrb[6].mxu1 }
 0x1da   : > { %v782_v58 = vadd.f32 %v1201_v57, %v1513_v33  ;;  %v776_v59 = vpop.f32.mrb[7].mxu1 }
 0x1db   : > { %v777_v60 = vadd.f32 %v1513_v33, %v776_v59 }
 0x1dc   : > { %889 = vst.msk [vmem:[%s1520_s23 + $0x68] sm:$0xff] %vm875_vm1, %v782_v58 }
 0x1dd   : > { %888 = vst.msk [vmem:[%s1520_s23 + $0x60] sm:$0xff] %vm875_vm1, %v777_v60  ;;  %v1204_v61 = vpop.f32.mrb[8].mxu1 }
 0x1de   : > { %v792_v62 = vadd.f32 %v1204_v61, %v1513_v33  ;;  %v786_v0 = vpop.f32.mrb[9].mxu1 }
 0x1df   : > { %v787_v1 = vadd.f32 %v1513_v33, %v786_v0 }
 0x1e0   : > { %891 = vst.msk [vmem:[%s1520_s23 + $0x78] sm:$0xff] %vm875_vm1, %v792_v62 }
 0x1e1   : > { %890 = vst.msk [vmem:[%s1520_s23 + $0x70] sm:$0xff] %vm875_vm1, %v787_v1  ;;  %v1207_v2 = vpop.f32.mrb[10].mxu1 }
 0x1e2   : > { %v802_v3 = vadd.f32 %v1207_v2, %v1513_v33  ;;  %v796_v4 = vpop.f32.mrb[11].mxu1 }
 0x1e3   : > { %v797_v5 = vadd.f32 %v1513_v33, %v796_v4 }
 0x1e4   : > { %893 = vst.msk [vmem:[%s1520_s23 + $0x88] sm:$0xff] %vm875_vm1, %v802_v3 }
 0x1e5   : > { %892 = vst.msk [vmem:[%s1520_s23 + $0x80] sm:$0xff] %vm875_vm1, %v797_v5  ;;  %v1210_v6 = vpop.f32.mrb[12].mxu1 }
 0x1e6   : > { %v812_v7 = vadd.f32 %v1210_v6, %v1513_v33  ;;  %v806_v8 = vpop.f32.mrb[13].mxu1 }
 0x1e7   : > { %v807_v9 = vadd.f32 %v1513_v33, %v806_v8 }
 0x1e8   : > { %895 = vst.msk [vmem:[%s1520_s23 + $0x98] sm:$0xff] %vm875_vm1, %v812_v7 }
 0x1e9   : > { %894 = vst.msk [vmem:[%s1520_s23 + $0x90] sm:$0xff] %vm875_vm1, %v807_v9  ;;  %v1213_v10 = vpop.f32.mrb[14].mxu1 }
 0x1ea   : > { %v822_v11 = vadd.f32 %v1213_v10, %v1513_v33  ;;  %v816_v12 = vpop.f32.mrb[15].mxu1 }
 0x1eb   : > { %v817_v13 = vadd.f32 %v1513_v33, %v816_v12 }
 0x1ec   : > { %897 = vst.msk [vmem:[%s1520_s23 + $0xa8] sm:$0xff] %vm875_vm1, %v822_v11 }
 0x1ed   : > { %896 = vst.msk [vmem:[%s1520_s23 + $0xa0] sm:$0xff] %vm875_vm1, %v817_v13  ;;  %v1216_v14 = vpop.f32.mrb[16].mxu1 }
 0x1ee   : > { %v832_v15 = vadd.f32 %v1216_v14, %v1513_v33  ;;  %v826_v16 = vpop.f32.mrb[17].mxu1 }
 0x1ef   : > { %v827_v17 = vadd.f32 %v1513_v33, %v826_v16 }
 0x1f0   : > { %899 = vst.msk [vmem:[%s1520_s23 + $0xb8] sm:$0xff] %vm875_vm1, %v832_v15 }
 0x1f1   : > { %898 = vst.msk [vmem:[%s1520_s23 + $0xb0] sm:$0xff] %vm875_vm1, %v827_v17  ;;  %v1219_v18 = vpop.f32.mrb[18].mxu1 }
 0x1f2   : > { %v842_v19 = vadd.f32 %v1219_v18, %v1513_v33  ;;  %v836_v20 = vpop.f32.mrb[19].mxu1 }
 0x1f3   : > { %v837_v21 = vadd.f32 %v1513_v33, %v836_v20 }
 0x1f4   : > { %901 = vst.msk [vmem:[%s1520_s23 + $0xc8] sm:$0xff] %vm875_vm1, %v842_v19 }
 0x1f5   : > { %900 = vst.msk [vmem:[%s1520_s23 + $0xc0] sm:$0xff] %vm875_vm1, %v837_v21  ;;  %v1222_v22 = vpop.f32.mrb[20].mxu1 }
 0x1f6   : > { %v852_v23 = vadd.f32 %v1222_v22, %v1513_v33  ;;  %v846_v24 = vpop.f32.mrb[21].mxu1 }
 0x1f7   : > { %v847_v25 = vadd.f32 %v1513_v33, %v846_v24 }
 0x1f8   : > { %903 = vst.msk [vmem:[%s1520_s23 + $0xd8] sm:$0xff] %vm875_vm1, %v852_v23 }
 0x1f9   : > { %902 = vst.msk [vmem:[%s1520_s23 + $0xd0] sm:$0xff] %vm875_vm1, %v847_v25  ;;  %v1225_v26 = vpop.f32.mrb[22].mxu1 }
 0x1fa   : > { %v862_v27 = vadd.f32 %v1225_v26, %v1513_v33  ;;  %v856_v28 = vpop.f32.mrb[23].mxu1 }
 0x1fb   : > { %v857_v29 = vadd.f32 %v1513_v33, %v856_v28 }
 0x1fc   : > { %905 = vst.msk [vmem:[%s1520_s23 + $0xe8] sm:$0xff] %vm875_vm1, %v862_v27 }
 0x1fd   : > { %904 = vst.msk [vmem:[%s1520_s23 + $0xe0] sm:$0xff] %vm875_vm1, %v857_v29  ;;  %v1228_v30 = vpop.f32.mrb[24].mxu1 }
 0x1fe   : > { %v872_v31 = vadd.f32 %v1228_v30, %v1513_v33  ;;  %v866_v32 = vpop.f32.mrb[25].mxu1 }
 0x1ff   : > { %v867_v34 = vadd.f32 %v1513_v33, %v866_v32 }
 0x200   : > { %907 = vst.msk [vmem:[%s1520_s23 + $0xf8] sm:$0xff] %vm875_vm1, %v872_v31 }
 0x201   : > { %906 = vst.msk [vmem:[%s1520_s23 + $0xf0] sm:$0xff] %vm875_vm1, %v867_v34 }
 0x202 PF: > { %s17_s20 = sadd.s32 1, %s1299_s20  }
 0x203   : > { %p14_p4 = scmp.ge.s32.totalorder %s17_s20, 4  }
 0x205   :  { %16 = sbr.rel (!%p14_p4) target bundleno = 3 (0x3), region = 70 }

</bundles_post_ra>
